<compile_context>
chip_gen: v7x
topology: tpu7x:2x2x1
jax: 0.10.0
libtpu: 0.0.40
codegen_flags: <defaults>
</compile_context>

<pallas_src>
import math

import jax
import jax.numpy as jnp
from jax.experimental import pallas as pl
from jax.experimental.pallas import tpu as pltpu

NUM_HEADS = 8
LN_EPS = 1e-5  # PyTorch nn.LayerNorm default


# ----------------------------- kernel helpers ------------------------------

def _layer_norm(x, g, b):
    mu = jnp.mean(x, axis=-1, keepdims=True)
    var = jnp.mean((x - mu) ** 2, axis=-1, keepdims=True)  # biased, like torch
    return (x - mu) * jax.lax.rsqrt(var + LN_EPS) * g + b


def _mm(a, w_bf16):
    """2-D matmul (M, K) @ (K, N) -> (M, N); bf16 MXU operands, f32 accumulate."""
    return jnp.dot(a.astype(jnp.bfloat16), w_bf16,
                   preferred_element_type=jnp.float32)


def _mha(q, k, v, num_heads, head_dim):
    """Multi-head attention on fused-projection activations.

    q: (Sq, D) pre-scaled; k, v: (Sk, D).  Heads are contiguous head_dim-wide
    column blocks.  Per-head score/PV matmuls (inherent small contraction);
    heads re-joined along lanes for the fused K=D output projection.
    Returns (Sq, D) f32.
    """
    outs = []
    for h in range(num_heads):
        lo, hi = h * head_dim, (h + 1) * head_dim
        qh = q[:, lo:hi].astype(jnp.bfloat16)             # (Sq, hd)
        kh = k[:, lo:hi].astype(jnp.bfloat16)             # (Sk, hd)
        vh = v[:, lo:hi].astype(jnp.bfloat16)             # (Sk, hd)
        # scores: contract over head_dim (rhs transposed), f32 accumulate.
        s = jax.lax.dot_general(qh, kh, (((1,), (1,)), ((), ())),
                                preferred_element_type=jnp.float32)  # (Sq, Sk)
        s = s - jnp.max(s, axis=-1, keepdims=True)
        p = jnp.exp(s)
        p = p * pl.reciprocal(jnp.sum(p, axis=-1, keepdims=True), approx=True)
        outs.append(jnp.dot(p.astype(jnp.bfloat16), vh,
                            preferred_element_type=jnp.float32))     # (Sq, hd)
    return jnp.concatenate(outs, axis=-1)                 # (Sq, D) f32


def _gelu(x):
    # TODO(synk): PyTorch nn.GELU() default is the exact erf GELU; using the
    # tanh approximation for portable Mosaic (EUP tanh) lowering.
    c = math.sqrt(2.0 / math.pi)
    return 0.5 * x * (1.0 + jnp.tanh(c * (x + 0.044715 * x * x * x)))


# --------------------------------- kernel ----------------------------------

def decoder_layer_kernel(
    x_ref, mem_ref,
    g1_ref, b1_ref, wqkv_ref, bqkv_ref, wo_ref, bo_ref,
    g2_ref, b2_ref, cwq_ref, cbq_ref, cwkv_ref, cbkv_ref, cwo_ref, cbo_ref,
    g3_ref, b3_ref, w1_ref, bm1_ref, w2_ref, bm2_ref,
    out_ref,
):
    _, S, D = x_ref.shape
    _, Sm, _ = mem_ref.shape
    H = NUM_HEADS
    hd = D // H

    x = x_ref[...].reshape(S, D)       # one batch element per grid step
    mem = mem_ref[...].reshape(Sm, D)

    # ---- x = x + self_attn(norm1(x)) ----
    h = _layer_norm(x, g1_ref[...], b1_ref[...])
    qkv = _mm(h, wqkv_ref[...]) + bqkv_ref[...]              # (S, 3D) f32, Q pre-scaled
    # TODO(synk): no attention mask applied (reference MultiHeadSelfAttention
    # is assumed unmasked); add a causal mask here if the reference uses one.
    o = _mha(qkv[:, :D], qkv[:, D:2 * D], qkv[:, 2 * D:], H, hd)
    x = x + _mm(o, wo_ref[...]) + bo_ref[...]                # dropout = identity (eval)

    # ---- x = x + cross_attn(norm2(x), memory) ----
    h = _layer_norm(x, g2_ref[...], b2_ref[...])
    q = _mm(h, cwq_ref[...]) + cbq_ref[...]                  # (S, D) f32, pre-scaled
    kv = _mm(mem, cwkv_ref[...]) + cbkv_ref[...]             # (Sm, 2D) f32
    o = _mha(q, kv[:, :D], kv[:, D:], H, hd)
    x = x + _mm(o, cwo_ref[...]) + cbo_ref[...]

    # ---- x = x + mlp(norm3(x)) ----
    h = _layer_norm(x, g3_ref[...], b3_ref[...])
    m = _gelu(_mm(h, w1_ref[...]) + bm1_ref[...])            # (S, 4D) f32
    x = x + _mm(m, w2_ref[...]) + bm2_ref[...]               # dropout = identity (eval)

    out_ref[...] = x.reshape(1, S, D).astype(out_ref.dtype)


# --------------------------------- wrapper ---------------------------------

def decoder_layer(x, memory, kernel_params):
    B, S, D = x.shape
    _, Sm, _ = memory.shape

    # Activations / output: one batch element per grid step, double-buffered.
    act_specs = [
        pl.BlockSpec((1, S, D), lambda b: (b, 0, 0)),
        pl.BlockSpec((1, Sm, D), lambda b: (b, 0, 0)),
    ]

    # Weights / biases: full array, constant block index (never re-DMA'd),
    # single-buffered so they don't pay 2x VMEM.
    def weight_spec(a):
        n = a.ndim
        return pl.BlockSpec(a.shape, lambda b, _n=n: (0,) * _n,
                            pipeline_mode=pl.Buffered(1))

    in_specs = act_specs + [weight_spec(a) for a in kernel_params]
    out_spec = pl.BlockSpec((1, S, D), lambda b: (b, 0, 0))

    return pl.pallas_call(
        decoder_layer_kernel,
        out_shape=jax.ShapeDtypeStruct((B, S, D), x.dtype),
        grid_spec=pltpu.PrefetchScalarGridSpec(
            num_scalar_prefetch=0,
            grid=(B,),                       # parallel batch axis (megacore on v7x)
            in_specs=in_specs,
            out_specs=out_spec,
        ),
        compiler_params=pltpu.CompilerParams(
            dimension_semantics=("parallel",),
            vmem_limit_bytes=48 * 1024 * 1024,
        ),
    )(x, memory, *kernel_params)


# ------------------------- parameter preparation ---------------------------

def init_params(key, dim, mlp_ratio=4):
    """PyTorch-equivalent weights: Linear weights stored [in, out]."""
    hid = int(dim * mlp_ratio)
    keys = iter(jax.random.split(key, 20))

    def lin(din, dout):
        w = jax.random.normal(next(keys), (din, dout), jnp.float32) / math.sqrt(din)
        b = 0.01 * jax.random.normal(next(keys), (1, dout), jnp.float32)
        return w, b

    def ln():
        return jnp.ones((1, dim), jnp.float32), jnp.zeros((1, dim), jnp.float32)

    g1, b1 = ln()
    wq, bq = lin(dim, dim)
    wk, bk = lin(dim, dim)
    wv, bv = lin(dim, dim)
    wo, bo = lin(dim, dim)
    g2, b2 = ln()
    cwq, cbq = lin(dim, dim)
    cwk, cbk = lin(dim, dim)
    cwv, cbv = lin(dim, dim)
    cwo, cbo = lin(dim, dim)
    g3, b3 = ln()
    w1, bm1 = lin(dim, hid)
    w2, bm2 = lin(hid, dim)

    return [g1, b1, wq, bq, wk, bk, wv, bv, wo, bo,
            g2, b2, cwq, cbq, cwk, cbk, cwv, cbv, cwo, cbo,
            g3, b3, w1, bm1, w2, bm2]


def prepare_kernel_params(params, dim, num_heads=NUM_HEADS):
    """One-time fuse / scale-fold / cast of PyTorch-layout params.

    - QKV fused column-wise: (D, 3D) bf16 with layout [Q | K | V]; heads are
      contiguous D/num_heads column slices inside each block (PyTorch
      convention).  Cross-attn K/V fused likewise into (D, 2D).
    - 1/sqrt(head_dim) folded into the Q columns (weights and biases) of both
      attentions, so the kernel never multiplies by the scale.
    - Matmul weights bf16; biases / LayerNorm params stay f32.
    """
    (g1, b1, wq, bq, wk, bk, wv, bv, wo, bo,
     g2, b2, cwq, cbq, cwk, cbk, cwv, cbv, cwo, cbo,
     g3, b3, w1, bm1, w2, bm2) = params
    hd = dim // num_heads
    scale = 1.0 / math.sqrt(hd)
    bf = jnp.bfloat16

    wqkv = jnp.concatenate([wq * scale, wk, wv], axis=1).astype(bf)   # (D, 3D)
    bqkv = jnp.concatenate([bq * scale, bk, bv], axis=1)              # (1, 3D) f32
    cwq_s = (cwq * scale).astype(bf)
    cbq_s = cbq * scale
    cwkv = jnp.concatenate([cwk, cwv], axis=1).astype(bf)             # (D, 2D)
    cbkv = jnp.concatenate([cbk, cbv], axis=1)                        # (1, 2D) f32

    return [g1, b1, wqkv, bqkv, wo.astype(bf), bo,
            g2, b2, cwq_s, cbq_s, cwkv, cbkv, cwo.astype(bf), cbo,
            g3, b3, w1.astype(bf), bm1, w2.astype(bf), bm2]


# ----------------------------------- main -----------------------------------

if __name__ == "__main__":
    key = jax.random.PRNGKey(0)
    kx, km, kp = jax.random.split(key, 3)

    B, S, Sm, D = 2, 8, 8, 32   # dim=32, num_heads=8 -> head_dim=4, mlp_hidden=128
    x = jax.random.normal(kx, (B, S, D), jnp.float32)
    memory = jax.random.normal(km, (B, Sm, D), jnp.float32)

    params = init_params(kp, D)
    kparams = prepare_kernel_params(params, D, NUM_HEADS)

    out = decoder_layer(x, memory, kparams)
    jax.block_until_ready(out)
    assert out.shape == (B, S, D) and out.dtype == jnp.float32
    assert bool(jnp.all(jnp.isfinite(out)))
    print("KERNEL_OK")
</pallas_src>

<mosaic_0001>
module attributes {stable_mosaic.version = 11 : i64} {
  func.func @decoder_layer_kernel(%arg0: i32, %arg1: memref<1x8x32xf32, #tpu.memory_space<vmem>>, %arg2: memref<1x8x32xf32, #tpu.memory_space<vmem>>, %arg3: memref<1x32xf32, #tpu.memory_space<vmem>>, %arg4: memref<1x32xf32, #tpu.memory_space<vmem>>, %arg5: memref<32x96xbf16, #tpu.memory_space<vmem>>, %arg6: memref<1x96xf32, #tpu.memory_space<vmem>>, %arg7: memref<32x32xbf16, #tpu.memory_space<vmem>>, %arg8: memref<1x32xf32, #tpu.memory_space<vmem>>, %arg9: memref<1x32xf32, #tpu.memory_space<vmem>>, %arg10: memref<1x32xf32, #tpu.memory_space<vmem>>, %arg11: memref<32x32xbf16, #tpu.memory_space<vmem>>, %arg12: memref<1x32xf32, #tpu.memory_space<vmem>>, %arg13: memref<32x64xbf16, #tpu.memory_space<vmem>>, %arg14: memref<1x64xf32, #tpu.memory_space<vmem>>, %arg15: memref<32x32xbf16, #tpu.memory_space<vmem>>, %arg16: memref<1x32xf32, #tpu.memory_space<vmem>>, %arg17: memref<1x32xf32, #tpu.memory_space<vmem>>, %arg18: memref<1x32xf32, #tpu.memory_space<vmem>>, %arg19: memref<32x128xbf16, #tpu.memory_space<vmem>>, %arg20: memref<1x128xf32, #tpu.memory_space<vmem>>, %arg21: memref<128x32xbf16, #tpu.memory_space<vmem>>, %arg22: memref<1x32xf32, #tpu.memory_space<vmem>>, %arg23: memref<1x8x32xf32, #tpu.memory_space<vmem>>) attributes {dimension_semantics = [#tpu.dimension_semantics<parallel>], iteration_bounds = array<i64: 2>, scalar_prefetch = 0 : i64, scratch_operands = 0 : i64, tpu.core_type = #tpu.core_type<tc>, window_params = [{transform_indices = @transform_0, window_bounds = array<i64: 1, 8, 32>}, {transform_indices = @transform_1, window_bounds = array<i64: 1, 8, 32>}, {pipeline_mode = #tpu.pipeline_mode<synchronous>, transform_indices = @transform_2, window_bounds = array<i64: 1, 32>}, {pipeline_mode = #tpu.pipeline_mode<synchronous>, transform_indices = @transform_3, window_bounds = array<i64: 1, 32>}, {pipeline_mode = #tpu.pipeline_mode<synchronous>, transform_indices = @transform_4, window_bounds = array<i64: 32, 96>}, {pipeline_mode = #tpu.pipeline_mode<synchronous>, transform_indices = @transform_5, window_bounds = array<i64: 1, 96>}, {pipeline_mode = #tpu.pipeline_mode<synchronous>, transform_indices = @transform_6, window_bounds = array<i64: 32, 32>}, {pipeline_mode = #tpu.pipeline_mode<synchronous>, transform_indices = @transform_7, window_bounds = array<i64: 1, 32>}, {pipeline_mode = #tpu.pipeline_mode<synchronous>, transform_indices = @transform_8, window_bounds = array<i64: 1, 32>}, {pipeline_mode = #tpu.pipeline_mode<synchronous>, transform_indices = @transform_9, window_bounds = array<i64: 1, 32>}, {pipeline_mode = #tpu.pipeline_mode<synchronous>, transform_indices = @transform_10, window_bounds = array<i64: 32, 32>}, {pipeline_mode = #tpu.pipeline_mode<synchronous>, transform_indices = @transform_11, window_bounds = array<i64: 1, 32>}, {pipeline_mode = #tpu.pipeline_mode<synchronous>, transform_indices = @transform_12, window_bounds = array<i64: 32, 64>}, {pipeline_mode = #tpu.pipeline_mode<synchronous>, transform_indices = @transform_13, window_bounds = array<i64: 1, 64>}, {pipeline_mode = #tpu.pipeline_mode<synchronous>, transform_indices = @transform_14, window_bounds = array<i64: 32, 32>}, {pipeline_mode = #tpu.pipeline_mode<synchronous>, transform_indices = @transform_15, window_bounds = array<i64: 1, 32>}, {pipeline_mode = #tpu.pipeline_mode<synchronous>, transform_indices = @transform_16, window_bounds = array<i64: 1, 32>}, {pipeline_mode = #tpu.pipeline_mode<synchronous>, transform_indices = @transform_17, window_bounds = array<i64: 1, 32>}, {pipeline_mode = #tpu.pipeline_mode<synchronous>, transform_indices = @transform_18, window_bounds = array<i64: 32, 128>}, {pipeline_mode = #tpu.pipeline_mode<synchronous>, transform_indices = @transform_19, window_bounds = array<i64: 1, 128>}, {pipeline_mode = #tpu.pipeline_mode<synchronous>, transform_indices = @transform_20, window_bounds = array<i64: 128, 32>}, {pipeline_mode = #tpu.pipeline_mode<synchronous>, transform_indices = @transform_21, window_bounds = array<i64: 1, 32>}, {transform_indices = @transform_22, window_bounds = array<i64: 1, 8, 32>}]} {
    %c0 = arith.constant 0 : index
    %c0_0 = arith.constant 0 : index
    %c0_1 = arith.constant 0 : index
    %0 = vector.load %arg1[%c0, %c0_0, %c0_1] : memref<1x8x32xf32, #tpu.memory_space<vmem>>, vector<1x8x32xf32>
    %1 = vector.shape_cast %0 : vector<1x8x32xf32> to vector<8x32xf32>
    %c0_2 = arith.constant 0 : index
    %c0_3 = arith.constant 0 : index
    %c0_4 = arith.constant 0 : index
    %2 = vector.load %arg2[%c0_2, %c0_3, %c0_4] : memref<1x8x32xf32, #tpu.memory_space<vmem>>, vector<1x8x32xf32>
    %3 = vector.shape_cast %2 : vector<1x8x32xf32> to vector<8x32xf32>
    %c0_5 = arith.constant 0 : index
    %c0_6 = arith.constant 0 : index
    %4 = vector.load %arg3[%c0_5, %c0_6] : memref<1x32xf32, #tpu.memory_space<vmem>>, vector<1x32xf32>
    %c0_7 = arith.constant 0 : index
    %c0_8 = arith.constant 0 : index
    %5 = vector.load %arg4[%c0_7, %c0_8] : memref<1x32xf32, #tpu.memory_space<vmem>>, vector<1x32xf32>
    %cst = arith.constant dense<0.000000e+00> : vector<8xf32>
    %6 = vector.multi_reduction <add>, %1, %cst [1] : vector<8x32xf32> to vector<8xf32>
    %7 = vector.shape_cast %6 : vector<8xf32> to vector<8x1xf32>
    %cst_9 = arith.constant 3.200000e+01 : f32
    %8 = vector.broadcast %cst_9 : f32 to vector<8x1xf32>
    %9 = arith.divf %7, %8 : vector<8x1xf32>
    %10 = vector.broadcast %9 : vector<8x1xf32> to vector<8x32xf32>
    %11 = arith.subf %1, %10 : vector<8x32xf32>
    %12 = arith.mulf %11, %11 : vector<8x32xf32>
    %cst_10 = arith.constant dense<0.000000e+00> : vector<8xf32>
    %13 = vector.multi_reduction <add>, %12, %cst_10 [1] : vector<8x32xf32> to vector<8xf32>
    %14 = vector.shape_cast %13 : vector<8xf32> to vector<8x1xf32>
    %cst_11 = arith.constant 3.200000e+01 : f32
    %15 = vector.broadcast %cst_11 : f32 to vector<8x1xf32>
    %16 = arith.divf %14, %15 : vector<8x1xf32>
    %17 = vector.broadcast %9 : vector<8x1xf32> to vector<8x32xf32>
    %18 = arith.subf %1, %17 : vector<8x32xf32>
    %cst_12 = arith.constant 9.99999974E-6 : f32
    %19 = vector.broadcast %cst_12 : f32 to vector<8x1xf32>
    %20 = arith.addf %16, %19 : vector<8x1xf32>
    %21 = math.rsqrt %20 : vector<8x1xf32>
    %22 = vector.broadcast %21 : vector<8x1xf32> to vector<8x32xf32>
    %23 = arith.mulf %18, %22 : vector<8x32xf32>
    %24 = vector.broadcast %4 : vector<1x32xf32> to vector<8x32xf32>
    %25 = arith.mulf %23, %24 : vector<8x32xf32>
    %26 = vector.broadcast %5 : vector<1x32xf32> to vector<8x32xf32>
    %27 = arith.addf %25, %26 : vector<8x32xf32>
    %c0_13 = arith.constant 0 : index
    %c0_14 = arith.constant 0 : index
    %28 = vector.load %arg5[%c0_13, %c0_14] : memref<32x96xbf16, #tpu.memory_space<vmem>>, vector<32x96xbf16>
    %29 = arith.truncf %27 : vector<8x32xf32> to vector<8x32xbf16>
    %cst_15 = arith.constant dense<0.000000e+00> : vector<8x96xf32>
    %30 = tpu.matmul %29, %28, %cst_15 {dimension_numbers = #tpu.dot_dimension_numbers<[1], [0], [0], [1], [0, 0, 1, 1], [], []>} : vector<8x32xbf16>, vector<32x96xbf16>, vector<8x96xf32> -> vector<8x96xf32>
    %c0_16 = arith.constant 0 : index
    %c0_17 = arith.constant 0 : index
    %31 = vector.load %arg6[%c0_16, %c0_17] : memref<1x96xf32, #tpu.memory_space<vmem>>, vector<1x96xf32>
    %32 = vector.broadcast %31 : vector<1x96xf32> to vector<8x96xf32>
    %33 = arith.addf %30, %32 : vector<8x96xf32>
    %34 = vector.extract_strided_slice %33 {offsets = [0, 0], sizes = [8, 32], strides = [1, 1]} : vector<8x96xf32> to vector<8x32xf32>
    %35 = vector.extract_strided_slice %33 {offsets = [0, 32], sizes = [8, 32], strides = [1, 1]} : vector<8x96xf32> to vector<8x32xf32>
    %36 = vector.extract_strided_slice %33 {offsets = [0, 64], sizes = [8, 32], strides = [1, 1]} : vector<8x96xf32> to vector<8x32xf32>
    %37 = vector.extract_strided_slice %34 {offsets = [0, 0], sizes = [8, 4], strides = [1, 1]} : vector<8x32xf32> to vector<8x4xf32>
    %38 = arith.truncf %37 : vector<8x4xf32> to vector<8x4xbf16>
    %39 = vector.extract_strided_slice %35 {offsets = [0, 0], sizes = [8, 4], strides = [1, 1]} : vector<8x32xf32> to vector<8x4xf32>
    %40 = arith.truncf %39 : vector<8x4xf32> to vector<8x4xbf16>
    %41 = vector.extract_strided_slice %36 {offsets = [0, 0], sizes = [8, 4], strides = [1, 1]} : vector<8x32xf32> to vector<8x4xf32>
    %42 = arith.truncf %41 : vector<8x4xf32> to vector<8x4xbf16>
    %cst_18 = arith.constant dense<0.000000e+00> : vector<8x8xf32>
    %43 = tpu.matmul %38, %40, %cst_18 {dimension_numbers = #tpu.dot_dimension_numbers<[1], [1], [0], [0], [0, 0, 1, 0], [], []>} : vector<8x4xbf16>, vector<8x4xbf16>, vector<8x8xf32> -> vector<8x8xf32>
    %cst_19 = arith.constant dense<0xFF800000> : vector<8xf32>
    %44 = vector.multi_reduction <maximumf>, %43, %cst_19 [1] : vector<8x8xf32> to vector<8xf32>
    %45 = vector.shape_cast %44 : vector<8xf32> to vector<8x1xf32>
    %46 = vector.broadcast %45 : vector<8x1xf32> to vector<8x8xf32>
    %47 = arith.subf %43, %46 : vector<8x8xf32>
    %48 = math.exp %47 : vector<8x8xf32>
    %cst_20 = arith.constant dense<0.000000e+00> : vector<8xf32>
    %49 = vector.multi_reduction <add>, %48, %cst_20 [1] : vector<8x8xf32> to vector<8xf32>
    %50 = vector.shape_cast %49 : vector<8xf32> to vector<8x1xf32>
    %51 = tpu.reciprocal %50 {approx = true} : vector<8x1xf32> -> vector<8x1xf32>
    %52 = vector.broadcast %51 : vector<8x1xf32> to vector<8x8xf32>
    %53 = arith.mulf %48, %52 : vector<8x8xf32>
    %54 = arith.truncf %53 : vector<8x8xf32> to vector<8x8xbf16>
    %cst_21 = arith.constant dense<0.000000e+00> : vector<8x4xf32>
    %55 = tpu.matmul %54, %42, %cst_21 {dimension_numbers = #tpu.dot_dimension_numbers<[1], [0], [0], [1], [0, 0, 1, 1], [], []>} : vector<8x8xbf16>, vector<8x4xbf16>, vector<8x4xf32> -> vector<8x4xf32>
    %56 = vector.extract_strided_slice %34 {offsets = [0, 4], sizes = [8, 4], strides = [1, 1]} : vector<8x32xf32> to vector<8x4xf32>
    %57 = arith.truncf %56 : vector<8x4xf32> to vector<8x4xbf16>
    %58 = vector.extract_strided_slice %35 {offsets = [0, 4], sizes = [8, 4], strides = [1, 1]} : vector<8x32xf32> to vector<8x4xf32>
    %59 = arith.truncf %58 : vector<8x4xf32> to vector<8x4xbf16>
    %60 = vector.extract_strided_slice %36 {offsets = [0, 4], sizes = [8, 4], strides = [1, 1]} : vector<8x32xf32> to vector<8x4xf32>
    %61 = arith.truncf %60 : vector<8x4xf32> to vector<8x4xbf16>
    %cst_22 = arith.constant dense<0.000000e+00> : vector<8x8xf32>
    %62 = tpu.matmul %57, %59, %cst_22 {dimension_numbers = #tpu.dot_dimension_numbers<[1], [1], [0], [0], [0, 0, 1, 0], [], []>} : vector<8x4xbf16>, vector<8x4xbf16>, vector<8x8xf32> -> vector<8x8xf32>
    %cst_23 = arith.constant dense<0xFF800000> : vector<8xf32>
    %63 = vector.multi_reduction <maximumf>, %62, %cst_23 [1] : vector<8x8xf32> to vector<8xf32>
    %64 = vector.shape_cast %63 : vector<8xf32> to vector<8x1xf32>
    %65 = vector.broadcast %64 : vector<8x1xf32> to vector<8x8xf32>
    %66 = arith.subf %62, %65 : vector<8x8xf32>
    %67 = math.exp %66 : vector<8x8xf32>
    %cst_24 = arith.constant dense<0.000000e+00> : vector<8xf32>
    %68 = vector.multi_reduction <add>, %67, %cst_24 [1] : vector<8x8xf32> to vector<8xf32>
    %69 = vector.shape_cast %68 : vector<8xf32> to vector<8x1xf32>
    %70 = tpu.reciprocal %69 {approx = true} : vector<8x1xf32> -> vector<8x1xf32>
    %71 = vector.broadcast %70 : vector<8x1xf32> to vector<8x8xf32>
    %72 = arith.mulf %67, %71 : vector<8x8xf32>
    %73 = arith.truncf %72 : vector<8x8xf32> to vector<8x8xbf16>
    %cst_25 = arith.constant dense<0.000000e+00> : vector<8x4xf32>
    %74 = tpu.matmul %73, %61, %cst_25 {dimension_numbers = #tpu.dot_dimension_numbers<[1], [0], [0], [1], [0, 0, 1, 1], [], []>} : vector<8x8xbf16>, vector<8x4xbf16>, vector<8x4xf32> -> vector<8x4xf32>
    %75 = vector.extract_strided_slice %34 {offsets = [0, 8], sizes = [8, 4], strides = [1, 1]} : vector<8x32xf32> to vector<8x4xf32>
    %76 = arith.truncf %75 : vector<8x4xf32> to vector<8x4xbf16>
    %77 = vector.extract_strided_slice %35 {offsets = [0, 8], sizes = [8, 4], strides = [1, 1]} : vector<8x32xf32> to vector<8x4xf32>
    %78 = arith.truncf %77 : vector<8x4xf32> to vector<8x4xbf16>
    %79 = vector.extract_strided_slice %36 {offsets = [0, 8], sizes = [8, 4], strides = [1, 1]} : vector<8x32xf32> to vector<8x4xf32>
    %80 = arith.truncf %79 : vector<8x4xf32> to vector<8x4xbf16>
    %cst_26 = arith.constant dense<0.000000e+00> : vector<8x8xf32>
    %81 = tpu.matmul %76, %78, %cst_26 {dimension_numbers = #tpu.dot_dimension_numbers<[1], [1], [0], [0], [0, 0, 1, 0], [], []>} : vector<8x4xbf16>, vector<8x4xbf16>, vector<8x8xf32> -> vector<8x8xf32>
    %cst_27 = arith.constant dense<0xFF800000> : vector<8xf32>
    %82 = vector.multi_reduction <maximumf>, %81, %cst_27 [1] : vector<8x8xf32> to vector<8xf32>
    %83 = vector.shape_cast %82 : vector<8xf32> to vector<8x1xf32>
    %84 = vector.broadcast %83 : vector<8x1xf32> to vector<8x8xf32>
    %85 = arith.subf %81, %84 : vector<8x8xf32>
    %86 = math.exp %85 : vector<8x8xf32>
    %cst_28 = arith.constant dense<0.000000e+00> : vector<8xf32>
    %87 = vector.multi_reduction <add>, %86, %cst_28 [1] : vector<8x8xf32> to vector<8xf32>
    %88 = vector.shape_cast %87 : vector<8xf32> to vector<8x1xf32>
    %89 = tpu.reciprocal %88 {approx = true} : vector<8x1xf32> -> vector<8x1xf32>
    %90 = vector.broadcast %89 : vector<8x1xf32> to vector<8x8xf32>
    %91 = arith.mulf %86, %90 : vector<8x8xf32>
    %92 = arith.truncf %91 : vector<8x8xf32> to vector<8x8xbf16>
    %cst_29 = arith.constant dense<0.000000e+00> : vector<8x4xf32>
    %93 = tpu.matmul %92, %80, %cst_29 {dimension_numbers = #tpu.dot_dimension_numbers<[1], [0], [0], [1], [0, 0, 1, 1], [], []>} : vector<8x8xbf16>, vector<8x4xbf16>, vector<8x4xf32> -> vector<8x4xf32>
    %94 = vector.extract_strided_slice %34 {offsets = [0, 12], sizes = [8, 4], strides = [1, 1]} : vector<8x32xf32> to vector<8x4xf32>
    %95 = arith.truncf %94 : vector<8x4xf32> to vector<8x4xbf16>
    %96 = vector.extract_strided_slice %35 {offsets = [0, 12], sizes = [8, 4], strides = [1, 1]} : vector<8x32xf32> to vector<8x4xf32>
    %97 = arith.truncf %96 : vector<8x4xf32> to vector<8x4xbf16>
    %98 = vector.extract_strided_slice %36 {offsets = [0, 12], sizes = [8, 4], strides = [1, 1]} : vector<8x32xf32> to vector<8x4xf32>
    %99 = arith.truncf %98 : vector<8x4xf32> to vector<8x4xbf16>
    %cst_30 = arith.constant dense<0.000000e+00> : vector<8x8xf32>
    %100 = tpu.matmul %95, %97, %cst_30 {dimension_numbers = #tpu.dot_dimension_numbers<[1], [1], [0], [0], [0, 0, 1, 0], [], []>} : vector<8x4xbf16>, vector<8x4xbf16>, vector<8x8xf32> -> vector<8x8xf32>
    %cst_31 = arith.constant dense<0xFF800000> : vector<8xf32>
    %101 = vector.multi_reduction <maximumf>, %100, %cst_31 [1] : vector<8x8xf32> to vector<8xf32>
    %102 = vector.shape_cast %101 : vector<8xf32> to vector<8x1xf32>
    %103 = vector.broadcast %102 : vector<8x1xf32> to vector<8x8xf32>
    %104 = arith.subf %100, %103 : vector<8x8xf32>
    %105 = math.exp %104 : vector<8x8xf32>
    %cst_32 = arith.constant dense<0.000000e+00> : vector<8xf32>
    %106 = vector.multi_reduction <add>, %105, %cst_32 [1] : vector<8x8xf32> to vector<8xf32>
    %107 = vector.shape_cast %106 : vector<8xf32> to vector<8x1xf32>
    %108 = tpu.reciprocal %107 {approx = true} : vector<8x1xf32> -> vector<8x1xf32>
    %109 = vector.broadcast %108 : vector<8x1xf32> to vector<8x8xf32>
    %110 = arith.mulf %105, %109 : vector<8x8xf32>
    %111 = arith.truncf %110 : vector<8x8xf32> to vector<8x8xbf16>
    %cst_33 = arith.constant dense<0.000000e+00> : vector<8x4xf32>
    %112 = tpu.matmul %111, %99, %cst_33 {dimension_numbers = #tpu.dot_dimension_numbers<[1], [0], [0], [1], [0, 0, 1, 1], [], []>} : vector<8x8xbf16>, vector<8x4xbf16>, vector<8x4xf32> -> vector<8x4xf32>
    %113 = vector.extract_strided_slice %34 {offsets = [0, 16], sizes = [8, 4], strides = [1, 1]} : vector<8x32xf32> to vector<8x4xf32>
    %114 = arith.truncf %113 : vector<8x4xf32> to vector<8x4xbf16>
    %115 = vector.extract_strided_slice %35 {offsets = [0, 16], sizes = [8, 4], strides = [1, 1]} : vector<8x32xf32> to vector<8x4xf32>
    %116 = arith.truncf %115 : vector<8x4xf32> to vector<8x4xbf16>
    %117 = vector.extract_strided_slice %36 {offsets = [0, 16], sizes = [8, 4], strides = [1, 1]} : vector<8x32xf32> to vector<8x4xf32>
    %118 = arith.truncf %117 : vector<8x4xf32> to vector<8x4xbf16>
    %cst_34 = arith.constant dense<0.000000e+00> : vector<8x8xf32>
    %119 = tpu.matmul %114, %116, %cst_34 {dimension_numbers = #tpu.dot_dimension_numbers<[1], [1], [0], [0], [0, 0, 1, 0], [], []>} : vector<8x4xbf16>, vector<8x4xbf16>, vector<8x8xf32> -> vector<8x8xf32>
    %cst_35 = arith.constant dense<0xFF800000> : vector<8xf32>
    %120 = vector.multi_reduction <maximumf>, %119, %cst_35 [1] : vector<8x8xf32> to vector<8xf32>
    %121 = vector.shape_cast %120 : vector<8xf32> to vector<8x1xf32>
    %122 = vector.broadcast %121 : vector<8x1xf32> to vector<8x8xf32>
    %123 = arith.subf %119, %122 : vector<8x8xf32>
    %124 = math.exp %123 : vector<8x8xf32>
    %cst_36 = arith.constant dense<0.000000e+00> : vector<8xf32>
    %125 = vector.multi_reduction <add>, %124, %cst_36 [1] : vector<8x8xf32> to vector<8xf32>
    %126 = vector.shape_cast %125 : vector<8xf32> to vector<8x1xf32>
    %127 = tpu.reciprocal %126 {approx = true} : vector<8x1xf32> -> vector<8x1xf32>
    %128 = vector.broadcast %127 : vector<8x1xf32> to vector<8x8xf32>
    %129 = arith.mulf %124, %128 : vector<8x8xf32>
    %130 = arith.truncf %129 : vector<8x8xf32> to vector<8x8xbf16>
    %cst_37 = arith.constant dense<0.000000e+00> : vector<8x4xf32>
    %131 = tpu.matmul %130, %118, %cst_37 {dimension_numbers = #tpu.dot_dimension_numbers<[1], [0], [0], [1], [0, 0, 1, 1], [], []>} : vector<8x8xbf16>, vector<8x4xbf16>, vector<8x4xf32> -> vector<8x4xf32>
    %132 = vector.extract_strided_slice %34 {offsets = [0, 20], sizes = [8, 4], strides = [1, 1]} : vector<8x32xf32> to vector<8x4xf32>
    %133 = arith.truncf %132 : vector<8x4xf32> to vector<8x4xbf16>
    %134 = vector.extract_strided_slice %35 {offsets = [0, 20], sizes = [8, 4], strides = [1, 1]} : vector<8x32xf32> to vector<8x4xf32>
    %135 = arith.truncf %134 : vector<8x4xf32> to vector<8x4xbf16>
    %136 = vector.extract_strided_slice %36 {offsets = [0, 20], sizes = [8, 4], strides = [1, 1]} : vector<8x32xf32> to vector<8x4xf32>
    %137 = arith.truncf %136 : vector<8x4xf32> to vector<8x4xbf16>
    %cst_38 = arith.constant dense<0.000000e+00> : vector<8x8xf32>
    %138 = tpu.matmul %133, %135, %cst_38 {dimension_numbers = #tpu.dot_dimension_numbers<[1], [1], [0], [0], [0, 0, 1, 0], [], []>} : vector<8x4xbf16>, vector<8x4xbf16>, vector<8x8xf32> -> vector<8x8xf32>
    %cst_39 = arith.constant dense<0xFF800000> : vector<8xf32>
    %139 = vector.multi_reduction <maximumf>, %138, %cst_39 [1] : vector<8x8xf32> to vector<8xf32>
    %140 = vector.shape_cast %139 : vector<8xf32> to vector<8x1xf32>
    %141 = vector.broadcast %140 : vector<8x1xf32> to vector<8x8xf32>
    %142 = arith.subf %138, %141 : vector<8x8xf32>
    %143 = math.exp %142 : vector<8x8xf32>
    %cst_40 = arith.constant dense<0.000000e+00> : vector<8xf32>
    %144 = vector.multi_reduction <add>, %143, %cst_40 [1] : vector<8x8xf32> to vector<8xf32>
    %145 = vector.shape_cast %144 : vector<8xf32> to vector<8x1xf32>
    %146 = tpu.reciprocal %145 {approx = true} : vector<8x1xf32> -> vector<8x1xf32>
    %147 = vector.broadcast %146 : vector<8x1xf32> to vector<8x8xf32>
    %148 = arith.mulf %143, %147 : vector<8x8xf32>
    %149 = arith.truncf %148 : vector<8x8xf32> to vector<8x8xbf16>
    %cst_41 = arith.constant dense<0.000000e+00> : vector<8x4xf32>
    %150 = tpu.matmul %149, %137, %cst_41 {dimension_numbers = #tpu.dot_dimension_numbers<[1], [0], [0], [1], [0, 0, 1, 1], [], []>} : vector<8x8xbf16>, vector<8x4xbf16>, vector<8x4xf32> -> vector<8x4xf32>
    %151 = vector.extract_strided_slice %34 {offsets = [0, 24], sizes = [8, 4], strides = [1, 1]} : vector<8x32xf32> to vector<8x4xf32>
    %152 = arith.truncf %151 : vector<8x4xf32> to vector<8x4xbf16>
    %153 = vector.extract_strided_slice %35 {offsets = [0, 24], sizes = [8, 4], strides = [1, 1]} : vector<8x32xf32> to vector<8x4xf32>
    %154 = arith.truncf %153 : vector<8x4xf32> to vector<8x4xbf16>
    %155 = vector.extract_strided_slice %36 {offsets = [0, 24], sizes = [8, 4], strides = [1, 1]} : vector<8x32xf32> to vector<8x4xf32>
    %156 = arith.truncf %155 : vector<8x4xf32> to vector<8x4xbf16>
    %cst_42 = arith.constant dense<0.000000e+00> : vector<8x8xf32>
    %157 = tpu.matmul %152, %154, %cst_42 {dimension_numbers = #tpu.dot_dimension_numbers<[1], [1], [0], [0], [0, 0, 1, 0], [], []>} : vector<8x4xbf16>, vector<8x4xbf16>, vector<8x8xf32> -> vector<8x8xf32>
    %cst_43 = arith.constant dense<0xFF800000> : vector<8xf32>
    %158 = vector.multi_reduction <maximumf>, %157, %cst_43 [1] : vector<8x8xf32> to vector<8xf32>
    %159 = vector.shape_cast %158 : vector<8xf32> to vector<8x1xf32>
    %160 = vector.broadcast %159 : vector<8x1xf32> to vector<8x8xf32>
    %161 = arith.subf %157, %160 : vector<8x8xf32>
    %162 = math.exp %161 : vector<8x8xf32>
    %cst_44 = arith.constant dense<0.000000e+00> : vector<8xf32>
    %163 = vector.multi_reduction <add>, %162, %cst_44 [1] : vector<8x8xf32> to vector<8xf32>
    %164 = vector.shape_cast %163 : vector<8xf32> to vector<8x1xf32>
    %165 = tpu.reciprocal %164 {approx = true} : vector<8x1xf32> -> vector<8x1xf32>
    %166 = vector.broadcast %165 : vector<8x1xf32> to vector<8x8xf32>
    %167 = arith.mulf %162, %166 : vector<8x8xf32>
    %168 = arith.truncf %167 : vector<8x8xf32> to vector<8x8xbf16>
    %cst_45 = arith.constant dense<0.000000e+00> : vector<8x4xf32>
    %169 = tpu.matmul %168, %156, %cst_45 {dimension_numbers = #tpu.dot_dimension_numbers<[1], [0], [0], [1], [0, 0, 1, 1], [], []>} : vector<8x8xbf16>, vector<8x4xbf16>, vector<8x4xf32> -> vector<8x4xf32>
    %170 = vector.extract_strided_slice %34 {offsets = [0, 28], sizes = [8, 4], strides = [1, 1]} : vector<8x32xf32> to vector<8x4xf32>
    %171 = arith.truncf %170 : vector<8x4xf32> to vector<8x4xbf16>
    %172 = vector.extract_strided_slice %35 {offsets = [0, 28], sizes = [8, 4], strides = [1, 1]} : vector<8x32xf32> to vector<8x4xf32>
    %173 = arith.truncf %172 : vector<8x4xf32> to vector<8x4xbf16>
    %174 = vector.extract_strided_slice %36 {offsets = [0, 28], sizes = [8, 4], strides = [1, 1]} : vector<8x32xf32> to vector<8x4xf32>
    %175 = arith.truncf %174 : vector<8x4xf32> to vector<8x4xbf16>
    %cst_46 = arith.constant dense<0.000000e+00> : vector<8x8xf32>
    %176 = tpu.matmul %171, %173, %cst_46 {dimension_numbers = #tpu.dot_dimension_numbers<[1], [1], [0], [0], [0, 0, 1, 0], [], []>} : vector<8x4xbf16>, vector<8x4xbf16>, vector<8x8xf32> -> vector<8x8xf32>
    %cst_47 = arith.constant dense<0xFF800000> : vector<8xf32>
    %177 = vector.multi_reduction <maximumf>, %176, %cst_47 [1] : vector<8x8xf32> to vector<8xf32>
    %178 = vector.shape_cast %177 : vector<8xf32> to vector<8x1xf32>
    %179 = vector.broadcast %178 : vector<8x1xf32> to vector<8x8xf32>
    %180 = arith.subf %176, %179 : vector<8x8xf32>
    %181 = math.exp %180 : vector<8x8xf32>
    %cst_48 = arith.constant dense<0.000000e+00> : vector<8xf32>
    %182 = vector.multi_reduction <add>, %181, %cst_48 [1] : vector<8x8xf32> to vector<8xf32>
    %183 = vector.shape_cast %182 : vector<8xf32> to vector<8x1xf32>
    %184 = tpu.reciprocal %183 {approx = true} : vector<8x1xf32> -> vector<8x1xf32>
    %185 = vector.broadcast %184 : vector<8x1xf32> to vector<8x8xf32>
    %186 = arith.mulf %181, %185 : vector<8x8xf32>
    %187 = arith.truncf %186 : vector<8x8xf32> to vector<8x8xbf16>
    %cst_49 = arith.constant dense<0.000000e+00> : vector<8x4xf32>
    %188 = tpu.matmul %187, %175, %cst_49 {dimension_numbers = #tpu.dot_dimension_numbers<[1], [0], [0], [1], [0, 0, 1, 1], [], []>} : vector<8x8xbf16>, vector<8x4xbf16>, vector<8x4xf32> -> vector<8x4xf32>
    %189 = tpu.concatenate %55, %74, %93, %112, %131, %150, %169, %188 in 1 : vector<8x4xf32>, vector<8x4xf32>, vector<8x4xf32>, vector<8x4xf32>, vector<8x4xf32>, vector<8x4xf32>, vector<8x4xf32>, vector<8x4xf32> -> vector<8x32xf32>
    %c0_50 = arith.constant 0 : index
    %c0_51 = arith.constant 0 : index
    %190 = vector.load %arg7[%c0_50, %c0_51] : memref<32x32xbf16, #tpu.memory_space<vmem>>, vector<32x32xbf16>
    %191 = arith.truncf %189 : vector<8x32xf32> to vector<8x32xbf16>
    %cst_52 = arith.constant dense<0.000000e+00> : vector<8x32xf32>
    %192 = tpu.matmul %191, %190, %cst_52 {dimension_numbers = #tpu.dot_dimension_numbers<[1], [0], [0], [1], [0, 0, 1, 1], [], []>} : vector<8x32xbf16>, vector<32x32xbf16>, vector<8x32xf32> -> vector<8x32xf32>
    %193 = arith.addf %1, %192 : vector<8x32xf32>
    %c0_53 = arith.constant 0 : index
    %c0_54 = arith.constant 0 : index
    %194 = vector.load %arg8[%c0_53, %c0_54] : memref<1x32xf32, #tpu.memory_space<vmem>>, vector<1x32xf32>
    %195 = vector.broadcast %194 : vector<1x32xf32> to vector<8x32xf32>
    %196 = arith.addf %193, %195 : vector<8x32xf32>
    %c0_55 = arith.constant 0 : index
    %c0_56 = arith.constant 0 : index
    %197 = vector.load %arg9[%c0_55, %c0_56] : memref<1x32xf32, #tpu.memory_space<vmem>>, vector<1x32xf32>
    %c0_57 = arith.constant 0 : index
    %c0_58 = arith.constant 0 : index
    %198 = vector.load %arg10[%c0_57, %c0_58] : memref<1x32xf32, #tpu.memory_space<vmem>>, vector<1x32xf32>
    %cst_59 = arith.constant dense<0.000000e+00> : vector<8xf32>
    %199 = vector.multi_reduction <add>, %196, %cst_59 [1] : vector<8x32xf32> to vector<8xf32>
    %200 = vector.shape_cast %199 : vector<8xf32> to vector<8x1xf32>
    %cst_60 = arith.constant 3.200000e+01 : f32
    %201 = vector.broadcast %cst_60 : f32 to vector<8x1xf32>
    %202 = arith.divf %200, %201 : vector<8x1xf32>
    %203 = vector.broadcast %202 : vector<8x1xf32> to vector<8x32xf32>
    %204 = arith.subf %196, %203 : vector<8x32xf32>
    %205 = arith.mulf %204, %204 : vector<8x32xf32>
    %cst_61 = arith.constant dense<0.000000e+00> : vector<8xf32>
    %206 = vector.multi_reduction <add>, %205, %cst_61 [1] : vector<8x32xf32> to vector<8xf32>
    %207 = vector.shape_cast %206 : vector<8xf32> to vector<8x1xf32>
    %cst_62 = arith.constant 3.200000e+01 : f32
    %208 = vector.broadcast %cst_62 : f32 to vector<8x1xf32>
    %209 = arith.divf %207, %208 : vector<8x1xf32>
    %210 = vector.broadcast %202 : vector<8x1xf32> to vector<8x32xf32>
    %211 = arith.subf %196, %210 : vector<8x32xf32>
    %cst_63 = arith.constant 9.99999974E-6 : f32
    %212 = vector.broadcast %cst_63 : f32 to vector<8x1xf32>
    %213 = arith.addf %209, %212 : vector<8x1xf32>
    %214 = math.rsqrt %213 : vector<8x1xf32>
    %215 = vector.broadcast %214 : vector<8x1xf32> to vector<8x32xf32>
    %216 = arith.mulf %211, %215 : vector<8x32xf32>
    %217 = vector.broadcast %197 : vector<1x32xf32> to vector<8x32xf32>
    %218 = arith.mulf %216, %217 : vector<8x32xf32>
    %219 = vector.broadcast %198 : vector<1x32xf32> to vector<8x32xf32>
    %220 = arith.addf %218, %219 : vector<8x32xf32>
    %c0_64 = arith.constant 0 : index
    %c0_65 = arith.constant 0 : index
    %221 = vector.load %arg11[%c0_64, %c0_65] : memref<32x32xbf16, #tpu.memory_space<vmem>>, vector<32x32xbf16>
    %222 = arith.truncf %220 : vector<8x32xf32> to vector<8x32xbf16>
    %cst_66 = arith.constant dense<0.000000e+00> : vector<8x32xf32>
    %223 = tpu.matmul %222, %221, %cst_66 {dimension_numbers = #tpu.dot_dimension_numbers<[1], [0], [0], [1], [0, 0, 1, 1], [], []>} : vector<8x32xbf16>, vector<32x32xbf16>, vector<8x32xf32> -> vector<8x32xf32>
    %c0_67 = arith.constant 0 : index
    %c0_68 = arith.constant 0 : index
    %224 = vector.load %arg12[%c0_67, %c0_68] : memref<1x32xf32, #tpu.memory_space<vmem>>, vector<1x32xf32>
    %225 = vector.broadcast %224 : vector<1x32xf32> to vector<8x32xf32>
    %226 = arith.addf %223, %225 : vector<8x32xf32>
    %c0_69 = arith.constant 0 : index
    %c0_70 = arith.constant 0 : index
    %227 = vector.load %arg13[%c0_69, %c0_70] : memref<32x64xbf16, #tpu.memory_space<vmem>>, vector<32x64xbf16>
    %228 = arith.truncf %3 : vector<8x32xf32> to vector<8x32xbf16>
    %cst_71 = arith.constant dense<0.000000e+00> : vector<8x64xf32>
    %229 = tpu.matmul %228, %227, %cst_71 {dimension_numbers = #tpu.dot_dimension_numbers<[1], [0], [0], [1], [0, 0, 1, 1], [], []>} : vector<8x32xbf16>, vector<32x64xbf16>, vector<8x64xf32> -> vector<8x64xf32>
    %c0_72 = arith.constant 0 : index
    %c0_73 = arith.constant 0 : index
    %230 = vector.load %arg14[%c0_72, %c0_73] : memref<1x64xf32, #tpu.memory_space<vmem>>, vector<1x64xf32>
    %231 = vector.broadcast %230 : vector<1x64xf32> to vector<8x64xf32>
    %232 = arith.addf %229, %231 : vector<8x64xf32>
    %233 = vector.extract_strided_slice %232 {offsets = [0, 0], sizes = [8, 32], strides = [1, 1]} : vector<8x64xf32> to vector<8x32xf32>
    %234 = vector.extract_strided_slice %232 {offsets = [0, 32], sizes = [8, 32], strides = [1, 1]} : vector<8x64xf32> to vector<8x32xf32>
    %235 = vector.extract_strided_slice %226 {offsets = [0, 0], sizes = [8, 4], strides = [1, 1]} : vector<8x32xf32> to vector<8x4xf32>
    %236 = arith.truncf %235 : vector<8x4xf32> to vector<8x4xbf16>
    %237 = vector.extract_strided_slice %233 {offsets = [0, 0], sizes = [8, 4], strides = [1, 1]} : vector<8x32xf32> to vector<8x4xf32>
    %238 = arith.truncf %237 : vector<8x4xf32> to vector<8x4xbf16>
    %239 = vector.extract_strided_slice %234 {offsets = [0, 0], sizes = [8, 4], strides = [1, 1]} : vector<8x32xf32> to vector<8x4xf32>
    %240 = arith.truncf %239 : vector<8x4xf32> to vector<8x4xbf16>
    %cst_74 = arith.constant dense<0.000000e+00> : vector<8x8xf32>
    %241 = tpu.matmul %236, %238, %cst_74 {dimension_numbers = #tpu.dot_dimension_numbers<[1], [1], [0], [0], [0, 0, 1, 0], [], []>} : vector<8x4xbf16>, vector<8x4xbf16>, vector<8x8xf32> -> vector<8x8xf32>
    %cst_75 = arith.constant dense<0xFF800000> : vector<8xf32>
    %242 = vector.multi_reduction <maximumf>, %241, %cst_75 [1] : vector<8x8xf32> to vector<8xf32>
    %243 = vector.shape_cast %242 : vector<8xf32> to vector<8x1xf32>
    %244 = vector.broadcast %243 : vector<8x1xf32> to vector<8x8xf32>
    %245 = arith.subf %241, %244 : vector<8x8xf32>
    %246 = math.exp %245 : vector<8x8xf32>
    %cst_76 = arith.constant dense<0.000000e+00> : vector<8xf32>
    %247 = vector.multi_reduction <add>, %246, %cst_76 [1] : vector<8x8xf32> to vector<8xf32>
    %248 = vector.shape_cast %247 : vector<8xf32> to vector<8x1xf32>
    %249 = tpu.reciprocal %248 {approx = true} : vector<8x1xf32> -> vector<8x1xf32>
    %250 = vector.broadcast %249 : vector<8x1xf32> to vector<8x8xf32>
    %251 = arith.mulf %246, %250 : vector<8x8xf32>
    %252 = arith.truncf %251 : vector<8x8xf32> to vector<8x8xbf16>
    %cst_77 = arith.constant dense<0.000000e+00> : vector<8x4xf32>
    %253 = tpu.matmul %252, %240, %cst_77 {dimension_numbers = #tpu.dot_dimension_numbers<[1], [0], [0], [1], [0, 0, 1, 1], [], []>} : vector<8x8xbf16>, vector<8x4xbf16>, vector<8x4xf32> -> vector<8x4xf32>
    %254 = vector.extract_strided_slice %226 {offsets = [0, 4], sizes = [8, 4], strides = [1, 1]} : vector<8x32xf32> to vector<8x4xf32>
    %255 = arith.truncf %254 : vector<8x4xf32> to vector<8x4xbf16>
    %256 = vector.extract_strided_slice %233 {offsets = [0, 4], sizes = [8, 4], strides = [1, 1]} : vector<8x32xf32> to vector<8x4xf32>
    %257 = arith.truncf %256 : vector<8x4xf32> to vector<8x4xbf16>
    %258 = vector.extract_strided_slice %234 {offsets = [0, 4], sizes = [8, 4], strides = [1, 1]} : vector<8x32xf32> to vector<8x4xf32>
    %259 = arith.truncf %258 : vector<8x4xf32> to vector<8x4xbf16>
    %cst_78 = arith.constant dense<0.000000e+00> : vector<8x8xf32>
    %260 = tpu.matmul %255, %257, %cst_78 {dimension_numbers = #tpu.dot_dimension_numbers<[1], [1], [0], [0], [0, 0, 1, 0], [], []>} : vector<8x4xbf16>, vector<8x4xbf16>, vector<8x8xf32> -> vector<8x8xf32>
    %cst_79 = arith.constant dense<0xFF800000> : vector<8xf32>
    %261 = vector.multi_reduction <maximumf>, %260, %cst_79 [1] : vector<8x8xf32> to vector<8xf32>
    %262 = vector.shape_cast %261 : vector<8xf32> to vector<8x1xf32>
    %263 = vector.broadcast %262 : vector<8x1xf32> to vector<8x8xf32>
    %264 = arith.subf %260, %263 : vector<8x8xf32>
    %265 = math.exp %264 : vector<8x8xf32>
    %cst_80 = arith.constant dense<0.000000e+00> : vector<8xf32>
    %266 = vector.multi_reduction <add>, %265, %cst_80 [1] : vector<8x8xf32> to vector<8xf32>
    %267 = vector.shape_cast %266 : vector<8xf32> to vector<8x1xf32>
    %268 = tpu.reciprocal %267 {approx = true} : vector<8x1xf32> -> vector<8x1xf32>
    %269 = vector.broadcast %268 : vector<8x1xf32> to vector<8x8xf32>
    %270 = arith.mulf %265, %269 : vector<8x8xf32>
    %271 = arith.truncf %270 : vector<8x8xf32> to vector<8x8xbf16>
    %cst_81 = arith.constant dense<0.000000e+00> : vector<8x4xf32>
    %272 = tpu.matmul %271, %259, %cst_81 {dimension_numbers = #tpu.dot_dimension_numbers<[1], [0], [0], [1], [0, 0, 1, 1], [], []>} : vector<8x8xbf16>, vector<8x4xbf16>, vector<8x4xf32> -> vector<8x4xf32>
    %273 = vector.extract_strided_slice %226 {offsets = [0, 8], sizes = [8, 4], strides = [1, 1]} : vector<8x32xf32> to vector<8x4xf32>
    %274 = arith.truncf %273 : vector<8x4xf32> to vector<8x4xbf16>
    %275 = vector.extract_strided_slice %233 {offsets = [0, 8], sizes = [8, 4], strides = [1, 1]} : vector<8x32xf32> to vector<8x4xf32>
    %276 = arith.truncf %275 : vector<8x4xf32> to vector<8x4xbf16>
    %277 = vector.extract_strided_slice %234 {offsets = [0, 8], sizes = [8, 4], strides = [1, 1]} : vector<8x32xf32> to vector<8x4xf32>
    %278 = arith.truncf %277 : vector<8x4xf32> to vector<8x4xbf16>
    %cst_82 = arith.constant dense<0.000000e+00> : vector<8x8xf32>
    %279 = tpu.matmul %274, %276, %cst_82 {dimension_numbers = #tpu.dot_dimension_numbers<[1], [1], [0], [0], [0, 0, 1, 0], [], []>} : vector<8x4xbf16>, vector<8x4xbf16>, vector<8x8xf32> -> vector<8x8xf32>
    %cst_83 = arith.constant dense<0xFF800000> : vector<8xf32>
    %280 = vector.multi_reduction <maximumf>, %279, %cst_83 [1] : vector<8x8xf32> to vector<8xf32>
    %281 = vector.shape_cast %280 : vector<8xf32> to vector<8x1xf32>
    %282 = vector.broadcast %281 : vector<8x1xf32> to vector<8x8xf32>
    %283 = arith.subf %279, %282 : vector<8x8xf32>
    %284 = math.exp %283 : vector<8x8xf32>
    %cst_84 = arith.constant dense<0.000000e+00> : vector<8xf32>
    %285 = vector.multi_reduction <add>, %284, %cst_84 [1] : vector<8x8xf32> to vector<8xf32>
    %286 = vector.shape_cast %285 : vector<8xf32> to vector<8x1xf32>
    %287 = tpu.reciprocal %286 {approx = true} : vector<8x1xf32> -> vector<8x1xf32>
    %288 = vector.broadcast %287 : vector<8x1xf32> to vector<8x8xf32>
    %289 = arith.mulf %284, %288 : vector<8x8xf32>
    %290 = arith.truncf %289 : vector<8x8xf32> to vector<8x8xbf16>
    %cst_85 = arith.constant dense<0.000000e+00> : vector<8x4xf32>
    %291 = tpu.matmul %290, %278, %cst_85 {dimension_numbers = #tpu.dot_dimension_numbers<[1], [0], [0], [1], [0, 0, 1, 1], [], []>} : vector<8x8xbf16>, vector<8x4xbf16>, vector<8x4xf32> -> vector<8x4xf32>
    %292 = vector.extract_strided_slice %226 {offsets = [0, 12], sizes = [8, 4], strides = [1, 1]} : vector<8x32xf32> to vector<8x4xf32>
    %293 = arith.truncf %292 : vector<8x4xf32> to vector<8x4xbf16>
    %294 = vector.extract_strided_slice %233 {offsets = [0, 12], sizes = [8, 4], strides = [1, 1]} : vector<8x32xf32> to vector<8x4xf32>
    %295 = arith.truncf %294 : vector<8x4xf32> to vector<8x4xbf16>
    %296 = vector.extract_strided_slice %234 {offsets = [0, 12], sizes = [8, 4], strides = [1, 1]} : vector<8x32xf32> to vector<8x4xf32>
    %297 = arith.truncf %296 : vector<8x4xf32> to vector<8x4xbf16>
    %cst_86 = arith.constant dense<0.000000e+00> : vector<8x8xf32>
    %298 = tpu.matmul %293, %295, %cst_86 {dimension_numbers = #tpu.dot_dimension_numbers<[1], [1], [0], [0], [0, 0, 1, 0], [], []>} : vector<8x4xbf16>, vector<8x4xbf16>, vector<8x8xf32> -> vector<8x8xf32>
    %cst_87 = arith.constant dense<0xFF800000> : vector<8xf32>
    %299 = vector.multi_reduction <maximumf>, %298, %cst_87 [1] : vector<8x8xf32> to vector<8xf32>
    %300 = vector.shape_cast %299 : vector<8xf32> to vector<8x1xf32>
    %301 = vector.broadcast %300 : vector<8x1xf32> to vector<8x8xf32>
    %302 = arith.subf %298, %301 : vector<8x8xf32>
    %303 = math.exp %302 : vector<8x8xf32>
    %cst_88 = arith.constant dense<0.000000e+00> : vector<8xf32>
    %304 = vector.multi_reduction <add>, %303, %cst_88 [1] : vector<8x8xf32> to vector<8xf32>
    %305 = vector.shape_cast %304 : vector<8xf32> to vector<8x1xf32>
    %306 = tpu.reciprocal %305 {approx = true} : vector<8x1xf32> -> vector<8x1xf32>
    %307 = vector.broadcast %306 : vector<8x1xf32> to vector<8x8xf32>
    %308 = arith.mulf %303, %307 : vector<8x8xf32>
    %309 = arith.truncf %308 : vector<8x8xf32> to vector<8x8xbf16>
    %cst_89 = arith.constant dense<0.000000e+00> : vector<8x4xf32>
    %310 = tpu.matmul %309, %297, %cst_89 {dimension_numbers = #tpu.dot_dimension_numbers<[1], [0], [0], [1], [0, 0, 1, 1], [], []>} : vector<8x8xbf16>, vector<8x4xbf16>, vector<8x4xf32> -> vector<8x4xf32>
    %311 = vector.extract_strided_slice %226 {offsets = [0, 16], sizes = [8, 4], strides = [1, 1]} : vector<8x32xf32> to vector<8x4xf32>
    %312 = arith.truncf %311 : vector<8x4xf32> to vector<8x4xbf16>
    %313 = vector.extract_strided_slice %233 {offsets = [0, 16], sizes = [8, 4], strides = [1, 1]} : vector<8x32xf32> to vector<8x4xf32>
    %314 = arith.truncf %313 : vector<8x4xf32> to vector<8x4xbf16>
    %315 = vector.extract_strided_slice %234 {offsets = [0, 16], sizes = [8, 4], strides = [1, 1]} : vector<8x32xf32> to vector<8x4xf32>
    %316 = arith.truncf %315 : vector<8x4xf32> to vector<8x4xbf16>
    %cst_90 = arith.constant dense<0.000000e+00> : vector<8x8xf32>
    %317 = tpu.matmul %312, %314, %cst_90 {dimension_numbers = #tpu.dot_dimension_numbers<[1], [1], [0], [0], [0, 0, 1, 0], [], []>} : vector<8x4xbf16>, vector<8x4xbf16>, vector<8x8xf32> -> vector<8x8xf32>
    %cst_91 = arith.constant dense<0xFF800000> : vector<8xf32>
    %318 = vector.multi_reduction <maximumf>, %317, %cst_91 [1] : vector<8x8xf32> to vector<8xf32>
    %319 = vector.shape_cast %318 : vector<8xf32> to vector<8x1xf32>
    %320 = vector.broadcast %319 : vector<8x1xf32> to vector<8x8xf32>
    %321 = arith.subf %317, %320 : vector<8x8xf32>
    %322 = math.exp %321 : vector<8x8xf32>
    %cst_92 = arith.constant dense<0.000000e+00> : vector<8xf32>
    %323 = vector.multi_reduction <add>, %322, %cst_92 [1] : vector<8x8xf32> to vector<8xf32>
    %324 = vector.shape_cast %323 : vector<8xf32> to vector<8x1xf32>
    %325 = tpu.reciprocal %324 {approx = true} : vector<8x1xf32> -> vector<8x1xf32>
    %326 = vector.broadcast %325 : vector<8x1xf32> to vector<8x8xf32>
    %327 = arith.mulf %322, %326 : vector<8x8xf32>
    %328 = arith.truncf %327 : vector<8x8xf32> to vector<8x8xbf16>
    %cst_93 = arith.constant dense<0.000000e+00> : vector<8x4xf32>
    %329 = tpu.matmul %328, %316, %cst_93 {dimension_numbers = #tpu.dot_dimension_numbers<[1], [0], [0], [1], [0, 0, 1, 1], [], []>} : vector<8x8xbf16>, vector<8x4xbf16>, vector<8x4xf32> -> vector<8x4xf32>
    %330 = vector.extract_strided_slice %226 {offsets = [0, 20], sizes = [8, 4], strides = [1, 1]} : vector<8x32xf32> to vector<8x4xf32>
    %331 = arith.truncf %330 : vector<8x4xf32> to vector<8x4xbf16>
    %332 = vector.extract_strided_slice %233 {offsets = [0, 20], sizes = [8, 4], strides = [1, 1]} : vector<8x32xf32> to vector<8x4xf32>
    %333 = arith.truncf %332 : vector<8x4xf32> to vector<8x4xbf16>
    %334 = vector.extract_strided_slice %234 {offsets = [0, 20], sizes = [8, 4], strides = [1, 1]} : vector<8x32xf32> to vector<8x4xf32>
    %335 = arith.truncf %334 : vector<8x4xf32> to vector<8x4xbf16>
    %cst_94 = arith.constant dense<0.000000e+00> : vector<8x8xf32>
    %336 = tpu.matmul %331, %333, %cst_94 {dimension_numbers = #tpu.dot_dimension_numbers<[1], [1], [0], [0], [0, 0, 1, 0], [], []>} : vector<8x4xbf16>, vector<8x4xbf16>, vector<8x8xf32> -> vector<8x8xf32>
    %cst_95 = arith.constant dense<0xFF800000> : vector<8xf32>
    %337 = vector.multi_reduction <maximumf>, %336, %cst_95 [1] : vector<8x8xf32> to vector<8xf32>
    %338 = vector.shape_cast %337 : vector<8xf32> to vector<8x1xf32>
    %339 = vector.broadcast %338 : vector<8x1xf32> to vector<8x8xf32>
    %340 = arith.subf %336, %339 : vector<8x8xf32>
    %341 = math.exp %340 : vector<8x8xf32>
    %cst_96 = arith.constant dense<0.000000e+00> : vector<8xf32>
    %342 = vector.multi_reduction <add>, %341, %cst_96 [1] : vector<8x8xf32> to vector<8xf32>
    %343 = vector.shape_cast %342 : vector<8xf32> to vector<8x1xf32>
    %344 = tpu.reciprocal %343 {approx = true} : vector<8x1xf32> -> vector<8x1xf32>
    %345 = vector.broadcast %344 : vector<8x1xf32> to vector<8x8xf32>
    %346 = arith.mulf %341, %345 : vector<8x8xf32>
    %347 = arith.truncf %346 : vector<8x8xf32> to vector<8x8xbf16>
    %cst_97 = arith.constant dense<0.000000e+00> : vector<8x4xf32>
    %348 = tpu.matmul %347, %335, %cst_97 {dimension_numbers = #tpu.dot_dimension_numbers<[1], [0], [0], [1], [0, 0, 1, 1], [], []>} : vector<8x8xbf16>, vector<8x4xbf16>, vector<8x4xf32> -> vector<8x4xf32>
    %349 = vector.extract_strided_slice %226 {offsets = [0, 24], sizes = [8, 4], strides = [1, 1]} : vector<8x32xf32> to vector<8x4xf32>
    %350 = arith.truncf %349 : vector<8x4xf32> to vector<8x4xbf16>
    %351 = vector.extract_strided_slice %233 {offsets = [0, 24], sizes = [8, 4], strides = [1, 1]} : vector<8x32xf32> to vector<8x4xf32>
    %352 = arith.truncf %351 : vector<8x4xf32> to vector<8x4xbf16>
    %353 = vector.extract_strided_slice %234 {offsets = [0, 24], sizes = [8, 4], strides = [1, 1]} : vector<8x32xf32> to vector<8x4xf32>
    %354 = arith.truncf %353 : vector<8x4xf32> to vector<8x4xbf16>
    %cst_98 = arith.constant dense<0.000000e+00> : vector<8x8xf32>
    %355 = tpu.matmul %350, %352, %cst_98 {dimension_numbers = #tpu.dot_dimension_numbers<[1], [1], [0], [0], [0, 0, 1, 0], [], []>} : vector<8x4xbf16>, vector<8x4xbf16>, vector<8x8xf32> -> vector<8x8xf32>
    %cst_99 = arith.constant dense<0xFF800000> : vector<8xf32>
    %356 = vector.multi_reduction <maximumf>, %355, %cst_99 [1] : vector<8x8xf32> to vector<8xf32>
    %357 = vector.shape_cast %356 : vector<8xf32> to vector<8x1xf32>
    %358 = vector.broadcast %357 : vector<8x1xf32> to vector<8x8xf32>
    %359 = arith.subf %355, %358 : vector<8x8xf32>
    %360 = math.exp %359 : vector<8x8xf32>
    %cst_100 = arith.constant dense<0.000000e+00> : vector<8xf32>
    %361 = vector.multi_reduction <add>, %360, %cst_100 [1] : vector<8x8xf32> to vector<8xf32>
    %362 = vector.shape_cast %361 : vector<8xf32> to vector<8x1xf32>
    %363 = tpu.reciprocal %362 {approx = true} : vector<8x1xf32> -> vector<8x1xf32>
    %364 = vector.broadcast %363 : vector<8x1xf32> to vector<8x8xf32>
    %365 = arith.mulf %360, %364 : vector<8x8xf32>
    %366 = arith.truncf %365 : vector<8x8xf32> to vector<8x8xbf16>
    %cst_101 = arith.constant dense<0.000000e+00> : vector<8x4xf32>
    %367 = tpu.matmul %366, %354, %cst_101 {dimension_numbers = #tpu.dot_dimension_numbers<[1], [0], [0], [1], [0, 0, 1, 1], [], []>} : vector<8x8xbf16>, vector<8x4xbf16>, vector<8x4xf32> -> vector<8x4xf32>
    %368 = vector.extract_strided_slice %226 {offsets = [0, 28], sizes = [8, 4], strides = [1, 1]} : vector<8x32xf32> to vector<8x4xf32>
    %369 = arith.truncf %368 : vector<8x4xf32> to vector<8x4xbf16>
    %370 = vector.extract_strided_slice %233 {offsets = [0, 28], sizes = [8, 4], strides = [1, 1]} : vector<8x32xf32> to vector<8x4xf32>
    %371 = arith.truncf %370 : vector<8x4xf32> to vector<8x4xbf16>
    %372 = vector.extract_strided_slice %234 {offsets = [0, 28], sizes = [8, 4], strides = [1, 1]} : vector<8x32xf32> to vector<8x4xf32>
    %373 = arith.truncf %372 : vector<8x4xf32> to vector<8x4xbf16>
    %cst_102 = arith.constant dense<0.000000e+00> : vector<8x8xf32>
    %374 = tpu.matmul %369, %371, %cst_102 {dimension_numbers = #tpu.dot_dimension_numbers<[1], [1], [0], [0], [0, 0, 1, 0], [], []>} : vector<8x4xbf16>, vector<8x4xbf16>, vector<8x8xf32> -> vector<8x8xf32>
    %cst_103 = arith.constant dense<0xFF800000> : vector<8xf32>
    %375 = vector.multi_reduction <maximumf>, %374, %cst_103 [1] : vector<8x8xf32> to vector<8xf32>
    %376 = vector.shape_cast %375 : vector<8xf32> to vector<8x1xf32>
    %377 = vector.broadcast %376 : vector<8x1xf32> to vector<8x8xf32>
    %378 = arith.subf %374, %377 : vector<8x8xf32>
    %379 = math.exp %378 : vector<8x8xf32>
    %cst_104 = arith.constant dense<0.000000e+00> : vector<8xf32>
    %380 = vector.multi_reduction <add>, %379, %cst_104 [1] : vector<8x8xf32> to vector<8xf32>
    %381 = vector.shape_cast %380 : vector<8xf32> to vector<8x1xf32>
    %382 = tpu.reciprocal %381 {approx = true} : vector<8x1xf32> -> vector<8x1xf32>
    %383 = vector.broadcast %382 : vector<8x1xf32> to vector<8x8xf32>
    %384 = arith.mulf %379, %383 : vector<8x8xf32>
    %385 = arith.truncf %384 : vector<8x8xf32> to vector<8x8xbf16>
    %cst_105 = arith.constant dense<0.000000e+00> : vector<8x4xf32>
    %386 = tpu.matmul %385, %373, %cst_105 {dimension_numbers = #tpu.dot_dimension_numbers<[1], [0], [0], [1], [0, 0, 1, 1], [], []>} : vector<8x8xbf16>, vector<8x4xbf16>, vector<8x4xf32> -> vector<8x4xf32>
    %387 = tpu.concatenate %253, %272, %291, %310, %329, %348, %367, %386 in 1 : vector<8x4xf32>, vector<8x4xf32>, vector<8x4xf32>, vector<8x4xf32>, vector<8x4xf32>, vector<8x4xf32>, vector<8x4xf32>, vector<8x4xf32> -> vector<8x32xf32>
    %c0_106 = arith.constant 0 : index
    %c0_107 = arith.constant 0 : index
    %388 = vector.load %arg15[%c0_106, %c0_107] : memref<32x32xbf16, #tpu.memory_space<vmem>>, vector<32x32xbf16>
    %389 = arith.truncf %387 : vector<8x32xf32> to vector<8x32xbf16>
    %cst_108 = arith.constant dense<0.000000e+00> : vector<8x32xf32>
    %390 = tpu.matmul %389, %388, %cst_108 {dimension_numbers = #tpu.dot_dimension_numbers<[1], [0], [0], [1], [0, 0, 1, 1], [], []>} : vector<8x32xbf16>, vector<32x32xbf16>, vector<8x32xf32> -> vector<8x32xf32>
    %391 = arith.addf %196, %390 : vector<8x32xf32>
    %c0_109 = arith.constant 0 : index
    %c0_110 = arith.constant 0 : index
    %392 = vector.load %arg16[%c0_109, %c0_110] : memref<1x32xf32, #tpu.memory_space<vmem>>, vector<1x32xf32>
    %393 = vector.broadcast %392 : vector<1x32xf32> to vector<8x32xf32>
    %394 = arith.addf %391, %393 : vector<8x32xf32>
    %c0_111 = arith.constant 0 : index
    %c0_112 = arith.constant 0 : index
    %395 = vector.load %arg17[%c0_111, %c0_112] : memref<1x32xf32, #tpu.memory_space<vmem>>, vector<1x32xf32>
    %c0_113 = arith.constant 0 : index
    %c0_114 = arith.constant 0 : index
    %396 = vector.load %arg18[%c0_113, %c0_114] : memref<1x32xf32, #tpu.memory_space<vmem>>, vector<1x32xf32>
    %cst_115 = arith.constant dense<0.000000e+00> : vector<8xf32>
    %397 = vector.multi_reduction <add>, %394, %cst_115 [1] : vector<8x32xf32> to vector<8xf32>
    %398 = vector.shape_cast %397 : vector<8xf32> to vector<8x1xf32>
    %cst_116 = arith.constant 3.200000e+01 : f32
    %399 = vector.broadcast %cst_116 : f32 to vector<8x1xf32>
    %400 = arith.divf %398, %399 : vector<8x1xf32>
    %401 = vector.broadcast %400 : vector<8x1xf32> to vector<8x32xf32>
    %402 = arith.subf %394, %401 : vector<8x32xf32>
    %403 = arith.mulf %402, %402 : vector<8x32xf32>
    %cst_117 = arith.constant dense<0.000000e+00> : vector<8xf32>
    %404 = vector.multi_reduction <add>, %403, %cst_117 [1] : vector<8x32xf32> to vector<8xf32>
    %405 = vector.shape_cast %404 : vector<8xf32> to vector<8x1xf32>
    %cst_118 = arith.constant 3.200000e+01 : f32
    %406 = vector.broadcast %cst_118 : f32 to vector<8x1xf32>
    %407 = arith.divf %405, %406 : vector<8x1xf32>
    %408 = vector.broadcast %400 : vector<8x1xf32> to vector<8x32xf32>
    %409 = arith.subf %394, %408 : vector<8x32xf32>
    %cst_119 = arith.constant 9.99999974E-6 : f32
    %410 = vector.broadcast %cst_119 : f32 to vector<8x1xf32>
    %411 = arith.addf %407, %410 : vector<8x1xf32>
    %412 = math.rsqrt %411 : vector<8x1xf32>
    %413 = vector.broadcast %412 : vector<8x1xf32> to vector<8x32xf32>
    %414 = arith.mulf %409, %413 : vector<8x32xf32>
    %415 = vector.broadcast %395 : vector<1x32xf32> to vector<8x32xf32>
    %416 = arith.mulf %414, %415 : vector<8x32xf32>
    %417 = vector.broadcast %396 : vector<1x32xf32> to vector<8x32xf32>
    %418 = arith.addf %416, %417 : vector<8x32xf32>
    %c0_120 = arith.constant 0 : index
    %c0_121 = arith.constant 0 : index
    %419 = vector.load %arg19[%c0_120, %c0_121] : memref<32x128xbf16, #tpu.memory_space<vmem>>, vector<32x128xbf16>
    %420 = arith.truncf %418 : vector<8x32xf32> to vector<8x32xbf16>
    %cst_122 = arith.constant dense<0.000000e+00> : vector<8x128xf32>
    %421 = tpu.matmul %420, %419, %cst_122 {dimension_numbers = #tpu.dot_dimension_numbers<[1], [0], [0], [1], [0, 0, 1, 1], [], []>} : vector<8x32xbf16>, vector<32x128xbf16>, vector<8x128xf32> -> vector<8x128xf32>
    %c0_123 = arith.constant 0 : index
    %c0_124 = arith.constant 0 : index
    %422 = vector.load %arg20[%c0_123, %c0_124] : memref<1x128xf32, #tpu.memory_space<vmem>>, vector<1x128xf32>
    %423 = vector.broadcast %422 : vector<1x128xf32> to vector<8x128xf32>
    %424 = arith.addf %421, %423 : vector<8x128xf32>
    %cst_125 = arith.constant 5.000000e-01 : f32
    %425 = vector.broadcast %cst_125 : f32 to vector<8x128xf32>
    %426 = arith.mulf %425, %424 : vector<8x128xf32>
    %cst_126 = arith.constant 4.471500e-02 : f32
    %427 = vector.broadcast %cst_126 : f32 to vector<8x128xf32>
    %428 = arith.mulf %427, %424 : vector<8x128xf32>
    %429 = arith.mulf %428, %424 : vector<8x128xf32>
    %430 = arith.mulf %429, %424 : vector<8x128xf32>
    %431 = arith.addf %424, %430 : vector<8x128xf32>
    %cst_127 = arith.constant 0.797884583 : f32
    %432 = vector.broadcast %cst_127 : f32 to vector<8x128xf32>
    %433 = arith.mulf %432, %431 : vector<8x128xf32>
    %434 = math.tanh %433 : vector<8x128xf32>
    %cst_128 = arith.constant 1.000000e+00 : f32
    %435 = vector.broadcast %cst_128 : f32 to vector<8x128xf32>
    %436 = arith.addf %435, %434 : vector<8x128xf32>
    %437 = arith.mulf %426, %436 : vector<8x128xf32>
    %c0_129 = arith.constant 0 : index
    %c0_130 = arith.constant 0 : index
    %438 = vector.load %arg21[%c0_129, %c0_130] : memref<128x32xbf16, #tpu.memory_space<vmem>>, vector<128x32xbf16>
    %439 = arith.truncf %437 : vector<8x128xf32> to vector<8x128xbf16>
    %cst_131 = arith.constant dense<0.000000e+00> : vector<8x32xf32>
    %440 = tpu.matmul %439, %438, %cst_131 {dimension_numbers = #tpu.dot_dimension_numbers<[1], [0], [0], [1], [0, 0, 1, 1], [], []>} : vector<8x128xbf16>, vector<128x32xbf16>, vector<8x32xf32> -> vector<8x32xf32>
    %441 = arith.addf %394, %440 : vector<8x32xf32>
    %c0_132 = arith.constant 0 : index
    %c0_133 = arith.constant 0 : index
    %442 = vector.load %arg22[%c0_132, %c0_133] : memref<1x32xf32, #tpu.memory_space<vmem>>, vector<1x32xf32>
    %443 = vector.broadcast %442 : vector<1x32xf32> to vector<8x32xf32>
    %444 = arith.addf %441, %443 : vector<8x32xf32>
    %445 = vector.shape_cast %444 : vector<8x32xf32> to vector<1x8x32xf32>
    %c0_134 = arith.constant 0 : index
    %c0_135 = arith.constant 0 : index
    %c0_136 = arith.constant 0 : index
    %446 = vector.load %arg23[%c0_134, %c0_135, %c0_136] : memref<1x8x32xf32, #tpu.memory_space<vmem>>, vector<1x8x32xf32>
    tpu.vector_store %arg23[%c0_134, %c0_135, %c0_136], %445 {strides = array<i32>} : memref<1x8x32xf32, #tpu.memory_space<vmem>>, vector<1x8x32xf32>,
    return
  }
  func.func @transform_0(%arg0: i32) -> (i32, i32, i32) {
    %c0_i32 = arith.constant 0 : i32
    %c0_i32_0 = arith.constant 0 : i32
    %c0_i32_1 = arith.constant 0 : i32
    return %arg0, %c0_i32, %c0_i32_0 : i32, i32, i32
  }
  func.func @transform_1(%arg0: i32) -> (i32, i32, i32) {
    %c0_i32 = arith.constant 0 : i32
    %c0_i32_0 = arith.constant 0 : i32
    %c0_i32_1 = arith.constant 0 : i32
    return %arg0, %c0_i32, %c0_i32_0 : i32, i32, i32
  }
  func.func @transform_2(%arg0: i32) -> (i32, i32) {
    %c0_i32 = arith.constant 0 : i32
    %c0_i32_0 = arith.constant 0 : i32
    %c0_i32_1 = arith.constant 0 : i32
    return %c0_i32, %c0_i32_0 : i32, i32
  }
  func.func @transform_3(%arg0: i32) -> (i32, i32) {
    %c0_i32 = arith.constant 0 : i32
    %c0_i32_0 = arith.constant 0 : i32
    %c0_i32_1 = arith.constant 0 : i32
    return %c0_i32, %c0_i32_0 : i32, i32
  }
  func.func @transform_4(%arg0: i32) -> (i32, i32) {
    %c0_i32 = arith.constant 0 : i32
    %c0_i32_0 = arith.constant 0 : i32
    %c0_i32_1 = arith.constant 0 : i32
    return %c0_i32, %c0_i32_0 : i32, i32
  }
  func.func @transform_5(%arg0: i32) -> (i32, i32) {
    %c0_i32 = arith.constant 0 : i32
    %c0_i32_0 = arith.constant 0 : i32
    %c0_i32_1 = arith.constant 0 : i32
    return %c0_i32, %c0_i32_0 : i32, i32
  }
  func.func @transform_6(%arg0: i32) -> (i32, i32) {
    %c0_i32 = arith.constant 0 : i32
    %c0_i32_0 = arith.constant 0 : i32
    %c0_i32_1 = arith.constant 0 : i32
    return %c0_i32, %c0_i32_0 : i32, i32
  }
  func.func @transform_7(%arg0: i32) -> (i32, i32) {
    %c0_i32 = arith.constant 0 : i32
    %c0_i32_0 = arith.constant 0 : i32
    %c0_i32_1 = arith.constant 0 : i32
    return %c0_i32, %c0_i32_0 : i32, i32
  }
  func.func @transform_8(%arg0: i32) -> (i32, i32) {
    %c0_i32 = arith.constant 0 : i32
    %c0_i32_0 = arith.constant 0 : i32
    %c0_i32_1 = arith.constant 0 : i32
    return %c0_i32, %c0_i32_0 : i32, i32
  }
  func.func @transform_9(%arg0: i32) -> (i32, i32) {
    %c0_i32 = arith.constant 0 : i32
    %c0_i32_0 = arith.constant 0 : i32
    %c0_i32_1 = arith.constant 0 : i32
    return %c0_i32, %c0_i32_0 : i32, i32
  }
  func.func @transform_10(%arg0: i32) -> (i32, i32) {
    %c0_i32 = arith.constant 0 : i32
    %c0_i32_0 = arith.constant 0 : i32
    %c0_i32_1 = arith.constant 0 : i32
    return %c0_i32, %c0_i32_0 : i32, i32
  }
  func.func @transform_11(%arg0: i32) -> (i32, i32) {
    %c0_i32 = arith.constant 0 : i32
    %c0_i32_0 = arith.constant 0 : i32
    %c0_i32_1 = arith.constant 0 : i32
    return %c0_i32, %c0_i32_0 : i32, i32
  }
  func.func @transform_12(%arg0: i32) -> (i32, i32) {
    %c0_i32 = arith.constant 0 : i32
    %c0_i32_0 = arith.constant 0 : i32
    %c0_i32_1 = arith.constant 0 : i32
    return %c0_i32, %c0_i32_0 : i32, i32
  }
  func.func @transform_13(%arg0: i32) -> (i32, i32) {
    %c0_i32 = arith.constant 0 : i32
    %c0_i32_0 = arith.constant 0 : i32
    %c0_i32_1 = arith.constant 0 : i32
    return %c0_i32, %c0_i32_0 : i32, i32
  }
  func.func @transform_14(%arg0: i32) -> (i32, i32) {
    %c0_i32 = arith.constant 0 : i32
    %c0_i32_0 = arith.constant 0 : i32
    %c0_i32_1 = arith.constant 0 : i32
    return %c0_i32, %c0_i32_0 : i32, i32
  }
  func.func @transform_15(%arg0: i32) -> (i32, i32) {
    %c0_i32 = arith.constant 0 : i32
    %c0_i32_0 = arith.constant 0 : i32
    %c0_i32_1 = arith.constant 0 : i32
    return %c0_i32, %c0_i32_0 : i32, i32
  }
  func.func @transform_16(%arg0: i32) -> (i32, i32) {
    %c0_i32 = arith.constant 0 : i32
    %c0_i32_0 = arith.constant 0 : i32
    %c0_i32_1 = arith.constant 0 : i32
    return %c0_i32, %c0_i32_0 : i32, i32
  }
  func.func @transform_17(%arg0: i32) -> (i32, i32) {
    %c0_i32 = arith.constant 0 : i32
    %c0_i32_0 = arith.constant 0 : i32
    %c0_i32_1 = arith.constant 0 : i32
    return %c0_i32, %c0_i32_0 : i32, i32
  }
  func.func @transform_18(%arg0: i32) -> (i32, i32) {
    %c0_i32 = arith.constant 0 : i32
    %c0_i32_0 = arith.constant 0 : i32
    %c0_i32_1 = arith.constant 0 : i32
    return %c0_i32, %c0_i32_0 : i32, i32
  }
  func.func @transform_19(%arg0: i32) -> (i32, i32) {
    %c0_i32 = arith.constant 0 : i32
    %c0_i32_0 = arith.constant 0 : i32
    %c0_i32_1 = arith.constant 0 : i32
    return %c0_i32, %c0_i32_0 : i32, i32
  }
  func.func @transform_20(%arg0: i32) -> (i32, i32) {
    %c0_i32 = arith.constant 0 : i32
    %c0_i32_0 = arith.constant 0 : i32
    %c0_i32_1 = arith.constant 0 : i32
    return %c0_i32, %c0_i32_0 : i32, i32
  }
  func.func @transform_21(%arg0: i32) -> (i32, i32) {
    %c0_i32 = arith.constant 0 : i32
    %c0_i32_0 = arith.constant 0 : i32
    %c0_i32_1 = arith.constant 0 : i32
    return %c0_i32, %c0_i32_0 : i32, i32
  }
  func.func @transform_22(%arg0: i32) -> (i32, i32, i32) {
    %c0_i32 = arith.constant 0 : i32
    %c0_i32_0 = arith.constant 0 : i32
    %c0_i32_1 = arith.constant 0 : i32
    return %arg0, %c0_i32, %c0_i32_0 : i32, i32, i32
  }
}

</mosaic_0001>

<bundles_post_ra>
// kernel: tpu_custom_call.1
= control target key start
LH: loop header
LB: loop body
LE: loop exit
PB: predicated region body
PF: predicated region fallthrough
CT: control target
= control target key end

     0   :  { %s5615_s0 = inlined_call_operand.vmem [shape: f32[2,8,32], index: 0, kind: input, shape index: {}]   ;;  %s5616_s1 = inlined_call_operand.vmem [shape: f32[2,8,32], index: 1, kind: input, shape index: {}]   ;;  %s5617_s2 = inlined_call_operand.hbm [shape: f32[1,32], index: 2, kind: input, shape index: {}]   ;;  %s5618_s3 = inlined_call_operand.hbm [shape: f32[1,32], index: 3, kind: input, shape index: {}]   ;;  %s5619_s4 = inlined_call_operand.vmem [shape: bf16[32,96], index: 4, kind: input, shape index: {}]   ;;  %s5620_s5 = inlined_call_operand.hbm [shape: f32[1,96], index: 5, kind: input, shape index: {}]   ;;  %s5621_s6 = inlined_call_operand.vmem [shape: bf16[32,32], index: 6, kind: input, shape index: {}]   ;;  %s5622_s7 = inlined_call_operand.hbm [shape: f32[1,32], index: 7, kind: input, shape index: {}]   ;;  %s5623_s8 = inlined_call_operand.hbm [shape: f32[1,32], index: 8, kind: input, shape index: {}]   ;;  %s5624_s9 = inlined_call_operand.hbm [shape: f32[1,32], index: 9, kind: input, shape index: {}]   ;;  %s5625_s10 = inlined_call_operand.vmem [shape: bf16[32,32], index: 10, kind: input, shape index: {}]   ;;  %s5626_s11 = inlined_call_operand.hbm [shape: f32[1,32], index: 11, kind: input, shape index: {}]   ;;  %s5627_s12 = inlined_call_operand.vmem [shape: bf16[32,64], index: 12, kind: input, shape index: {}]   ;;  %s5628_s13 = inlined_call_operand.hbm [shape: f32[1,64], index: 13, kind: input, shape index: {}]   ;;  %s5629_s14 = inlined_call_operand.vmem [shape: bf16[32,32], index: 14, kind: input, shape index: {}]   ;;  %s5630_s15 = inlined_call_operand.hbm [shape: f32[1,32], index: 15, kind: input, shape index: {}]   ;;  %s5631_s16 = inlined_call_operand.hbm [shape: f32[1,32], index: 16, kind: input, shape index: {}]   ;;  %s5632_s17 = inlined_call_operand.hbm [shape: f32[1,32], index: 17, kind: input, shape index: {}]   ;;  %s5633_s18 = inlined_call_operand.vmem [shape: bf16[32,128], index: 18, kind: input, shape index: {}]   ;;  %s5634_s19 = inlined_call_operand.vmem [shape: f32[1,128], index: 19, kind: input, shape index: {}]   ;;  %s5635_s20 = inlined_call_operand.vmem [shape: bf16[128,32], index: 20, kind: input, shape index: {}]   ;;  %s5636_s21 = inlined_call_operand.vmem [shape: f32[1,32], index: 21, kind: input, shape index: {}]   ;;  %s5637_s22 = inlined_call_operand.hbm [shape: f32[2,8,32], index: 22, kind: output, shape index: {}]  }
   0x1   :  { %5678 = sst [smem:[#allocation36_spill]] %s5615_s0 }
   0x2   :  { %5679 = sst [smem:[#allocation37_spill]] %s5616_s1 }
   0x3   :  { %5680 = sst [smem:[#allocation38_spill]] %s5617_s2 }
   0x4   :  { %5681 = sst [smem:[#allocation39_spill]] %s5618_s3 }
   0x5   :  { %5682 = sst [smem:[#allocation40_spill]] %s5619_s4 }
   0x6   :  { %5683 = sst [smem:[#allocation41_spill]] %s5620_s5 }
   0x7   :  { %5684 = sst [smem:[#allocation42_spill]] %s5621_s6 }
   0x8   :  { %5685 = sst [smem:[#allocation43_spill]] %s5622_s7 }
   0x9   :  { %5686 = sst [smem:[#allocation44_spill]] %s5624_s9 }
   0xa   :  { %5687 = sst [smem:[#allocation45_spill]] %s5636_s21 }
   0xb   :  { %5688 = sst [smem:[#allocation46_spill]] %s5637_s22 }
   0xc   :  { %27 = vsyncpa [#allocation3], 0 }
   0xd   :  { %28 = vsyncpa [#allocation6], 0 }
   0xe   :  { %29 = vsyncpa [#allocation9], 0 }
   0xf   :  { %30 = vsyncpa [#allocation12], 0 }
  0x10   :  { %31 = vsyncpa [#allocation15], 0 }
  0x11   :  { %32 = vsyncpa [#allocation18], 0 }
  0x12   :  { %33 = vsyncpa [#allocation4], 0 }
  0x13   :  { %35 = vsyncpa [#allocation4 + $0x1], 0  ;;  %s4770_s3 = smov 0   ;;  %s4772_s28 = smov 0  }
  0x14   :  { %s4774_s29 = smov 0   ;;  %s4776_s30 = smov 0  }
  0x15 LB: > { %5689 = sst [smem:[#allocation28_spill]] %s4597_s3  ;;  %s4791_s4 = sadd.s32 4294967295, %s4609_s30   ;;  %s4609_s30 = sphi %s4776_s30, %s5752_s30   ;;  %s4605_s29 = sphi %s4774_s29, %s5755_s29   ;;  %s4601_s28 = sphi %s4772_s28, %s5754_s28   ;;  %s4597_s3 = sphi %s4770_s3, %s5753_s3  }
  0x16   : > { %5690 = sst [smem:[#allocation29_spill]] %s4601_s28  ;;  %s3486_s0 = sadd.s32 4294967294, %s4609_s30  }
  0x17   : > { %5691 = sst [smem:[#allocation30_spill]] %s4605_s29  ;;  %s4795_s23 = sadd.s32 1, %s4609_s30  }
  0x18   : > { %5692 = sst [smem:[#allocation31_spill]] %s4609_s30  ;;  %s520_s1 = sadd.s32 1, %s4605_s29 }
  0x19   : > { %5693 = sst [smem:[#allocation32_spill]] %s4795_s23  ;;  %s517_s5 = ssub.s32 %s4609_s30, %s4795_s23 }
  0x1a   : > { %p530_p0 = scmp.ne.s32.totalorder %s4605_s29, %s4601_s28  ;;  %p518_p1 = scmp.eq.s32.totalorder %s517_s5, 0 }
  0x1b   : > { %p531_p2 = scmp.eq.s32.totalorder %s4791_s4, 1  ;;  %p536_p3 = scmp.ne.s32.totalorder %s4601_s28, %s4597_s3 }
  0x1c   : > { %p537_p4 = scmp.eq.s32.totalorder %s3486_s0, 1  ;;  %p3487_p7 = scmp.ge.s32.totalorder %s4609_s30, 1 }
  0x1d   : > { %s4806_s24 = scalar_select %p518_p1, %s4605_s29, %s520_s1  }
  0x1e   : > { %p4808_p5 = por %p531_p2, %p530_p0  ;;  %p4812_p6 = por %p537_p4, %p536_p3 }
  0x1f   : > { %5694 = sst [smem:[#allocation33_spill]] %s4806_s24  ;;  %p544_p8 = scmp.lt.s32.totalorder %s4609_s30, 3 }
  0x20   : > { %s5695_s6 = scalar_select %p4808_p5, 1, 0 }
  0x21   : > { %s5697_s25 = scalar_select %p4812_p6, 1, 0 }
  0x22   : > { %5696 = sst [smem:[#allocation34_spill]] %s5695_s6  ;;  %p5652_p9 = scmp.eq.s32.totalorder %s4791_s4, 0 }
  0x23   : > { %5698 = sst [smem:[#allocation35_spill]] %s5697_s25  ;;  %p4819_p10 = pnand %p3487_p7, %p544_p8 }
  0x24   : > { %s4611_s2 = smov [#allocation5]   ;;  %s4612_s0 = smov [#allocation8]  }
  0x25   : > { %s5699_s26 = scalar_select %p4819_p10, 1, 0 }
  0x26   : > { %s568_s27 = sshll.u32 %s4611_s2, 4  ;;  %p3987_p11 = pneg %p4819_p10  ;;  %s569_s27 = int_to_ptr.vmem [resolvable:$true] %s568_s27 }
  0x27   : > { %s596_s1 = sshll.u32 %s4612_s0, 4  ;;  %s4613_s24 = smov [#allocation11]   ;;  %s4831_s1 = int_to_ptr.vmem [resolvable:$true] %s596_s1 }
  0x28   : > { %p4827_p12 = pnand %p5652_p9, %p3987_p11  ;;  %s618_s29 = sshll.u32 %s4613_s24, 4  ;;  %s4833_s29 = int_to_ptr.vmem [resolvable:$true] %s618_s29 }
  0x29   : > { %s5701_s2 = sld [smem:[#allocation39_spill]] }
  0x2a   : > { %p4843_p0 = pneg %p4827_p12 }
  0x2f   : > { %s4215_s3 = scalar_lea.hbm %s5701_s2, 16 }
  0x30   : > { %p4216_p13 = scmp.ne.s32.totalorder %s5701_s2, %s4215_s3  ;;  %p4222_p3 = scmp.lt.u32.totalorder %s4215_s3, %s5701_s2 }
  0x32   : > { %p4218_p1 = pnand %p4843_p0, %p4216_p13 }
  0x34   : > { %p4219_p2 = pneg %p4218_p1 }
  0x36   : > { %p4224_p4 = pnand %p4222_p3, %p4219_p2 }
  0x38   : > { %4227 = shalt.err (!%p4224_p4)
}
  0x39   : > { %s4228_s23 = scalar_lea.vmem %s569_s27, 16  ;;  %s4235_s22 = scalar_lea.vmem %s569_s27, 32 }
  0x3a   : > { %p4229_p7 = scmp.ne.s32.totalorder %s569_s27, %s4228_s23  ;;  %p4236_p9 = scmp.lt.s32.totalorder %s569_s27, %s569_s27 }
  0x3b   : > { %p4237_p6 = scmp.lt.s32.totalorder %s4235_s22, %s4228_s23 }
  0x3c   : > { %p4231_p8 = pnand %p4229_p7, %p4843_p0 }
  0x3d   : > { %p4238_p5 = por %p4237_p6, %p4236_p9 }
  0x3e   : > { %p4232_p11 = pneg %p4231_p8 }
  0x40   : > { %p4239_p10 = pnand %p4238_p5, %p4232_p11 }
  0x42   : > { %4242 = shalt.err (!%p4239_p10)
}
  0x43   : > { %3993 = dma.hbm_to_vmem [thread:$0]  (!%p4827_p12), %s5701_s2, 16, %s569_s27, [#allocation6]  }
  0x44   : > { %s5703_s7 = sld [smem:[#allocation43_spill]] }
  0x4a   : > { %s4243_s24 = scalar_lea.hbm %s5703_s7, 16 }
  0x4b   : > { %p4244_p13 = scmp.ne.s32.totalorder %s5703_s7, %s4243_s24  ;;  %p4250_p5 = scmp.lt.u32.totalorder %s4243_s24, %s5703_s7 }
  0x4d   : > { %p4246_p1 = pnand %p4244_p13, %p4843_p0 }
  0x4f   : > { %p4247_p6 = pneg %p4246_p1 }
  0x51   : > { %p4252_p9 = pnand %p4250_p5, %p4247_p6 }
  0x53   : > { %4255 = shalt.err (!%p4252_p9)
}
  0x54   : > { %s4256_s27 = scalar_lea.vmem %s4831_s1, 16  ;;  %s4263_s21 = scalar_lea.vmem %s4831_s1, 32 }
  0x55   : > { %p4257_p10 = scmp.ne.s32.totalorder %s4831_s1, %s4256_s27  ;;  %p4264_p4 = scmp.lt.s32.totalorder %s4831_s1, %s4831_s1 }
  0x56   : > { %p4265_p7 = scmp.lt.s32.totalorder %s4263_s21, %s4256_s27 }
  0x57   : > { %p4259_p2 = pnand %p4257_p10, %p4843_p0 }
  0x58   : > { %p4266_p8 = por %p4265_p7, %p4264_p4 }
  0x59   : > { %p4260_p3 = pneg %p4259_p2 }
  0x5b   : > { %p4267_p11 = pnand %p4266_p8, %p4260_p3 }
  0x5d   : > { %4270 = shalt.err (!%p4267_p11)
}
  0x5e   : > { %3999 = dma.hbm_to_vmem [thread:$0]  (!%p4827_p12), %s5703_s7, 16, %s4831_s1, [#allocation9]  }
  0x5f   : > { %s5704_s9 = sld [smem:[#allocation44_spill]] }
  0x65   : > { %s4271_s6 = scalar_lea.hbm %s5704_s9, 16 }
  0x66   : > { %p4272_p13 = scmp.ne.s32.totalorder %s5704_s9, %s4271_s6  ;;  %p4278_p5 = scmp.lt.u32.totalorder %s4271_s6, %s5704_s9 }
  0x68   : > { %p4274_p1 = pnand %p4272_p13, %p4843_p0 }
  0x6a   : > { %p4275_p6 = pneg %p4274_p1 }
  0x6c   : > { %p4280_p9 = pnand %p4278_p5, %p4275_p6 }
  0x6e   : > { %4283 = shalt.err (!%p4280_p9)
}
  0x6f   : > { %s4284_s1 = scalar_lea.vmem %s4833_s29, 16  ;;  %s4291_s21 = scalar_lea.vmem %s4833_s29, 32 }
  0x70   : > { %p4285_p10 = scmp.ne.s32.totalorder %s4833_s29, %s4284_s1  ;;  %p4292_p4 = scmp.lt.s32.totalorder %s4833_s29, %s4833_s29 }
  0x71   : > { %p4293_p7 = scmp.lt.s32.totalorder %s4291_s21, %s4284_s1 }
  0x72   : > { %p4287_p2 = pnand %p4285_p10, %p4843_p0 }
  0x73   : > { %p4294_p8 = por %p4293_p7, %p4292_p4 }
  0x74   : > { %p4288_p3 = pneg %p4287_p2 }
  0x76   : > { %p4295_p11 = pnand %p4294_p8, %p4288_p3 }
  0x78   : > { %4298 = shalt.err (!%p4295_p11)
}
  0x79   : > { %4005 = dma.hbm_to_vmem [thread:$0]  (!%p4827_p12), %s5704_s9, 16, %s4833_s29, [#allocation12]  }
  0x7a   : > { %s4614_s25 = smov [#allocation14]   ;;  %s4615_s6 = smov [#allocation17]  }
  0x7b   : > { %s646_s3 = sshll.u32 %s4614_s25, 4  ;;  %s671_s24 = sshll.u32 %s4615_s6, 4  ;;  %s647_s3 = int_to_ptr.vmem [resolvable:$true] %s646_s3  ;;  %s672_s24 = int_to_ptr.vmem [resolvable:$true] %s671_s24 }
  0x7c   : > { %s4299_s27 = scalar_lea.hbm %s5628_s13, 16 }
  0x7d   : > { %p4300_p13 = scmp.ne.s32.totalorder %s5628_s13, %s4299_s27  ;;  %p4306_p5 = scmp.lt.u32.totalorder %s4299_s27, %s5628_s13 }
  0x7f   : > { %p4302_p1 = pnand %p4300_p13, %p4843_p0 }
  0x81   : > { %p4303_p6 = pneg %p4302_p1 }
  0x83   : > { %p4308_p9 = pnand %p4306_p5, %p4303_p6 }
  0x85   : > { %4311 = shalt.err (!%p4308_p9)
}
  0x86   : > { %s4312_s29 = scalar_lea.vmem %s647_s3, 16  ;;  %s4319_s30 = scalar_lea.vmem %s647_s3, 32 }
  0x87   : > { %p4313_p10 = scmp.ne.s32.totalorder %s647_s3, %s4312_s29  ;;  %p4320_p4 = scmp.lt.s32.totalorder %s647_s3, %s647_s3 }
  0x88   : > { %p4321_p7 = scmp.lt.s32.totalorder %s4319_s30, %s4312_s29 }
  0x89   : > { %p4315_p2 = pnand %p4313_p10, %p4843_p0 }
  0x8a   : > { %p4322_p8 = por %p4321_p7, %p4320_p4 }
  0x8b   : > { %p4316_p3 = pneg %p4315_p2 }
  0x8d   : > { %p4323_p11 = pnand %p4322_p8, %p4316_p3 }
  0x8f   : > { %4326 = shalt.err (!%p4323_p11)
}
  0x90   : > { %4011 = dma.hbm_to_vmem [thread:$0]  (!%p4827_p12), %s5628_s13, 16, %s647_s3, [#allocation15]  }
  0x91   : > { %s4327_s22 = scalar_lea.hbm %s5631_s16, 16 }
  0x92   : > { %p4328_p13 = scmp.ne.s32.totalorder %s5631_s16, %s4327_s22  ;;  %p4334_p5 = scmp.lt.u32.totalorder %s4327_s22, %s5631_s16 }
  0x94   : > { %p4330_p1 = pnand %p4328_p13, %p4843_p0 }
  0x96   : > { %p4331_p6 = pneg %p4330_p1 }
  0x98   : > { %p4336_p9 = pnand %p4334_p5, %p4331_p6 }
  0x9a   : > { %4339 = shalt.err (!%p4336_p9)
}
  0x9b   : > { %s4340_s29 = scalar_lea.vmem %s672_s24, 16  ;;  %s4347_s3 = scalar_lea.vmem %s672_s24, 32 }
  0x9c   : > { %p4341_p10 = scmp.ne.s32.totalorder %s672_s24, %s4340_s29  ;;  %p4348_p4 = scmp.lt.s32.totalorder %s672_s24, %s672_s24 }
  0x9d   : > { %p4349_p7 = scmp.lt.s32.totalorder %s4347_s3, %s4340_s29 }
  0x9e   : > { %p4343_p2 = pnand %p4341_p10, %p4843_p0 }
  0x9f   : > { %p4350_p8 = por %p4349_p7, %p4348_p4 }
  0xa0   : > { %p4344_p3 = pneg %p4343_p2 }
  0xa2   : > { %p4351_p11 = pnand %p4350_p8, %p4344_p3 }
  0xa4   : > { %4354 = shalt.err (!%p4351_p11)
}
  0xa5   : > { %4017 = dma.hbm_to_vmem [thread:$0]  (!%p4827_p12), %s5631_s16, 16, %s672_s24, [#allocation18]  }
  0xa6   : > { %s4616_s6 = smov [#allocation2]   ;;  %s4617_s23 = smov [#allocation7]  }
  0xa7   : > { %s557_s2 = sshll.u32 %s4616_s6, 4  ;;  %s582_s22 = sshll.u32 %s4617_s23, 4  ;;  %s558_s2 = int_to_ptr.vmem [resolvable:$true] %s557_s2  ;;  %s583_s22 = int_to_ptr.vmem [resolvable:$true] %s582_s22 }
  0xa8   : > { %s5705_s21 = sld [smem:[#allocation38_spill]] }
  0xae   : > { %s4355_s28 = scalar_lea.hbm %s5705_s21, 16 }
  0xaf   : > { %p4356_p13 = scmp.ne.s32.totalorder %s5705_s21, %s4355_s28  ;;  %p4362_p5 = scmp.lt.u32.totalorder %s4355_s28, %s5705_s21 }
  0xb1   : > { %p4358_p1 = pnand %p4356_p13, %p4843_p0 }
  0xb3   : > { %p4359_p6 = pneg %p4358_p1 }
  0xb5   : > { %p4364_p9 = pnand %p4362_p5, %p4359_p6 }
  0xb7   : > { %4367 = shalt.err (!%p4364_p9)
}
  0xb8   : > { %s4368_s24 = scalar_lea.vmem %s558_s2, 16  ;;  %s4375_s25 = scalar_lea.vmem %s558_s2, 32 }
  0xb9   : > { %p4369_p10 = scmp.ne.s32.totalorder %s558_s2, %s4368_s24  ;;  %p4376_p4 = scmp.lt.s32.totalorder %s558_s2, %s558_s2 }
  0xba   : > { %p4377_p7 = scmp.lt.s32.totalorder %s4375_s25, %s4368_s24 }
  0xbb   : > { %p4371_p2 = pnand %p4369_p10, %p4843_p0 }
  0xbc   : > { %p4378_p8 = por %p4377_p7, %p4376_p4 }
  0xbd   : > { %p4372_p3 = pneg %p4371_p2 }
  0xbf   : > { %p4379_p11 = pnand %p4378_p8, %p4372_p3 }
  0xc1   : > { %4382 = shalt.err (!%p4379_p11)
}
  0xc2   : > { %3990 = dma.hbm_to_vmem [thread:$0]  (!%p4827_p12), %s5705_s21, 16, %s558_s2, [#allocation3]  }
  0xc3   : > { %s5706_s1 = sld [smem:[#allocation41_spill]] }
  0xc9   : > { %s4383_s28 = scalar_lea.hbm %s5706_s1, 16 }
  0xca   : > { %p4384_p13 = scmp.ne.s32.totalorder %s5706_s1, %s4383_s28  ;;  %p4390_p5 = scmp.lt.u32.totalorder %s4383_s28, %s5706_s1 }
  0xcc   : > { %p4386_p1 = pnand %p4384_p13, %p4843_p0 }
  0xce   : > { %p4387_p6 = pneg %p4386_p1 }
  0xd0   : > { %p4392_p9 = pnand %p4390_p5, %p4387_p6 }
  0xd2   : > { %4395 = shalt.err (!%p4392_p9)
}
  0xd3   : > { %s4396_s25 = scalar_lea.vmem %s583_s22, 16  ;;  %s4403_s2 = scalar_lea.vmem %s583_s22, 32 }
  0xd4   : > { %p4397_p10 = scmp.ne.s32.totalorder %s583_s22, %s4396_s25  ;;  %p4404_p4 = scmp.lt.s32.totalorder %s583_s22, %s583_s22 }
  0xd5   : > { %p4405_p7 = scmp.lt.s32.totalorder %s4403_s2, %s4396_s25 }
  0xd6   : > { %p4399_p2 = pnand %p4397_p10, %p4843_p0 }
  0xd7   : > { %p4406_p8 = por %p4405_p7, %p4404_p4 }
  0xd8   : > { %p4400_p3 = pneg %p4399_p2 }
  0xda   : > { %p4407_p11 = pnand %p4406_p8, %p4400_p3 }
  0xdc   : > { %4410 = shalt.err (!%p4407_p11)
}
  0xdd   : > { %3996 = dma.hbm_to_vmem [thread:$0]  (!%p4827_p12), %s5706_s1, 16, %s583_s22, [#allocation6]  }
  0xde   : > { %s4618_s7 = smov [#allocation10]   ;;  %s4619_s28 = smov [#allocation13]  }
  0xdf   : > { %s607_s27 = sshll.u32 %s4618_s7, 4  ;;  %s632_s29 = sshll.u32 %s4619_s28, 4  ;;  %s608_s27 = int_to_ptr.vmem [resolvable:$true] %s607_s27  ;;  %s633_s29 = int_to_ptr.vmem [resolvable:$true] %s632_s29 }
  0xe0   : > { %s4411_s24 = scalar_lea.hbm %s5623_s8, 16 }
  0xe1   : > { %p4412_p13 = scmp.ne.s32.totalorder %s5623_s8, %s4411_s24  ;;  %p4418_p5 = scmp.lt.u32.totalorder %s4411_s24, %s5623_s8 }
  0xe3   : > { %p4414_p1 = pnand %p4412_p13, %p4843_p0 }
  0xe5   : > { %p4415_p6 = pneg %p4414_p1 }
  0xe7   : > { %p4420_p9 = pnand %p4418_p5, %p4415_p6 }
  0xe9   : > { %4423 = shalt.err (!%p4420_p9)
}
  0xea   : > { %s4424_s22 = scalar_lea.vmem %s608_s27, 16  ;;  %s4431_s23 = scalar_lea.vmem %s608_s27, 32 }
  0xeb   : > { %p4425_p10 = scmp.ne.s32.totalorder %s608_s27, %s4424_s22  ;;  %p4432_p4 = scmp.lt.s32.totalorder %s608_s27, %s608_s27 }
  0xec   : > { %p4433_p7 = scmp.lt.s32.totalorder %s4431_s23, %s4424_s22 }
  0xed   : > { %p4427_p2 = pnand %p4425_p10, %p4843_p0 }
  0xee   : > { %p4434_p8 = por %p4433_p7, %p4432_p4 }
  0xef   : > { %p4428_p3 = pneg %p4427_p2 }
  0xf1   : > { %p4435_p11 = pnand %p4434_p8, %p4428_p3 }
  0xf3   : > { %4438 = shalt.err (!%p4435_p11)
}
  0xf4   : > { %4002 = dma.hbm_to_vmem [thread:$0]  (!%p4827_p12), %s5623_s8, 16, %s608_s27, [#allocation9]  }
  0xf5   : > { %s4439_s30 = scalar_lea.hbm %s5626_s11, 16 }
  0xf6   : > { %p4440_p13 = scmp.ne.s32.totalorder %s5626_s11, %s4439_s30  ;;  %p4446_p5 = scmp.lt.u32.totalorder %s4439_s30, %s5626_s11 }
  0xf8   : > { %p4442_p1 = pnand %p4440_p13, %p4843_p0 }
  0xfa   : > { %p4443_p6 = pneg %p4442_p1 }
  0xfc   : > { %p4448_p9 = pnand %p4446_p5, %p4443_p6 }
  0xfe   : > { %4451 = shalt.err (!%p4448_p9)
}
  0xff   : > { %s4452_s22 = scalar_lea.vmem %s633_s29, 16  ;;  %s4459_s27 = scalar_lea.vmem %s633_s29, 32 }
 0x100   : > { %p4453_p10 = scmp.ne.s32.totalorder %s633_s29, %s4452_s22  ;;  %p4460_p4 = scmp.lt.s32.totalorder %s633_s29, %s633_s29 }
 0x101   : > { %p4461_p7 = scmp.lt.s32.totalorder %s4459_s27, %s4452_s22 }
 0x102   : > { %p4455_p2 = pnand %p4453_p10, %p4843_p0 }
 0x103   : > { %p4462_p8 = por %p4461_p7, %p4460_p4 }
 0x104   : > { %p4456_p3 = pneg %p4455_p2 }
 0x106   : > { %p4463_p11 = pnand %p4462_p8, %p4456_p3 }
 0x108   : > { %4466 = shalt.err (!%p4463_p11)
}
 0x109   : > { %4008 = dma.hbm_to_vmem [thread:$0]  (!%p4827_p12), %s5626_s11, 16, %s633_s29, [#allocation12]  }
 0x10a   : > { %s4620_s28 = smov [#allocation16]   ;;  %s4621_s3 = smov [#allocation19]  }
 0x10b   : > { %s660_s9 = sshll.u32 %s4620_s28, 4  ;;  %s682_s30 = sshll.u32 %s4621_s3, 4  ;;  %s661_s9 = int_to_ptr.vmem [resolvable:$true] %s660_s9  ;;  %s683_s30 = int_to_ptr.vmem [resolvable:$true] %s682_s30 }
 0x10c   : > { %s4467_s2 = scalar_lea.hbm %s5630_s15, 16 }
 0x10d   : > { %p4468_p13 = scmp.ne.s32.totalorder %s5630_s15, %s4467_s2  ;;  %p4474_p5 = scmp.lt.u32.totalorder %s4467_s2, %s5630_s15 }
 0x10f   : > { %p4470_p1 = pnand %p4468_p13, %p4843_p0 }
 0x111   : > { %p4471_p6 = pneg %p4470_p1 }
 0x113   : > { %p4476_p9 = pnand %p4474_p5, %p4471_p6 }
 0x115   : > { %4479 = shalt.err (!%p4476_p9)
}
 0x116   : > { %s4480_s29 = scalar_lea.vmem %s661_s9, 16  ;;  %s4487_s7 = scalar_lea.vmem %s661_s9, 32 }
 0x117   : > { %p4481_p10 = scmp.ne.s32.totalorder %s661_s9, %s4480_s29  ;;  %p4488_p4 = scmp.lt.s32.totalorder %s661_s9, %s661_s9 }
 0x118   : > { %p4489_p7 = scmp.lt.s32.totalorder %s4487_s7, %s4480_s29 }
 0x119   : > { %p4483_p2 = pnand %p4481_p10, %p4843_p0 }
 0x11a   : > { %p4490_p8 = por %p4489_p7, %p4488_p4 }
 0x11b   : > { %p4484_p3 = pneg %p4483_p2 }
 0x11d   : > { %p4491_p11 = pnand %p4490_p8, %p4484_p3 }
 0x11f   : > { %4494 = shalt.err (!%p4491_p11)
}
 0x120   : > { %4014 = dma.hbm_to_vmem [thread:$0]  (!%p4827_p12), %s5630_s15, 16, %s661_s9, [#allocation15]  }
 0x121   : > { %s4495_s2 = scalar_lea.hbm %s5632_s17, 16 }
 0x122   : > { %p4496_p13 = scmp.ne.s32.totalorder %s5632_s17, %s4495_s2  ;;  %p4502_p5 = scmp.lt.u32.totalorder %s4495_s2, %s5632_s17 }
 0x124   : > { %p4498_p1 = pnand %p4496_p13, %p4843_p0 }
 0x126   : > { %p4499_p6 = pneg %p4498_p1 }
 0x128   : > { %p4504_p9 = pnand %p4502_p5, %p4499_p6 }
 0x12a   : > { %4507 = shalt.err (!%p4504_p9)
}
 0x12b   : > { %s4508_s29 = scalar_lea.vmem %s683_s30, 16  ;;  %s4515_s9 = scalar_lea.vmem %s683_s30, 32 }
 0x12c   : > { %p4509_p10 = scmp.ne.s32.totalorder %s683_s30, %s4508_s29  ;;  %p4516_p4 = scmp.lt.s32.totalorder %s683_s30, %s683_s30 }
 0x12d   : > { %p4517_p7 = scmp.lt.s32.totalorder %s4515_s9, %s4508_s29 }
 0x12e   : > { %p4511_p2 = pnand %p4509_p10, %p4843_p0 }
 0x12f   : > { %p4518_p8 = por %p4517_p7, %p4516_p4 }
 0x130   : > { %p4512_p3 = pneg %p4511_p2 }
 0x132   : > { %p4519_p11 = pnand %p4518_p8, %p4512_p3 }
 0x134   : > { %4522 = shalt.err (!%p4519_p11)
}
 0x135   : > { %4020 = dma.hbm_to_vmem [thread:$0]  (!%p4827_p12), %s5632_s17, 16, %s683_s30, [#allocation18]  }
 0x136   : > { %p5707_p13 = scmp.ne.s32.totalorder %s5699_s26, 0 }
 0x137   : > { %p5708_p1 = scmp.eq.s32.totalorder (!%p5707_p13), %s4791_s4, 0 }
 0x138   : > { %721 = sbr.rel (%p5707_p13) target bundleno = 5313 (0x14c1), region = 108 }
 0x13f   : > { %4568 = dma.done.wait (%p5708_p1), [#allocation3], 16   ;;  %p5709_p0 = pmov %p5708_p1 }
 0x141   : > { %4570 = vsyncadd (%p5709_p0), [#allocation3], 4294967280  ;;  %p5710_p6 = pmov %p5709_p0 }
 0x142   : > { %p5711_p5 = pmov %p5709_p0 }
 0x143   : > { %4572 = dma.done.wait (%p5710_p6), [#allocation6], 32  }
 0x144   : > { %4574 = vsyncadd (%p5711_p5), [#allocation6], 4294967264  ;;  %p5712_p9 = pmov %p5709_p0 }
 0x145   : > { %p5713_p12 = pmov %p5709_p0 }
 0x146   : > { %4576 = dma.done.wait (%p5712_p9), [#allocation9], 32  }
 0x147   : > { %4578 = vsyncadd (%p5713_p12), [#allocation9], 4294967264  ;;  %p5714_p10 = pmov %p5709_p0 }
 0x148   : > { %p5715_p2 = pmov %p5709_p0 }
 0x149   : > { %4580 = dma.done.wait (%p5714_p10), [#allocation12], 32  }
 0x14a   : > { %4582 = vsyncadd (%p5715_p2), [#allocation12], 4294967264  ;;  %p5716_p3 = pmov %p5709_p0 }
 0x14b   : > { %p5717_p4 = pmov %p5709_p0 }
 0x14c   : > { %4584 = dma.done.wait (%p5716_p3), [#allocation15], 32  }
 0x14d   : > { %4586 = vsyncadd (%p5717_p4), [#allocation15], 4294967264  ;;  %p5718_p7 = pmov %p5709_p0 }
 0x14e   : > { %p5719_p8 = pmov %p5709_p0 }
 0x14f   : > { %4588 = dma.done.wait (%p5718_p7), [#allocation18], 32  }
 0x150   : > { %4590 = vsyncadd (%p5719_p8), [#allocation18], 4294967264  ;;  %p826_p11 = scmp.lt.s32.totalorder %s4791_s4, 1  ;;  %s5720_s3 = sld [smem:[#allocation36_spill]]  ;;  %vm839_vm0 = vcmask 261120   ;;  %v4622_v8 = vmov 0.0  }
 0x151   : > { %s5721_s6 = sld [smem:[#allocation40_spill]]  ;;  %3681 = vmatprep.subr.bf16.mxu1 %v4622_v8  ;;  %vm4623_vm1 = vmmov 0   ;;  %3707 = vmatprep.subr.bf16.mxu0 %v4622_v8  ;;  %v3515_v14 = vld [vmem:[#allocation2] ss:$0 sm:$0xff]  ;;  %v3516_v16 = vld [vmem:[#allocation5] ss:$0 sm:$0xff] }
 0x152   : > { %s5079_s26 = scalar_select %p826_p11, %s4791_s4, 1  ;;  %3685 = vmatprep.mubr.msk.bf16.mxu1 %vm4623_vm1, %v4622_v8  ;;  %3709 = vmatprep.mubr.msk.bf16.mxu0 %vm4623_vm1, %v4622_v8  ;;  %v3517_v20 = vld [vmem:[#allocation7] ss:$0 sm:$0xff]  ;;  %vm939_vm2 = vcmask 31744   ;;  %vm1004_vm3 = vcmask 1043456   ;;  %vm986_vm4 = vcmask 64512  }
 0x153   : > { %s4624_s23 = smov 64   ;;  %s5658_s29 = smov 96   ;;  %vm1848_vm5 = vcmask 97280   ;;  %vm1850_vm6 = vcmask 130048   ;;  %vm1852_vm7 = vcmask 162816   ;;  %vm1854_vm8 = vcmask 195584  }
 0x154   : > { %s3513_s5 = sshll.u32 %s5079_s26, 3  ;;  %s5657_s9 = smov 88   ;;  %vm1856_vm9 = vcmask 228352  }
 0x155   : > { %s4627_s7 = smov 112   ;;  %s5676_s28 = smov 108  }
 0x156   : > { %s829_s24 = scalar_lea.vmem %s5720_s3, %s3513_s5  ;;  %s5666_s0 = smov 104  }
 0x157   : > { %v5087_v0 = vld [vmem:[%s829_s24] sm:$0xff]  ;;  %v4124_v9 = vld [vmem:[%s5721_s6 + $0x8] sm:$0xff]   ;;  %s5670_s30 = smov 100   ;;  %s5668_s3 = smov 92  }
 0x158   : > { %v840_v1 = vsel %vm839_vm0, %v5087_v0, 0.0  ;;  %v4123_v7 = vld [vmem:[%s5721_s6] sm:$0xff]   ;;  %s4632_s24 = smov 124   ;;  %s4633_s25 = smov 120  }
 0x159   : > { %841 = vadd.xlane.f32.xlu0 %v840_v1  ;;  %3682 = vmatpush3.bf16.msra.mxu1 %v4123_v7  ;;  %s5662_s2 = smov 84   ;;  %s4635_s22 = smov 116  }
 0x15a   : > { %3683 = vmatprep.subr.bf16.mxu1 %v4622_v8  ;;  %s5664_s27 = smov 80   ;;  %s5735_s26 = smov 68  }
 0x15d   : > { %3684 = vmatpush3.bf16.msra.mxu1 %v4124_v9 }
 0x15e   : > { %3689 = vmatprep.subr.bf16.mxu1 %v4622_v8 }
 0x1e6   : > { %v842_v2 = vpop.xlane.xlu0 %841 }
 0x1e7   : > { %v844_v3 = vmul.f32 0.03125, %v842_v2 }
 0x1e9   : > { %v845_v4 = vsub.f32 %v5087_v0, %v844_v3 }
 0x1eb   : > { %v846_v5 = vmul.f32 %v845_v4, %v845_v4 }
 0x1ed   : > { %v847_v6 = vsel %vm839_vm0, %v846_v5, 0.0 }
 0x1ee   : > { %848 = vadd.xlane.f32.xlu0 %v847_v6 }
 0x27b   : > { %v849_v10 = vpop.xlane.xlu0 %848 }
 0x27c   : > { %v850_v11 = vmul.f32 0.03125, %v849_v10 }
 0x27e   : > { %v851_v12 = vadd.f32 1e-05, %v850_v11 }
 0x280   : > { %4143 = vrsqrt.f32 %v851_v12 }
 0x28a   : > { %v4144_v13 = vpop.eup %4143 }
 0x28b   : > { %v853_v15 = vmul.f32 %v4144_v13, %v845_v4 }
 0x28d   : > { %v860_v17 = vmul.f32 %v3515_v14, %v853_v15 }
 0x28f   : > { %v867_v18 = vadd.f32 %v3516_v16, %v860_v17 }
 0x291   : > { %v872_v19 = vpack.c.bf16 %v867_v18, %v867_v18 }
 0x293   : > { %3686 = vmatmul.mubr.msk.bf16.vlgmr.msra.gmra.mrb[0].mxu1 %vm839_vm0, %v872_v19 }
 0x294   : > { %3691 = vmatprep.mubr.msk.bf16.mxu1 %vm4623_vm1, %v4622_v8 }
 0x366   : > { %v929_v21 = vpop.f32.mrb[0].mxu1 }
 0x367   : > { %v930_v22 = vadd.f32 %v3517_v20, %v929_v21  ;;  %v3687_v23 = vpop.f32.mrb[1].mxu1 }
 0x368   : > { %v932_v24 = vpop.f32.mrb[2].mxu1 }
 0x369   : > { %v5110_v25 = vpack.c.bf16 %v930_v22, %v930_v22  ;;  %v3688_v26 = vpop.f32.mrb[3].mxu1 }
 0x36b   : > { %999 = vrot.lane.b32.xlu0 %v5110_v25, %s4624_s23  ;;  %937 = vrot.lane.b32.xlu1 %v5110_v25, %s5658_s29  ;;  %s5661_s23 = smov 76   ;;  %s5659_s29 = smov 68  }
 0x3dd   : > { %v938_v27 = vpop.permute.xlu1 %937  ;;  %v1000_v29 = vpop.permute.xlu0 %999 }
 0x3de   : > { %v944_v28 = vsel %vm939_vm2, %v938_v27, 0  ;;  %v1006_v30 = vsel %vm1004_vm3, %v1000_v29, 0 }
 0x3df   : > { %3690 = vmatpush3.bf16.xpose.msra.mxu1 %v944_v28 }
 0x3e0   : > { %3695 = vmatprep.subr.bf16.mxu1 %v4622_v8 }
 0x3e6   : > { %3692 = vmatmul.mubr.msk.bf16.vlgmr.msra.gmra.mrb[4].mxu1 %vm939_vm2, %v5110_v25 }
 0x3e7   : > { %3696 = vmatpush3.bf16.msra.mxu1 %v1006_v30  ;;  %3697 = vmatprep.mubr.msk.bf16.mxu1 %vm4623_vm1, %v4622_v8 }
 0x3e8   : > { %3701 = vmatprep.subr.bf16.mxu1 %v4622_v8 }
 0x4b9   : > { %v980_v31 = vpop.f32.mrb[4].mxu1 }
 0x4ba   : > { %v3693_v32 = vpop.f32.mrb[5].mxu1  ;;  %v987_v33 = vsel %vm986_vm4, %v980_v31, -inf }
 0x4bb   : > { %988 = vmax.xlane.f32.xlu1 %v987_v33  ;;  %v983_v34 = vpop.f32.mrb[6].mxu1 }
 0x4bc   : > { %v3694_v35 = vpop.f32.mrb[7].mxu1 }
 0x4cc   : > { %1160 = vrot.lane.b32.xlu1 %v5110_v25, %s5657_s9  ;;  %s5660_s9 = smov 72  }
 0x4d0   : > { %1378 = vrot.lane.b32.xlu1 %v5110_v25, %s4627_s7 }
 0x4d4   : > { %1488 = vrot.lane.b32.xlu1 %v5110_v25, %s5676_s28  ;;  %s5737_s28 = smov 8  }
 0x4d8   : > { %1598 = vrot.lane.b32.xlu1 %v5110_v25, %s5666_s0 }
 0x4dc   : > { %1708 = vrot.lane.b32.xlu1 %v5110_v25, %s5670_s30  ;;  %s5732_s30 = smov 84  }
 0x548   : > { %v989_v36 = vpop.xlane.xlu1 %988 }
 0x549   : > { %v990_v37 = vsub.f32 %v980_v31, %v989_v36 }
 0x54b   : > { %v991_v38 = vmul.f32 1.442695, %v990_v37 }
 0x54c   : > { %v1161_v49 = vpop.permute.xlu1 %1160 }
 0x54d   : > { %4145 = vpow2.f32 %v991_v38  ;;  %v1166_v50 = vsel %vm939_vm2, %v1161_v49, 0 }
 0x550   : > { %v1379_v57 = vpop.permute.xlu1 %1378 }
 0x554   : > { %v1489_v60 = vpop.permute.xlu1 %1488 }
 0x557   : > { %v4146_v39 = vpop.eup %4145 }
 0x558   : > { %v993_v40 = vsel %vm986_vm4, %v4146_v39, 0.0  ;;  %v1599_v63 = vpop.permute.xlu1 %1598 }
 0x559   : > { %994 = vadd.xlane.f32.xlu0 %v993_v40 }
 0x55c   : > { %v1709_v2 = vpop.permute.xlu1 %1708 }
 0x56f   : > { %1050 = vrot.lane.b32.xlu0 %v5110_v25, %s5668_s3  ;;  %s5674_s3 = smov 20  }
 0x573   : > { %1048 = vrot.lane.b32.xlu0 %v5110_v25, %s4632_s24 }
 0x577   : > { %1158 = vrot.lane.b32.xlu0 %v5110_v25, %s4633_s25 }
 0x57b   : > { %1270 = vrot.lane.b32.xlu0 %v5110_v25, %s5662_s2  ;;  %s5675_s2 = smov 16  }
 0x57f   : > { %1268 = vrot.lane.b32.xlu0 %v5110_v25, %s4635_s22 }
 0x583   : > { %1380 = vrot.lane.b32.xlu0 %v5110_v25, %s5664_s27  ;;  %s5673_s27 = smov 24  }
 0x587   : > { %1490 = vrot.lane.b32.xlu0 %v5110_v25, %s5661_s23  ;;  %s4646_s23 = smov 44  }
 0x58b   : > { %1600 = vrot.lane.b32.xlu0 %v5110_v25, %s5660_s9  ;;  %s4641_s9 = smov 56  }
 0x58f   : > { %1710 = vrot.lane.b32.xlu0 %v5110_v25, %s5659_s29  ;;  %s4640_s29 = smov 60  }
 0x5e6   : > { %v995_v41 = vpop.xlane.xlu0 %994 }
 0x5e7   : > { %4147 = vrcp.f32 %v995_v41 }
 0x5ea   : > { %v1051_v42 = vpop.permute.xlu0 %1050 }
 0x5eb   : > { %v1056_v47 = vsel %vm939_vm2, %v1051_v42, 0 }
 0x5ee   : > { %v1049_v45 = vpop.permute.xlu0 %1048 }
 0x5f1   : > { %v4148_v43 = vpop.eup %4147 }
 0x5f2   : > { %v997_v44 = vmul.f32 %v4148_v43, %v4146_v39  ;;  %v1159_v48 = vpop.permute.xlu0 %1158 }
 0x5f4   : > { %v998_v46 = vpack.c.bf16 %v997_v44, %v997_v44 }
 0x5f6   : > { %3698 = vmatmul.mubr.msk.bf16.vlgmr.msra.gmra.mrb[8].mxu1 %vm986_vm4, %v998_v46  ;;  %v1271_v51 = vpop.permute.xlu0 %1270 }
 0x5f7   : > { %3702 = vmatpush3.bf16.xpose.msra.mxu1 %v1056_v47  ;;  %3703 = vmatprep.mubr.msk.bf16.mxu1 %vm4623_vm1, %v4622_v8  ;;  %v1276_v53 = vsel %vm939_vm2, %v1271_v51, 0 }
 0x5f8   : > { %3713 = vmatprep.subr.bf16.mxu1 %v4622_v8 }
 0x5fa   : > { %v1269_v52 = vpop.permute.xlu0 %1268 }
 0x5fe   : > { %3704 = vmatmul.mubr.msk.bf16.vlgmr.msra.gmra.mrb[12].mxu1 %vm939_vm2, %v1049_v45  ;;  %v1381_v54 = vpop.permute.xlu0 %1380 }
 0x5ff   : > { %3714 = vmatpush3.bf16.xpose.msra.mxu1 %v1166_v50  ;;  %3715 = vmatprep.mubr.msk.bf16.mxu1 %vm4623_vm1, %v4622_v8  ;;  %v1386_v55 = vsel %vm939_vm2, %v1381_v54, 0 }
 0x600   : > { %3725 = vmatprep.subr.bf16.mxu1 %v4622_v8 }
 0x602   : > { %v1491_v56 = vpop.permute.xlu0 %1490 }
 0x603   : > { %v1496_v58 = vsel %vm939_vm2, %v1491_v56, 0 }
 0x606   : > { %3716 = vmatmul.mubr.msk.bf16.vlgmr.msra.gmra.mrb[16].mxu1 %vm939_vm2, %v1159_v48  ;;  %v1601_v59 = vpop.permute.xlu0 %1600 }
 0x607   : > { %3726 = vmatpush3.bf16.xpose.msra.mxu1 %v1276_v53  ;;  %3727 = vmatprep.mubr.msk.bf16.mxu1 %vm4623_vm1, %v4622_v8  ;;  %v1606_v61 = vsel %vm939_vm2, %v1601_v59, 0 }
 0x608   : > { %3737 = vmatprep.subr.bf16.mxu1 %v4622_v8 }
 0x60a   : > { %v1711_v62 = vpop.permute.xlu0 %1710 }
 0x60b   : > { %v1716_v1 = vsel %vm939_vm2, %v1711_v62, 0 }
 0x60e   : > { %3728 = vmatmul.mubr.msk.bf16.vlgmr.msra.gmra.mrb[20].mxu1 %vm939_vm2, %v1269_v52 }
 0x60f   : > { %3738 = vmatpush3.bf16.xpose.msra.mxu1 %v1386_v55  ;;  %3739 = vmatprep.mubr.msk.bf16.mxu1 %vm4623_vm1, %v4622_v8 }
 0x610   : > { %3749 = vmatprep.subr.bf16.mxu1 %v4622_v8 }
 0x616   : > { %3740 = vmatmul.mubr.msk.bf16.vlgmr.msra.gmra.mrb[24].mxu1 %vm939_vm2, %v1379_v57 }
 0x617   : > { %3750 = vmatpush3.bf16.xpose.msra.mxu1 %v1496_v58  ;;  %3751 = vmatprep.mubr.msk.bf16.mxu1 %vm4623_vm1, %v4622_v8 }
 0x618   : > { %3761 = vmatprep.subr.bf16.mxu1 %v4622_v8 }
 0x61e   : > { %3752 = vmatmul.mubr.msk.bf16.vlgmr.msra.gmra.mrb[28].mxu1 %vm939_vm2, %v1489_v60 }
 0x61f   : > { %3762 = vmatpush3.bf16.xpose.msra.mxu1 %v1606_v61  ;;  %3763 = vmatprep.mubr.msk.bf16.mxu1 %vm4623_vm1, %v4622_v8 }
 0x620   : > { %3773 = vmatprep.subr.bf16.mxu1 %v4622_v8 }
 0x626   : > { %3764 = vmatmul.mubr.msk.bf16.vlgmr.msra.gmra.mrb[32].mxu1 %vm939_vm2, %v1599_v63 }
 0x627   : > { %3774 = vmatpush3.bf16.xpose.msra.mxu1 %v1716_v1  ;;  %3775 = vmatprep.mubr.msk.bf16.mxu1 %vm4623_vm1, %v4622_v8 }
 0x628   : > { %3785 = vmatprep.subr.bf16.mxu1 %v4622_v8 }
 0x62e   : > { %3776 = vmatmul.mubr.msk.bf16.vlgmr.msra.gmra.mrb[36].mxu1 %vm939_vm2, %v1709_v2 }
 0x62f   : > { %3789 = vmatprep.mubr.msk.bf16.mxu1 %vm4623_vm1, %v4622_v8 }
 0x6c9   : > { %v5191_v3 = vpop.f32.mrb[8].mxu1 }
 0x6ca   : > { %v3699_v4 = vpop.f32.mrb[9].mxu1 }
 0x6cb   : > { %v1045_v5 = vpop.f32.mrb[10].mxu1 }
 0x6cc   : > { %v3700_v6 = vpop.f32.mrb[11].mxu1 }
 0x6d1   : > { %v1092_v7 = vpop.f32.mrb[12].mxu1 }
 0x6d2   : > { %v3705_v9 = vpop.f32.mrb[13].mxu1  ;;  %v1098_v10 = vsel %vm986_vm4, %v1092_v7, -inf }
 0x6d3   : > { %1099 = vmax.xlane.f32.xlu0 %v1098_v10  ;;  %v1095_v11 = vpop.f32.mrb[14].mxu1 }
 0x6d4   : > { %v3706_v12 = vpop.f32.mrb[15].mxu1 }
 0x6d9   : > { %v1202_v13 = vpop.f32.mrb[16].mxu1 }
 0x6da   : > { %v3717_v14 = vpop.f32.mrb[17].mxu1  ;;  %v1208_v15 = vsel %vm986_vm4, %v1202_v13, -inf }
 0x6db   : > { %1209 = vmax.xlane.f32.xlu1 %v1208_v15  ;;  %v1205_v16 = vpop.f32.mrb[18].mxu1 }
 0x6dc   : > { %v3718_v17 = vpop.f32.mrb[19].mxu1 }
 0x6e1   : > { %v1312_v18 = vpop.f32.mrb[20].mxu1 }
 0x6e2   : > { %v3729_v19 = vpop.f32.mrb[21].mxu1  ;;  %v1318_v20 = vsel %vm986_vm4, %v1312_v18, -inf }
 0x6e3   : > { %1319 = vmax.xlane.f32.xlu0 %v1318_v20  ;;  %v1315_v21 = vpop.f32.mrb[22].mxu1 }
 0x6e4   : > { %v3730_v22 = vpop.f32.mrb[23].mxu1 }
 0x6e9   : > { %v1422_v23 = vpop.f32.mrb[24].mxu1 }
 0x6ea   : > { %v3741_v24 = vpop.f32.mrb[25].mxu1  ;;  %v1428_v26 = vsel %vm986_vm4, %v1422_v23, -inf }
 0x6eb   : > { %1429 = vmax.xlane.f32.xlu0 %v1428_v26  ;;  %v1425_v27 = vpop.f32.mrb[26].mxu1 }
 0x6ec   : > { %v3742_v28 = vpop.f32.mrb[27].mxu1 }
 0x6f1   : > { %v1532_v29 = vpop.f32.mrb[28].mxu1 }
 0x6f2   : > { %v3753_v30 = vpop.f32.mrb[29].mxu1  ;;  %v1538_v31 = vsel %vm986_vm4, %v1532_v29, -inf }
 0x6f3   : > { %1539 = vmax.xlane.f32.xlu0 %v1538_v31  ;;  %v1535_v32 = vpop.f32.mrb[30].mxu1 }
 0x6f4   : > { %v3754_v33 = vpop.f32.mrb[31].mxu1 }
 0x6f9   : > { %v1642_v34 = vpop.f32.mrb[32].mxu1 }
 0x6fa   : > { %v3765_v35 = vpop.f32.mrb[33].mxu1  ;;  %v1648_v36 = vsel %vm986_vm4, %v1642_v34, -inf }
 0x6fb   : > { %1649 = vmax.xlane.f32.xlu1 %v1648_v36  ;;  %v1645_v37 = vpop.f32.mrb[34].mxu1 }
 0x6fc   : > { %v3766_v38 = vpop.f32.mrb[35].mxu1 }
 0x701   : > { %v1752_v39 = vpop.f32.mrb[36].mxu1 }
 0x702   : > { %v3777_v40 = vpop.f32.mrb[37].mxu1  ;;  %v1758_v41 = vsel %vm986_vm4, %v1752_v39, -inf }
 0x703   : > { %1759 = vmax.xlane.f32.xlu0 %v1758_v41  ;;  %v1755_v42 = vpop.f32.mrb[38].mxu1 }
 0x704   : > { %v3778_v43 = vpop.f32.mrb[39].mxu1 }
 0x70c   : > { %1110 = vrot.lane.b32.xlu1 %v5110_v25, %s4640_s29  ;;  %s4642_s29 = smov 52  }
 0x719   : > { %1220 = vrot.lane.b32.xlu0 %v5110_v25, %s4641_s9  ;;  %s4643_s9 = smov 48  }
 0x760   : > { %v1100_v44 = vpop.xlane.xlu0 %1099 }
 0x761   : > { %v1101_v45 = vsub.f32 %v1092_v7, %v1100_v44 }
 0x763   : > { %v1102_v46 = vmul.f32 1.442695, %v1101_v45 }
 0x765   : > { %4149 = vpow2.f32 %v1102_v46 }
 0x768   : > { %v1210_v47 = vpop.xlane.xlu1 %1209 }
 0x769   : > { %v1211_v48 = vsub.f32 %v1202_v13, %v1210_v47 }
 0x76b   : > { %v1212_v49 = vmul.f32 1.442695, %v1211_v48 }
 0x76d   : > { %4151 = vpow2.f32 %v1212_v49 }
 0x76f   : > { %v4150_v50 = vpop.eup %4149 }
 0x770   : > { %v1320_v51 = vpop.xlane.xlu0 %1319  ;;  %v1104_v52 = vsel %vm986_vm4, %v4150_v50, 0.0 }
 0x771   : > { %v1321_v53 = vsub.f32 %v1312_v18, %v1320_v51  ;;  %1105 = vadd.xlane.f32.xlu1 %v1104_v52 }
 0x773   : > { %v1322_v54 = vmul.f32 1.442695, %v1321_v53 }
 0x775   : > { %4153 = vpow2.f32 %v1322_v54 }
 0x777   : > { %v5203_v55 = vpop.eup %4151 }
 0x778   : > { %v1214_v56 = vsel %vm986_vm4, %v5203_v55, 0.0  ;;  %v1430_v62 = vpop.xlane.xlu0 %1429 }
 0x779   : > { %1215 = vadd.xlane.f32.xlu0 %v1214_v56  ;;  %v1431_v63 = vsub.f32 %v1422_v23, %v1430_v62 }
 0x77b   : > { %v1432_v2 = vmul.f32 1.442695, %v1431_v63 }
 0x77d   : > { %4155 = vpow2.f32 %v1432_v2 }
 0x77f   : > { %v5207_v57 = vpop.eup %4153 }
 0x780   : > { %v1324_v58 = vsel %vm986_vm4, %v5207_v57, 0.0  ;;  %v1540_v1 = vpop.xlane.xlu0 %1539 }
 0x781   : > { %1325 = vadd.xlane.f32.xlu1 %v1324_v58  ;;  %v1541_v4 = vsub.f32 %v1532_v29, %v1540_v1 }
 0x783   : > { %v1542_v7 = vmul.f32 1.442695, %v1541_v4 }
 0x785   : > { %4157 = vpow2.f32 %v1542_v7 }
 0x787   : > { %v4156_v12 = vpop.eup %4155 }
 0x788   : > { %v1650_v59 = vpop.xlane.xlu1 %1649  ;;  %v1434_v13 = vsel %vm986_vm4, %v4156_v12, 0.0 }
 0x789   : > { %v1651_v6 = vsub.f32 %v1642_v34, %v1650_v59 }
 0x78b   : > { %v1652_v10 = vmul.f32 1.442695, %v1651_v6 }
 0x78c   : > { %v1111_v60 = vpop.permute.xlu1 %1110 }
 0x78d   : > { %v1116_v61 = vsel %vm1004_vm3, %v1111_v60, 0  ;;  %4159 = vpow2.f32 %v1652_v10 }
 0x78e   : > { %3708 = vmatpush3.bf16.msra.mxu0 %v1116_v61 }
 0x78f   : > { %1330 = vrot.lane.b32.xlu0 %v5110_v25, %s4642_s29  ;;  %3719 = vmatprep.subr.bf16.mxu0 %v4622_v8  ;;  %v5216_v14 = vpop.eup %4157  ;;  %s4644_s29 = smov 40  }
 0x790   : > { %v1760_v5 = vpop.xlane.xlu0 %1759  ;;  %v1544_v16 = vsel %vm986_vm4, %v5216_v14, 0.0 }
 0x791   : > { %v1761_v9 = vsub.f32 %v1752_v39, %v1760_v5 }
 0x792   : > { %1440 = vrot.lane.b32.xlu1 %v5110_v25, %s4643_s9  ;;  %s4645_s9 = smov 36  }
 0x793   : > { %v1762_v11 = vmul.f32 1.442695, %v1761_v9 }
 0x794   : > { %v1221_v21 = vpop.permute.xlu0 %1220 }
 0x795   : > { %4161 = vpow2.f32 %v1762_v11  ;;  %v1226_v27 = vsel %vm1004_vm3, %v1221_v21, 0 }
 0x797   : > { %v5218_v15 = vpop.eup %4159 }
 0x798   : > { %v1654_v18 = vsel %vm986_vm4, %v5218_v15, 0.0 }
 0x79f   : > { %v5222_v17 = vpop.eup %4161 }
 0x7a0   : > { %v1764_v19 = vsel %vm986_vm4, %v5222_v17, 0.0 }
 0x7ae   : > { %1435 = vadd.xlane.f32.xlu0 %v1434_v13 }
 0x7b2   : > { %1545 = vadd.xlane.f32.xlu0 %v1544_v16 }
 0x7b6   : > { %1655 = vadd.xlane.f32.xlu1 %v1654_v18  ;;  %1765 = vadd.xlane.f32.xlu0 %v1764_v19 }
 0x7c7   : > { %1660 = vrot.lane.b32.xlu1 %v5110_v25, %s4644_s29  ;;  %s5665_s29 = smov 8  }
 0x7cb   : > { %1770 = vrot.lane.b32.xlu1 %v5110_v25, %s4645_s9  ;;  %s5669_s9 = smov 12  }
 0x7cc   : > { %1550 = vrot.lane.b32.xlu0 %v5110_v25, %s4646_s23  ;;  %s5663_s23 = smov 4  }
 0x7fe   : > { %v1106_v20 = vpop.xlane.xlu1 %1105 }
 0x7ff   : > { %4163 = vrcp.f32 %v1106_v20 }
 0x806   : > { %v1216_v22 = vpop.xlane.xlu0 %1215 }
 0x807   : > { %4165 = vrcp.f32 %v1216_v22 }
 0x809   : > { %v4164_v23 = vpop.eup %4163 }
 0x80a   : > { %v1108_v24 = vmul.f32 %v4164_v23, %v4150_v50  ;;  %v1331_v30 = vpop.permute.xlu0 %1330 }
 0x80b   : > { %v1336_v32 = vsel %vm1004_vm3, %v1331_v30, 0 }
 0x80c   : > { %v1109_v26 = vpack.c.bf16 %v1108_v24, %v1108_v24 }
 0x80e   : > { %3710 = vmatmul.mubr.msk.bf16.vlgmr.msra.gmra.mrb[0].mxu0 %vm986_vm4, %v1109_v26  ;;  %v1326_v28 = vpop.xlane.xlu1 %1325 }
 0x80f   : > { %4167 = vrcp.f32 %v1326_v28  ;;  %3720 = vmatpush3.bf16.msra.mxu0 %v1226_v27  ;;  %3721 = vmatprep.mubr.msk.bf16.mxu0 %vm4623_vm1, %v4622_v8 }
 0x810   : > { %3731 = vmatprep.subr.bf16.mxu0 %v4622_v8 }
 0x811   : > { %v4166_v25 = vpop.eup %4165 }
 0x812   : > { %v1218_v29 = vmul.f32 %v4166_v25, %v5203_v55  ;;  %v1441_v35 = vpop.permute.xlu1 %1440 }
 0x813   : > { %v1446_v37 = vsel %vm1004_vm3, %v1441_v35, 0 }
 0x814   : > { %v1219_v31 = vpack.c.bf16 %v1218_v29, %v1218_v29 }
 0x816   : > { %3722 = vmatmul.mubr.msk.bf16.vlgmr.msra.gmra.mrb[4].mxu0 %vm986_vm4, %v1219_v31 }
 0x817   : > { %3732 = vmatpush3.bf16.msra.mxu0 %v1336_v32  ;;  %3733 = vmatprep.mubr.msk.bf16.mxu0 %vm4623_vm1, %v4622_v8 }
 0x818   : > { %3743 = vmatprep.subr.bf16.mxu0 %v4622_v8 }
 0x819   : > { %v4168_v33 = vpop.eup %4167 }
 0x81a   : > { %v1328_v34 = vmul.f32 %v4168_v33, %v5207_v57 }
 0x81c   : > { %v1329_v36 = vpack.c.bf16 %v1328_v34, %v1328_v34 }
 0x81e   : > { %3734 = vmatmul.mubr.msk.bf16.vlgmr.msra.gmra.mrb[8].mxu0 %vm986_vm4, %v1329_v36 }
 0x81f   : > { %3744 = vmatpush3.bf16.msra.mxu0 %v1446_v37  ;;  %3745 = vmatprep.mubr.msk.bf16.mxu0 %vm4623_vm1, %v4622_v8 }
 0x820   : > { %3755 = vmatprep.subr.bf16.mxu0 %v4622_v8 }
 0x83b   : > { %v1436_v38 = vpop.xlane.xlu0 %1435 }
 0x83c   : > { %4169 = vrcp.f32 %v1436_v38 }
 0x83f   : > { %v1546_v39 = vpop.xlane.xlu0 %1545 }
 0x840   : > { %4171 = vrcp.f32 %v1546_v39 }
 0x843   : > { %v1766_v40 = vpop.xlane.xlu0 %1765  ;;  %v1656_v41 = vpop.xlane.xlu1 %1655 }
 0x844   : > { %4173 = vrcp.f32 %v1656_v41 }
 0x845   : > { %4175 = vrcp.f32 %v1766_v40 }
 0x846   : > { %v4170_v42 = vpop.eup %4169 }
 0x847   : > { %v1438_v43 = vmul.f32 %v4170_v42, %v4156_v12  ;;  %v1551_v44 = vpop.permute.xlu0 %1550  ;;  %v1661_v49 = vpop.permute.xlu1 %1660 }
 0x848   : > { %v1556_v47 = vsel %vm1004_vm3, %v1551_v44, 0  ;;  %v1666_v52 = vsel %vm1004_vm3, %v1661_v49, 0  ;;  %v3540_v44 = vld [vmem:[#allocation8] ss:$0 sm:$0xff] }
 0x849   : > { %v1439_v45 = vpack.c.bf16 %v1438_v43, %v1438_v43 }
 0x84a   : > { %v4172_v46 = vpop.eup %4171 }
 0x84b   : > { %3746 = vmatmul.mubr.msk.bf16.vlgmr.msra.gmra.mrb[12].mxu0 %vm986_vm4, %v1439_v45  ;;  %v1548_v48 = vmul.f32 %v4172_v46, %v5216_v14  ;;  %v1771_v54 = vpop.permute.xlu1 %1770 }
 0x84c   : > { %3756 = vmatpush3.bf16.msra.mxu0 %v1556_v47  ;;  %3757 = vmatprep.mubr.msk.bf16.mxu0 %vm4623_vm1, %v4622_v8  ;;  %v1776_v57 = vsel %vm1004_vm3, %v1771_v54, 0 }
 0x84d   : > { %3767 = vmatprep.subr.bf16.mxu0 %v4622_v8  ;;  %v1549_v50 = vpack.c.bf16 %v1548_v48, %v1548_v48 }
 0x84e   : > { %v4174_v51 = vpop.eup %4173 }
 0x84f   : > { %v1658_v53 = vmul.f32 %v4174_v51, %v5218_v15  ;;  %v4176_v56 = vpop.eup %4175  ;;  %v4127_v51 = vld [vmem:[%s5627_s12] sm:$0xff]  }
 0x850   : > { %v1768_v58 = vmul.f32 %v4176_v56, %v5222_v17 }
 0x851   : > { %v1659_v55 = vpack.c.bf16 %v1658_v53, %v1658_v53 }
 0x852   : > { %v1769_v59 = vpack.c.bf16 %v1768_v58, %v1768_v58 }
 0x853   : > { %3758 = vmatmul.mubr.msk.bf16.vlgmr.msra.gmra.mrb[16].mxu0 %vm986_vm4, %v1549_v50 }
 0x854   : > { %3768 = vmatpush3.bf16.msra.mxu0 %v1666_v52  ;;  %3769 = vmatprep.mubr.msk.bf16.mxu0 %vm4623_vm1, %v4622_v8 }
 0x855   : > { %3779 = vmatprep.subr.bf16.mxu0 %v4622_v8 }
 0x85b   : > { %3770 = vmatmul.mubr.msk.bf16.vlgmr.msra.gmra.mrb[20].mxu0 %vm986_vm4, %v1659_v55 }
 0x85c   : > { %3780 = vmatpush3.bf16.msra.mxu0 %v1776_v57  ;;  %3781 = vmatprep.mubr.msk.bf16.mxu0 %vm4623_vm1, %v4622_v8 }
 0x85d   : > { %3793 = vmatprep.subr.bf16.mxu0 %v4622_v8 }
 0x863   : > { %3782 = vmatmul.mubr.msk.bf16.vlgmr.msra.gmra.mrb[24].mxu0 %vm986_vm4, %v1769_v59  ;;  %v4129_v59 = vld [vmem:[%s5625_s10] sm:$0xff]  }
 0x864   : > { %3797 = vmatprep.mubr.msk.bf16.mxu0 %vm4623_vm1, %v4622_v8  ;;  %3794 = vmatpush3.bf16.msra.mxu0 %v4129_v59 }
 0x865   : > { %3795 = vmatprep.subr.bf16.mxu0 %v4622_v8 }
 0x8e1   : > { %v1152_v60 = vpop.f32.mrb[0].mxu0 }
 0x8e2   : > { %1819 = vrot.lane.b32.xlu1 %v1152_v60, %s5663_s23  ;;  %v3711_v61 = vpop.f32.mrb[1].mxu0  ;;  %s5672_s23 = smov 28   ;;  %v4130_v60 = vld [vmem:[%s5625_s10 + $0x8] sm:$0xff]  }
 0x8e3   : > { %v1155_v62 = vpop.f32.mrb[2].mxu0  ;;  %3796 = vmatpush3.bf16.msra.mxu0 %v4130_v60  ;;  %v3547_v61 = vld [vmem:[#allocation14] ss:$0 sm:$0xff] }
 0x8e4   : > { %v3712_v63 = vpop.f32.mrb[3].mxu0  ;;  %3809 = vmatprep.subr.bf16.mxu0 %v4622_v8 }
 0x8e9   : > { %v1262_v1 = vpop.f32.mrb[4].mxu0 }
 0x8ea   : > { %1823 = vrot.lane.b32.xlu1 %v1262_v1, %s5665_s29  ;;  %v3723_v2 = vpop.f32.mrb[5].mxu0  ;;  %s5722_s29 = sld [smem:[#allocation42_spill]] }
 0x8eb   : > { %v1265_v4 = vpop.f32.mrb[6].mxu0 }
 0x8ec   : > { %v3724_v5 = vpop.f32.mrb[7].mxu0 }
 0x8f0   : > { %s5723_s0 = smov %s5722_s29  ;;  %v4125_v15 = vld [vmem:[%s5722_s29] sm:$0xff]   ;;  %s5733_s29 = smov 76  }
 0x8f1   : > { %v1372_v6 = vpop.f32.mrb[8].mxu0  ;;  %3786 = vmatpush3.bf16.msra.mxu1 %v4125_v15  ;;  %v4126_v20 = vld [vmem:[%s5723_s0 + $0x8] sm:$0xff]  }
 0x8f2   : > { %1827 = vrot.lane.b32.xlu1 %v1372_v6, %s5669_s9  ;;  %v3735_v7 = vpop.f32.mrb[9].mxu0  ;;  %3787 = vmatprep.subr.bf16.mxu1 %v4622_v8  ;;  %s5724_s9 = sld [smem:[#allocation37_spill]] }
 0x8f3   : > { %v1375_v9 = vpop.f32.mrb[10].mxu0 }
 0x8f4   : > { %v3736_v10 = vpop.f32.mrb[11].mxu0 }
 0x8f5   : > { %3788 = vmatpush3.bf16.msra.mxu1 %v4126_v20 }
 0x8f6   : > { %3801 = vmatprep.subr.bf16.mxu1 %v4622_v8 }
 0x91e   : > { %v1482_v11 = vpop.f32.mrb[12].mxu0 }
 0x91f   : > { %1831 = vrot.lane.b32.xlu0 %v1482_v11, %s5675_s2  ;;  %v3747_v12 = vpop.f32.mrb[13].mxu0  ;;  %s5725_s2 = smov 108   ;;  %v3541_v11 = vld [vmem:[#allocation10] ss:$0 sm:$0xff] }
 0x920   : > { %v1485_v13 = vpop.f32.mrb[14].mxu0 }
 0x921   : > { %v3748_v14 = vpop.f32.mrb[15].mxu0  ;;  %v3542_v13 = vld [vmem:[#allocation11] ss:$0 sm:$0xff] }
 0x926   : > { %v1592_v16 = vpop.f32.mrb[16].mxu0 }
 0x927   : > { %1835 = vrot.lane.b32.xlu1 %v1592_v16, %s5674_s3  ;;  %v3759_v17 = vpop.f32.mrb[17].mxu0  ;;  %s5738_s3 = smov 12  }
 0x928   : > { %v1595_v18 = vpop.f32.mrb[18].mxu0 }
 0x929   : > { %v3760_v19 = vpop.f32.mrb[19].mxu0  ;;  %v3543_v18 = vld [vmem:[#allocation13] ss:$0 sm:$0xff] }
 0x92e   : > { %v1702_v21 = vpop.f32.mrb[20].mxu0 }
 0x92f   : > { %1839 = vrot.lane.b32.xlu0 %v1702_v21, %s5673_s27  ;;  %v3771_v22 = vpop.f32.mrb[21].mxu0  ;;  %s5726_s27 = smov 104  }
 0x930   : > { %v1705_v23 = vpop.f32.mrb[22].mxu0 }
 0x931   : > { %v3772_v24 = vpop.f32.mrb[23].mxu0 }
 0x936   : > { %v1812_v26 = vpop.f32.mrb[24].mxu0 }
 0x937   : > { %1843 = vrot.lane.b32.xlu1 %v1812_v26, %s5672_s23  ;;  %v3783_v27 = vpop.f32.mrb[25].mxu0  ;;  %s833_s23 = scalar_lea.vmem %s5724_s9, %s3513_s5  ;;  %s5734_s9 = smov 72  }
 0x938   : > { %v1815_v28 = vpop.f32.mrb[26].mxu0  ;;  %v836_v52 = vld [vmem:[%s833_s23] sm:$0xff]  ;;  %s5727_s23 = smov 100   ;;  %s5736_s5 = smov 4  }
 0x939   : > { %v3784_v25 = vpop.f32.mrb[27].mxu0  ;;  %v2027_v53 = vpack.c.bf16 %v836_v52, %v836_v52 }
 0x954   : > { %v1820_v29 = vpop.permute.xlu1 %1819 }
 0x955   : > { %v1846_v33 = vsel %vm939_vm2, %v5191_v3, %v1820_v29 }
 0x95c   : > { %v1824_v30 = vpop.permute.xlu1 %1823 }
 0x95d   : > { %v1847_v34 = vsel %vm986_vm4, %v1846_v33, %v1824_v30 }
 0x964   : > { %v1828_v31 = vpop.permute.xlu1 %1827 }
 0x965   : > { %v1849_v36 = vsel %vm1848_vm5, %v1847_v34, %v1828_v31 }
 0x991   : > { %v1832_v32 = vpop.permute.xlu0 %1831 }
 0x992   : > { %v1851_v38 = vsel %vm1850_vm6, %v1849_v36, %v1832_v32 }
 0x999   : > { %v1836_v35 = vpop.permute.xlu1 %1835 }
 0x99a   : > { %v1853_v39 = vsel %vm1852_vm7, %v1851_v38, %v1836_v35 }
 0x9a1   : > { %v1840_v37 = vpop.permute.xlu0 %1839 }
 0x9a2   : > { %v1855_v40 = vsel %vm1854_vm8, %v1853_v39, %v1840_v37 }
 0x9a9   : > { %v1844_v41 = vpop.permute.xlu1 %1843 }
 0x9aa   : > { %v1857_v3 = vsel %vm1856_vm9, %v1855_v40, %v1844_v41 }
 0x9ab   : > { %v1862_v42 = vpack.c.bf16 %v1857_v3, %v1857_v3 }
 0x9ad   : > { %3790 = vmatmul.mubr.msk.bf16.vlgmr.msra.gmra.mrb[40].mxu1 %vm839_vm0, %v1862_v42 }
 0x9ae   : > { %3805 = vmatprep.mubr.msk.bf16.mxu1 %vm4623_vm1, %v4622_v8  ;;  %3802 = vmatpush3.bf16.msra.mxu1 %v4127_v51 }
 0x9af   : > { %3803 = vmatprep.subr.bf16.mxu1 %v4622_v8 }
 0xa80   : > { %v1912_v43 = vpop.f32.mrb[40].mxu1 }
 0xa81   : > { %v1918_v45 = vadd.f32 %v1912_v43, %v5087_v0  ;;  %v3791_v46 = vpop.f32.mrb[41].mxu1  ;;  %v4128_v0 = vld [vmem:[%s5627_s12 + $0x8] sm:$0xff]  }
 0xa82   : > { %v1915_v47 = vpop.f32.mrb[42].mxu1  ;;  %3804 = vmatpush3.bf16.msra.mxu1 %v4128_v0 }
 0xa83   : > { %v5296_v48 = vadd.f32 %v3540_v44, %v1918_v45  ;;  %v3792_v49 = vpop.f32.mrb[43].mxu1  ;;  %3815 = vmatprep.subr.bf16.mxu1 %v4622_v8 }
 0xa85   : > { %v1929_v50 = vsel %vm839_vm0, %v5296_v48, 0.0  ;;  %3806 = vmatmul.mubr.msk.bf16.vlgmr.msra.gmra.mrb[44].mxu1 %vm839_vm0, %v2027_v53 }
 0xa86   : > { %1930 = vadd.xlane.f32.xlu0 %v1929_v50  ;;  %3817 = vmatprep.mubr.msk.bf16.mxu1 %vm4623_vm1, %v4622_v8 }
 0xb13   : > { %v1931_v54 = vpop.xlane.xlu0 %1930 }
 0xb14   : > { %v1932_v55 = vmul.f32 0.03125, %v1931_v54 }
 0xb16   : > { %v1933_v56 = vsub.f32 %v5296_v48, %v1932_v55 }
 0xb18   : > { %v1934_v57 = vmul.f32 %v1933_v56, %v1933_v56 }
 0xb1a   : > { %v1935_v58 = vsel %vm839_vm0, %v1934_v57, 0.0 }
 0xb1b   : > { %1936 = vadd.xlane.f32.xlu1 %v1935_v58 }
 0xb58   : > { %v2084_v62 = vpop.f32.mrb[44].mxu1 }
 0xb59   : > { %v2085_v63 = vadd.f32 %v3547_v61, %v2084_v62  ;;  %v3807_v1 = vpop.f32.mrb[45].mxu1 }
 0xb5a   : > { %v2087_v2 = vpop.f32.mrb[46].mxu1 }
 0xb5b   : > { %v5326_v4 = vpack.c.bf16 %v2085_v63, %v2085_v63  ;;  %v3808_v5 = vpop.f32.mrb[47].mxu1 }
 0xb5d   : > { %2202 = vrot.lane.b32.xlu0 %v5326_v4, %s4632_s24  ;;  %v2096_v17 = vsel %vm939_vm2, %v5326_v4, 0 }
 0xb61   : > { %2312 = vrot.lane.b32.xlu0 %v5326_v4, %s4633_s25 }
 0xb65   : > { %2422 = vrot.lane.b32.xlu0 %v5326_v4, %s4635_s22 }
 0xb69   : > { %2532 = vrot.lane.b32.xlu0 %v5326_v4, %s4627_s7 }
 0xb6d   : > { %2642 = vrot.lane.b32.xlu0 %v5326_v4, %s5725_s2 }
 0xb71   : > { %2752 = vrot.lane.b32.xlu0 %v5326_v4, %s5726_s27 }
 0xb75   : > { %2862 = vrot.lane.b32.xlu0 %v5326_v4, %s5727_s23 }
 0xba8   : > { %v1937_v6 = vpop.xlane.xlu1 %1936 }
 0xba9   : > { %v1938_v7 = vmul.f32 0.03125, %v1937_v6 }
 0xbab   : > { %v1939_v9 = vadd.f32 1e-05, %v1938_v7 }
 0xbad   : > { %4177 = vrsqrt.f32 %v1939_v9 }
 0xbb7   : > { %v4178_v10 = vpop.eup %4177 }
 0xbb8   : > { %v1941_v12 = vmul.f32 %v4178_v10, %v1933_v56 }
 0xbba   : > { %v1948_v14 = vmul.f32 %v3541_v11, %v1941_v12 }
 0xbbc   : > { %v1955_v15 = vadd.f32 %v3542_v13, %v1948_v14 }
 0xbbe   : > { %v1960_v16 = vpack.c.bf16 %v1955_v15, %v1955_v15 }
 0xbc0   : > { %3798 = vmatmul.mubr.msk.bf16.vlgmr.msra.gmra.mrb[28].mxu0 %vm839_vm0, %v1960_v16 }
 0xbc1   : > { %3810 = vmatpush3.bf16.xpose.msra.mxu0 %v2096_v17  ;;  %3811 = vmatprep.mubr.msk.bf16.mxu0 %vm4623_vm1, %v4622_v8 }
 0xbc2   : > { %3821 = vmatprep.subr.bf16.mxu0 %v4622_v8 }
 0xbcf   : > { %v2203_v23 = vpop.permute.xlu0 %2202 }
 0xbd0   : > { %v2208_v27 = vsel %vm939_vm2, %v2203_v23, 0 }
 0xbd3   : > { %v2313_v28 = vpop.permute.xlu0 %2312 }
 0xbd4   : > { %v2318_v29 = vsel %vm939_vm2, %v2313_v28, 0 }
 0xbd7   : > { %v2423_v30 = vpop.permute.xlu0 %2422 }
 0xbd8   : > { %v2428_v32 = vsel %vm939_vm2, %v2423_v30, 0 }
 0xbdb   : > { %v2533_v33 = vpop.permute.xlu0 %2532 }
 0xbdc   : > { %v2538_v35 = vsel %vm939_vm2, %v2533_v33, 0 }
 0xbdf   : > { %v2643_v36 = vpop.permute.xlu0 %2642 }
 0xbe0   : > { %v2648_v38 = vsel %vm939_vm2, %v2643_v36, 0 }
 0xbe3   : > { %v2753_v39 = vpop.permute.xlu0 %2752 }
 0xbe4   : > { %v2758_v41 = vsel %vm939_vm2, %v2753_v39, 0 }
 0xbe7   : > { %v2863_v3 = vpop.permute.xlu0 %2862 }
 0xbe8   : > { %v2868_v43 = vsel %vm939_vm2, %v2863_v3, 0 }
 0xc93   : > { %v2017_v19 = vpop.f32.mrb[28].mxu0 }
 0xc94   : > { %v2018_v20 = vadd.f32 %v3543_v18, %v2017_v19  ;;  %v3799_v21 = vpop.f32.mrb[29].mxu0 }
 0xc95   : > { %v2020_v22 = vpop.f32.mrb[30].mxu0 }
 0xc96   : > { %v2090_v24 = vpack.c.bf16 %v2018_v20, %v2018_v20  ;;  %v3800_v26 = vpop.f32.mrb[31].mxu0 }
 0xc98   : > { %2200 = vrot.lane.b32.xlu1 %v2090_v24, %s4632_s24  ;;  %3812 = vmatmul.mubr.msk.bf16.vlgmr.msra.gmra.mrb[32].mxu0 %vm939_vm2, %v2090_v24  ;;  %s5728_s24 = smov 92  }
 0xc99   : > { %3822 = vmatpush3.bf16.xpose.msra.mxu0 %v2208_v27  ;;  %3823 = vmatprep.mubr.msk.bf16.mxu0 %vm4623_vm1, %v4622_v8 }
 0xc9a   : > { %3833 = vmatprep.subr.bf16.mxu0 %v4622_v8 }
 0xc9c   : > { %2310 = vrot.lane.b32.xlu1 %v2090_v24, %s4633_s25  ;;  %s5730_s25 = smov 88  }
 0xca0   : > { %2420 = vrot.lane.b32.xlu1 %v2090_v24, %s4635_s22  ;;  %s5731_s22 = smov 80  }
 0xca4   : > { %2530 = vrot.lane.b32.xlu1 %v2090_v24, %s4627_s7  ;;  %s5729_s7 = smov 96  }
 0xca8   : > { %2640 = vrot.lane.b32.xlu1 %v2090_v24, %s5725_s2  ;;  %s5739_s2 = smov 16  }
 0xcac   : > { %2750 = vrot.lane.b32.xlu1 %v2090_v24, %s5726_s27 }
 0xcb0   : > { %2860 = vrot.lane.b32.xlu1 %v2090_v24, %s5727_s23  ;;  %s5743_s23 = sld [smem:[#allocation29_spill]] }
 0xcb4   : > { %2262 = vrot.lane.b32.xlu1 %v5326_v4, %s5728_s24  ;;  %s5740_s24 = smov 20  }
 0xd0a   : > { %v2201_v25 = vpop.permute.xlu1 %2200 }
 0xd0b   : > { %3824 = vmatmul.mubr.msk.bf16.vlgmr.msra.gmra.mrb[36].mxu0 %vm939_vm2, %v2201_v25 }
 0xd0c   : > { %3834 = vmatpush3.bf16.xpose.msra.mxu0 %v2318_v29  ;;  %3835 = vmatprep.mubr.msk.bf16.mxu0 %vm4623_vm1, %v4622_v8 }
 0xd0d   : > { %3845 = vmatprep.subr.bf16.mxu0 %v4622_v8 }
 0xd0e   : > { %v2311_v31 = vpop.permute.xlu1 %2310 }
 0xd12   : > { %v2421_v34 = vpop.permute.xlu1 %2420 }
 0xd13   : > { %3836 = vmatmul.mubr.msk.bf16.vlgmr.msra.gmra.mrb[40].mxu0 %vm939_vm2, %v2311_v31 }
 0xd14   : > { %3846 = vmatpush3.bf16.xpose.msra.mxu0 %v2428_v32  ;;  %3847 = vmatprep.mubr.msk.bf16.mxu0 %vm4623_vm1, %v4622_v8 }
 0xd15   : > { %3857 = vmatprep.subr.bf16.mxu0 %v4622_v8 }
 0xd16   : > { %v2531_v37 = vpop.permute.xlu1 %2530 }
 0xd1a   : > { %v2641_v40 = vpop.permute.xlu1 %2640 }
 0xd1b   : > { %3848 = vmatmul.mubr.msk.bf16.vlgmr.msra.gmra.mrb[44].mxu0 %vm939_vm2, %v2421_v34 }
 0xd1c   : > { %3858 = vmatpush3.bf16.xpose.msra.mxu0 %v2538_v35  ;;  %3859 = vmatprep.mubr.msk.bf16.mxu0 %vm4623_vm1, %v4622_v8 }
 0xd1d   : > { %3869 = vmatprep.subr.bf16.mxu0 %v4622_v8 }
 0xd1e   : > { %v2751_v42 = vpop.permute.xlu1 %2750 }
 0xd22   : > { %v2861_v44 = vpop.permute.xlu1 %2860 }
 0xd23   : > { %3860 = vmatmul.mubr.msk.bf16.vlgmr.msra.gmra.mrb[48].mxu0 %vm939_vm2, %v2531_v37 }
 0xd24   : > { %3870 = vmatpush3.bf16.xpose.msra.mxu0 %v2648_v38  ;;  %3871 = vmatprep.mubr.msk.bf16.mxu0 %vm4623_vm1, %v4622_v8 }
 0xd25   : > { %3881 = vmatprep.subr.bf16.mxu0 %v4622_v8 }
 0xd26   : > { %v2263_v32 = vpop.permute.xlu1 %2262 }
 0xd2b   : > { %3872 = vmatmul.mubr.msk.bf16.vlgmr.msra.gmra.mrb[52].mxu0 %vm939_vm2, %v2641_v40 }
 0xd2c   : > { %3882 = vmatpush3.bf16.xpose.msra.mxu0 %v2758_v41  ;;  %3883 = vmatprep.mubr.msk.bf16.mxu0 %vm4623_vm1, %v4622_v8 }
 0xd2d   : > { %3893 = vmatprep.subr.bf16.mxu0 %v4622_v8 }
 0xd33   : > { %3884 = vmatmul.mubr.msk.bf16.vlgmr.msra.gmra.mrb[56].mxu0 %vm939_vm2, %v2751_v42 }
 0xd34   : > { %3894 = vmatpush3.bf16.xpose.msra.mxu0 %v2868_v43  ;;  %3895 = vmatprep.mubr.msk.bf16.mxu0 %vm4623_vm1, %v4622_v8 }
 0xd35   : > { %3905 = vmatprep.subr.bf16.mxu0 %v4622_v8 }
 0xd3b   : > { %3896 = vmatmul.mubr.msk.bf16.vlgmr.msra.gmra.mrb[60].mxu0 %vm939_vm2, %v2861_v44 }
 0xd3c   : > { %3909 = vmatprep.mubr.msk.bf16.mxu0 %vm4623_vm1, %v4622_v8 }
 0xd6b   : > { %v2132_v45 = vpop.f32.mrb[32].mxu0 }
 0xd6c   : > { %v3813_v46 = vpop.f32.mrb[33].mxu0  ;;  %v2138_v47 = vsel %vm986_vm4, %v2132_v45, -inf }
 0xd6d   : > { %2139 = vmax.xlane.f32.xlu0 %v2138_v47  ;;  %v2135_v49 = vpop.f32.mrb[34].mxu0 }
 0xd6e   : > { %v3814_v50 = vpop.f32.mrb[35].mxu0 }
 0xd83   : > { %2151 = vrot.lane.b32.xlu0 %v5326_v4, %s5729_s7  ;;  %s5741_s7 = smov 24  }
 0xdde   : > { %v2244_v51 = vpop.f32.mrb[36].mxu0 }
 0xddf   : > { %v3825_v52 = vpop.f32.mrb[37].mxu0  ;;  %v2250_v0 = vsel %vm986_vm4, %v2244_v51, -inf }
 0xde0   : > { %2251 = vmax.xlane.f32.xlu1 %v2250_v0  ;;  %v2247_v53 = vpop.f32.mrb[38].mxu0 }
 0xde1   : > { %v3826_v54 = vpop.f32.mrb[39].mxu0 }
 0xde6   : > { %v2354_v55 = vpop.f32.mrb[40].mxu0 }
 0xde7   : > { %v3837_v56 = vpop.f32.mrb[41].mxu0  ;;  %v2360_v57 = vsel %vm986_vm4, %v2354_v55, -inf }
 0xde8   : > { %2361 = vmax.xlane.f32.xlu0 %v2360_v57  ;;  %v2357_v58 = vpop.f32.mrb[42].mxu0 }
 0xde9   : > { %v3838_v59 = vpop.f32.mrb[43].mxu0 }
 0xdee   : > { %v2464_v60 = vpop.f32.mrb[44].mxu0 }
 0xdef   : > { %v3849_v61 = vpop.f32.mrb[45].mxu0  ;;  %v2470_v62 = vsel %vm986_vm4, %v2464_v60, -inf }
 0xdf0   : > { %2471 = vmax.xlane.f32.xlu0 %v2470_v62  ;;  %v2467_v63 = vpop.f32.mrb[46].mxu0 }
 0xdf1   : > { %v3850_v1 = vpop.f32.mrb[47].mxu0 }
 0xdf6   : > { %v2574_v2 = vpop.f32.mrb[48].mxu0 }
 0xdf7   : > { %v3861_v5 = vpop.f32.mrb[49].mxu0  ;;  %v2580_v6 = vsel %vm986_vm4, %v2574_v2, -inf }
 0xdf8   : > { %2581 = vmax.xlane.f32.xlu0 %v2580_v6  ;;  %v2577_v7 = vpop.f32.mrb[50].mxu0 }
 0xdf9   : > { %v3862_v9 = vpop.f32.mrb[51].mxu0  ;;  %v2268_v7 = vsel %vm1004_vm3, %v2263_v32, 0 }
 0xdfa   : > { %v2140_v10 = vpop.xlane.xlu0 %2139 }
 0xdfb   : > { %v2141_v25 = vsub.f32 %v2132_v45, %v2140_v10 }
 0xdfd   : > { %v2142_v29 = vmul.f32 1.442695, %v2141_v25 }
 0xdfe   : > { %v2152_v11 = vpop.permute.xlu0 %2151  ;;  %v2684_v12 = vpop.f32.mrb[52].mxu0 }
 0xdff   : > { %v2157_v13 = vsel %vm1004_vm3, %v2152_v11, 0  ;;  %v3873_v14 = vpop.f32.mrb[53].mxu0  ;;  %v2690_v15 = vsel %vm986_vm4, %v2684_v12, -inf  ;;  %4179 = vpow2.f32 %v2142_v29 }
 0xe00   : > { %3816 = vmatpush3.bf16.msra.mxu1 %v2157_v13  ;;  %2691 = vmax.xlane.f32.xlu1 %v2690_v15  ;;  %v2687_v16 = vpop.f32.mrb[54].mxu0 }
 0xe01   : > { %v3874_v17 = vpop.f32.mrb[55].mxu0  ;;  %3827 = vmatprep.subr.bf16.mxu1 %v4622_v8 }
 0xe06   : > { %v2794_v18 = vpop.f32.mrb[56].mxu0 }
 0xe07   : > { %v3885_v19 = vpop.f32.mrb[57].mxu0  ;;  %v2800_v20 = vsel %vm986_vm4, %v2794_v18, -inf }
 0xe08   : > { %2801 = vmax.xlane.f32.xlu0 %v2800_v20  ;;  %v2797_v21 = vpop.f32.mrb[58].mxu0 }
 0xe09   : > { %v3886_v22 = vpop.f32.mrb[59].mxu0  ;;  %v4180_v30 = vpop.eup %4179 }
 0xe0a   : > { %v2144_v31 = vsel %vm986_vm4, %v4180_v30, 0.0 }
 0xe0e   : > { %v5406_v23 = vpop.f32.mrb[60].mxu0 }
 0xe0f   : > { %v3897_v24 = vpop.f32.mrb[61].mxu0  ;;  %v2910_v26 = vsel %vm986_vm4, %v5406_v23, -inf }
 0xe10   : > { %2911 = vmax.xlane.f32.xlu1 %v2910_v26  ;;  %v2907_v27 = vpop.f32.mrb[62].mxu0 }
 0xe11   : > { %v3898_v28 = vpop.f32.mrb[63].mxu0 }
 0xe1e   : > { %2372 = vrot.lane.b32.xlu0 %v5326_v4, %s5730_s25 }
 0xe3d   : > { %2145 = vadd.xlane.f32.xlu0 %v2144_v31 }
 0xe6d   : > { %v2252_v33 = vpop.xlane.xlu1 %2251 }
 0xe6e   : > { %v2253_v34 = vsub.f32 %v2244_v51, %v2252_v33 }
 0xe70   : > { %v2254_v35 = vmul.f32 1.442695, %v2253_v34 }
 0xe72   : > { %4181 = vpow2.f32 %v2254_v35 }
 0xe75   : > { %v2362_v36 = vpop.xlane.xlu0 %2361 }
 0xe76   : > { %v2363_v37 = vsub.f32 %v2354_v55, %v2362_v36 }
 0xe78   : > { %v2364_v38 = vmul.f32 1.442695, %v2363_v37 }
 0xe7a   : > { %4183 = vpow2.f32 %v2364_v38 }
 0xe7c   : > { %v4182_v39 = vpop.eup %4181 }
 0xe7d   : > { %v2256_v40 = vsel %vm986_vm4, %v4182_v39, 0.0  ;;  %v2472_v42 = vpop.xlane.xlu0 %2471 }
 0xe7e   : > { %2257 = vadd.xlane.f32.xlu1 %v2256_v40  ;;  %v2473_v43 = vsub.f32 %v2464_v60, %v2472_v42 }
 0xe80   : > { %v2474_v45 = vmul.f32 1.442695, %v2473_v43 }
 0xe82   : > { %4185 = vpow2.f32 %v2474_v45 }
 0xe84   : > { %v5414_v41 = vpop.eup %4183 }
 0xe85   : > { %v2366_v3 = vsel %vm986_vm4, %v5414_v41, 0.0  ;;  %v2582_v44 = vpop.xlane.xlu0 %2581 }
 0xe86   : > { %2367 = vadd.xlane.f32.xlu0 %v2366_v3  ;;  %v2583_v46 = vsub.f32 %v2574_v2, %v2582_v44 }
 0xe88   : > { %v2584_v51 = vmul.f32 1.442695, %v2583_v46 }
 0xe8a   : > { %4187 = vpow2.f32 %v2584_v51 }
 0xe8c   : > { %v4186_v54 = vpop.eup %4185 }
 0xe8d   : > { %v2692_v47 = vpop.xlane.xlu1 %2691  ;;  %v2476_v55 = vsel %vm986_vm4, %v4186_v54, 0.0 }
 0xe8e   : > { %v2693_v50 = vsub.f32 %v2684_v12, %v2692_v47 }
 0xe8f   : > { %2592 = vrot.lane.b32.xlu1 %v5326_v4, %s5731_s22 }
 0xe90   : > { %v2694_v0 = vmul.f32 1.442695, %v2693_v50 }
 0xe92   : > { %4189 = vpow2.f32 %v2694_v0 }
 0xe94   : > { %v5423_v56 = vpop.eup %4187 }
 0xe95   : > { %v2802_v49 = vpop.xlane.xlu0 %2801  ;;  %v2586_v58 = vsel %vm986_vm4, %v5423_v56, 0.0 }
 0xe96   : > { %v2803_v52 = vsub.f32 %v2794_v18, %v2802_v49 }
 0xe98   : > { %v2804_v53 = vmul.f32 1.442695, %v2803_v52 }
 0xe99   : > { %v2373_v62 = vpop.permute.xlu0 %2372 }
 0xe9a   : > { %4191 = vpow2.f32 %v2804_v53  ;;  %v2378_v18 = vsel %vm1004_vm3, %v2373_v62, 0 }
 0xe9c   : > { %2482 = vrot.lane.b32.xlu0 %v5326_v4, %s5732_s30  ;;  %v5425_v57 = vpop.eup %4189  ;;  %s5742_s30 = smov 28  }
 0xe9d   : > { %v2696_v61 = vsel %vm986_vm4, %v5425_v57, 0.0  ;;  %v2912_v5 = vpop.xlane.xlu1 %2911 }
 0xe9e   : > { %v2913_v9 = vsub.f32 %v5406_v23, %v2912_v5 }
 0xea0   : > { %v2914_v10 = vmul.f32 1.442695, %v2913_v9 }
 0xea4   : > { %v5429_v59 = vpop.eup %4191 }
 0xea5   : > { %v2806_v60 = vsel %vm986_vm4, %v5429_v59, 0.0 }
 0xeb3   : > { %2477 = vadd.xlane.f32.xlu1 %v2476_v55 }
 0xeb7   : > { %2587 = vadd.xlane.f32.xlu1 %v2586_v58 }
 0xebb   : > { %2807 = vadd.xlane.f32.xlu0 %v2806_v60  ;;  %2697 = vadd.xlane.f32.xlu1 %v2696_v61 }
 0xeca   : > { %v2146_v63 = vpop.xlane.xlu0 %2145 }
 0xecb   : > { %4193 = vrcp.f32 %v2146_v63 }
 0xecc   : > { %2702 = vrot.lane.b32.xlu1 %v5326_v4, %s5733_s29  ;;  %4195 = vpow2.f32 %v2914_v10  ;;  %v4131_v10 = vld [vmem:[%s5629_s14] sm:$0xff]   ;;  %s5745_s29 = sld [smem:[#allocation34_spill]] }
 0xecd   : > { %3906 = vmatpush3.bf16.msra.mxu0 %v4131_v10 }
 0xece   : > { %3907 = vmatprep.subr.bf16.mxu0 %v4622_v8 }
 0xed1   : > { %2812 = vrot.lane.b32.xlu0 %v5326_v4, %s5734_s9  ;;  %s3587_s9 = sshll.u32 %s4791_s4, 7 }
 0xed2   : > { %p5747_p1 = scmp.ne.s32.totalorder %s5745_s29, 0 }
 0xed5   : > { %v4194_v1 = vpop.eup %4193 }
 0xed6   : > { %v2148_v2 = vmul.f32 %v4194_v1, %v4180_v30  ;;  %v5445_v11 = vpop.eup %4195 }
 0xed7   : > { %v2916_v12 = vsel %vm986_vm4, %v5445_v11, 0.0 }
 0xed8   : > { %v2149_v6 = vpack.c.bf16 %v2148_v2, %v2148_v2 }
 0xeda   : > { %3818 = vmatmul.mubr.msk.bf16.vlgmr.msra.gmra.mrb[48].mxu1 %vm986_vm4, %v2149_v6 }
 0xedb   : > { %3828 = vmatpush3.bf16.msra.mxu1 %v2268_v7  ;;  %3829 = vmatprep.mubr.msk.bf16.mxu1 %vm4623_vm1, %v4622_v8 }
 0xedc   : > { %3839 = vmatprep.subr.bf16.mxu1 %v4622_v8 }
 0xef0   : > { %2917 = vadd.xlane.f32.xlu1 %v2916_v12 }
 0xf01   : > { %2922 = vrot.lane.b32.xlu1 %v5326_v4, %s5735_s26 }
 0xf0b   : > { %v2258_v13 = vpop.xlane.xlu1 %2257 }
 0xf0c   : > { %4197 = vrcp.f32 %v2258_v13 }
 0xf0f   : > { %v2593_v23 = vpop.permute.xlu1 %2592 }
 0xf10   : > { %v2598_v31 = vsel %vm1004_vm3, %v2593_v23, 0 }
 0xf13   : > { %v2368_v14 = vpop.xlane.xlu0 %2367 }
 0xf14   : > { %4199 = vrcp.f32 %v2368_v14 }
 0xf16   : > { %v4198_v15 = vpop.eup %4197 }
 0xf17   : > { %v2260_v16 = vmul.f32 %v4198_v15, %v4182_v39  ;;  %v2483_v20 = vpop.permute.xlu0 %2482 }
 0xf18   : > { %v2488_v22 = vsel %vm1004_vm3, %v2483_v20, 0 }
 0xf19   : > { %v2261_v17 = vpack.c.bf16 %v2260_v16, %v2260_v16 }
 0xf1b   : > { %3830 = vmatmul.mubr.msk.bf16.vlgmr.msra.gmra.mrb[52].mxu1 %vm986_vm4, %v2261_v17 }
 0xf1c   : > { %3840 = vmatpush3.bf16.msra.mxu1 %v2378_v18  ;;  %3841 = vmatprep.mubr.msk.bf16.mxu1 %vm4623_vm1, %v4622_v8 }
 0xf1d   : > { %3851 = vmatprep.subr.bf16.mxu1 %v4622_v8 }
 0xf1e   : > { %v4200_v19 = vpop.eup %4199 }
 0xf1f   : > { %v2370_v4 = vmul.f32 %v4200_v19, %v5414_v41  ;;  %v4132_v19 = vld [vmem:[%s5629_s14 + $0x8] sm:$0xff]  }
 0xf20   : > { %3908 = vmatpush3.bf16.msra.mxu0 %v4132_v19 }
 0xf21   : > { %v2371_v21 = vpack.c.bf16 %v2370_v4, %v2370_v4  ;;  %3921 = vmatprep.subr.bf16.mxu0 %v4622_v8 }
 0xf23   : > { %3842 = vmatmul.mubr.msk.bf16.vlgmr.msra.gmra.mrb[56].mxu1 %vm986_vm4, %v2371_v21 }
 0xf24   : > { %3852 = vmatpush3.bf16.msra.mxu1 %v2488_v22  ;;  %3853 = vmatprep.mubr.msk.bf16.mxu1 %vm4623_vm1, %v4622_v8 }
 0xf25   : > { %3863 = vmatprep.subr.bf16.mxu1 %v4622_v8 }
 0xf40   : > { %v2478_v24 = vpop.xlane.xlu1 %2477 }
 0xf41   : > { %4201 = vrcp.f32 %v2478_v24 }
 0xf44   : > { %v2588_v26 = vpop.xlane.xlu1 %2587 }
 0xf45   : > { %4203 = vrcp.f32 %v2588_v26 }
 0xf48   : > { %v2698_v27 = vpop.xlane.xlu1 %2697  ;;  %v2808_v33 = vpop.xlane.xlu0 %2807 }
 0xf49   : > { %4205 = vrcp.f32 %v2698_v27 }
 0xf4a   : > { %4207 = vrcp.f32 %v2808_v33 }
 0xf4b   : > { %v4202_v28 = vpop.eup %4201 }
 0xf4c   : > { %v2480_v25 = vmul.f32 %v4202_v28, %v4186_v54  ;;  %v2703_v34 = vpop.permute.xlu1 %2702  ;;  %v2813_v39 = vpop.permute.xlu0 %2812 }
 0xf4d   : > { %v2708_v37 = vsel %vm1004_vm3, %v2703_v34, 0  ;;  %v2818_v3 = vsel %vm1004_vm3, %v2813_v39, 0  ;;  %v3570_v39 = vld [vmem:[#allocation16] ss:$0 sm:$0xff] }
 0xf4e   : > { %v2481_v29 = vpack.c.bf16 %v2480_v25, %v2480_v25 }
 0xf4f   : > { %v4204_v30 = vpop.eup %4203 }
 0xf50   : > { %3854 = vmatmul.mubr.msk.bf16.vlgmr.msra.gmra.mrb[60].mxu1 %vm986_vm4, %v2481_v29  ;;  %v2590_v32 = vmul.f32 %v4204_v30, %v5423_v56 }
 0xf51   : > { %3864 = vmatpush3.bf16.msra.mxu1 %v2598_v31  ;;  %3865 = vmatprep.mubr.msk.bf16.mxu1 %vm4623_vm1, %v4622_v8 }
 0xf52   : > { %3875 = vmatprep.subr.bf16.mxu1 %v4622_v8  ;;  %v2591_v35 = vpack.c.bf16 %v2590_v32, %v2590_v32 }
 0xf53   : > { %v4206_v36 = vpop.eup %4205 }
 0xf54   : > { %v2700_v38 = vmul.f32 %v4206_v36, %v5425_v57  ;;  %v4208_v41 = vpop.eup %4207 }
 0xf55   : > { %v2810_v42 = vmul.f32 %v4208_v41, %v5429_v59 }
 0xf56   : > { %v2701_v40 = vpack.c.bf16 %v2700_v38, %v2700_v38 }
 0xf57   : > { %v2811_v43 = vpack.c.bf16 %v2810_v42, %v2810_v42 }
 0xf58   : > { %3866 = vmatmul.mubr.msk.bf16.vlgmr.msra.gmra.mrb[64].mxu1 %vm986_vm4, %v2591_v35 }
 0xf59   : > { %3876 = vmatpush3.bf16.msra.mxu1 %v2708_v37  ;;  %3877 = vmatprep.mubr.msk.bf16.mxu1 %vm4623_vm1, %v4622_v8 }
 0xf5a   : > { %3887 = vmatprep.subr.bf16.mxu1 %v4622_v8 }
 0xf60   : > { %3878 = vmatmul.mubr.msk.bf16.vlgmr.msra.gmra.mrb[68].mxu1 %vm986_vm4, %v2701_v40 }
 0xf61   : > { %3888 = vmatpush3.bf16.msra.mxu1 %v2818_v3  ;;  %3889 = vmatprep.mubr.msk.bf16.mxu1 %vm4623_vm1, %v4622_v8 }
 0xf62   : > { %3899 = vmatprep.subr.bf16.mxu1 %v4622_v8 }
 0xf68   : > { %3890 = vmatmul.mubr.msk.bf16.vlgmr.msra.gmra.mrb[72].mxu1 %vm986_vm4, %v2811_v43 }
 0xf69   : > { %3901 = vmatprep.mubr.msk.bf16.mxu1 %vm4623_vm1, %v4622_v8 }
 0xf7d   : > { %v2918_v44 = vpop.xlane.xlu1 %2917 }
 0xf7e   : > { %4209 = vrcp.f32 %v2918_v44 }
 0xf81   : > { %v2923_v45 = vpop.permute.xlu1 %2922 }
 0xf82   : > { %v2928_v46 = vsel %vm1004_vm3, %v2923_v45, 0 }
 0xf83   : > { %3900 = vmatpush3.bf16.msra.mxu1 %v2928_v46 }
 0xf84   : > { %3913 = vmatprep.subr.bf16.mxu1 %v4622_v8 }
 0xf88   : > { %v4210_v47 = vpop.eup %4209 }
 0xf89   : > { %v2920_v49 = vmul.f32 %v4210_v47, %v5445_v11 }
 0xf8b   : > { %v2921_v50 = vpack.c.bf16 %v2920_v49, %v2920_v49 }
 0xf8d   : > { %3902 = vmatmul.mubr.msk.bf16.vlgmr.msra.gmra.mrb[76].mxu1 %vm986_vm4, %v2921_v50 }
 0xf8e   : > { %3917 = vmatprep.mubr.msk.bf16.mxu1 %vm4623_vm1, %v4622_v8 }
 0xfad   : > { %v2193_v51 = vpop.f32.mrb[48].mxu1 }
 0xfae   : > { %v3819_v52 = vpop.f32.mrb[49].mxu1 }
 0xfaf   : > { %v2196_v0 = vpop.f32.mrb[50].mxu1  ;;  %v4135_v52 = vld [vmem:[%s5635_s20] sm:$0xff]  }
 0xfb0   : > { %v3820_v53 = vpop.f32.mrb[51].mxu1 }
 0xfee   : > { %v2304_v54 = vpop.f32.mrb[52].mxu1 }
 0xfef   : > { %2971 = vrot.lane.b32.xlu0 %v2304_v54, %s5736_s5  ;;  %v3831_v55 = vpop.f32.mrb[53].mxu1 }
 0xff0   : > { %v2307_v56 = vpop.f32.mrb[54].mxu1 }
 0xff1   : > { %v3832_v57 = vpop.f32.mrb[55].mxu1  ;;  %v3571_v56 = vld [vmem:[#allocation17] ss:$0 sm:$0xff] }
 0xff6   : > { %v2414_v58 = vpop.f32.mrb[56].mxu1 }
 0xff7   : > { %2975 = vrot.lane.b32.xlu1 %v2414_v58, %s5737_s28  ;;  %v3843_v59 = vpop.f32.mrb[57].mxu1  ;;  %v3572_v58 = vld [vmem:[#allocation19] ss:$0 sm:$0xff] }
 0xff8   : > { %v2417_v60 = vpop.f32.mrb[58].mxu1 }
 0xff9   : > { %v3844_v61 = vpop.f32.mrb[59].mxu1 }
0x1023   : > { %v2524_v62 = vpop.f32.mrb[60].mxu1 }
0x1024   : > { %2979 = vrot.lane.b32.xlu0 %v2524_v62, %s5738_s3  ;;  %v3855_v63 = vpop.f32.mrb[61].mxu1  ;;  %v4136_v62 = vld [vmem:[%s5635_s20 + $0x8] sm:$0xff]  }
0x1025   : > { %v2527_v1 = vpop.f32.mrb[62].mxu1  ;;  %v4137_v63 = vld [vmem:[%s5635_s20 + $0x10] sm:$0xff]  }
0x1026   : > { %v3856_v2 = vpop.f32.mrb[63].mxu1  ;;  %v4138_v1 = vld [vmem:[%s5635_s20 + $0x18] sm:$0xff]  }
0x1027   : > { %v4139_v2 = vld [vmem:[%s5635_s20 + $0x20] sm:$0xff]  }
0x102b   : > { %v2634_v5 = vpop.f32.mrb[64].mxu1 }
0x102c   : > { %2983 = vrot.lane.b32.xlu1 %v2634_v5, %s5739_s2  ;;  %v3867_v6 = vpop.f32.mrb[65].mxu1  ;;  %v4140_v5 = vld [vmem:[%s5635_s20 + $0x28] sm:$0xff]   ;;  %s5746_s2 = sld [smem:[#allocation46_spill]] }
0x102d   : > { %v2637_v7 = vpop.f32.mrb[66].mxu1  ;;  %v4141_v6 = vld [vmem:[%s5635_s20 + $0x30] sm:$0xff]  }
0x102e   : > { %v3868_v9 = vpop.f32.mrb[67].mxu1  ;;  %v4142_v7 = vld [vmem:[%s5635_s20 + $0x38] sm:$0xff]  }
0x102f   : > { %v3573_v9 = vld [vmem:[%s5634_s19] ss:$0 sm:$0xff] }
0x1032   : > { %s5572_s27 = scalar_lea.hbm %s5746_s2, %s3587_s9 }
0x1033   : > { %v2744_v11 = vpop.f32.mrb[68].mxu1 }
0x1034   : > { %2987 = vrot.lane.b32.xlu0 %v2744_v11, %s5740_s24  ;;  %v3879_v12 = vpop.f32.mrb[69].mxu1  ;;  %s823_s24 = sand.u32 1, %s5743_s23  }
0x1035   : > { %v2747_v13 = vpop.f32.mrb[70].mxu1  ;;  %s3295_s4 = scalar_lea.sflag [#allocation4], %s823_s24 }
0x1036   : > { %v3880_v14 = vpop.f32.mrb[71].mxu1 }
0x103b   : > { %v2854_v15 = vpop.f32.mrb[72].mxu1 }
0x103c   : > { %2991 = vrot.lane.b32.xlu1 %v2854_v15, %s5741_s7  ;;  %v3891_v16 = vpop.f32.mrb[73].mxu1  ;;  %s3512_s7 = sshll.u32 %s823_s24, 3 }
0x103d   : > { %v2857_v17 = vpop.f32.mrb[74].mxu1  ;;  %s825_s26 = scalar_lea.vmem [#allocation20], %s3512_s7  ;;  %s4654_s7 = smov [#allocation20]  }
0x103e   : > { %v3892_v18 = vpop.f32.mrb[75].mxu1  ;;  %s3308_s5 = sshll.u32 %s825_s26, 4  ;;  %s4527_s25 = sshll.u32 %s4654_s7, 4  ;;  %s5574_s5 = int_to_ptr.vmem [resolvable:$true] %s3308_s5  ;;  %s4528_s25 = int_to_ptr.vmem [resolvable:$false] %s4527_s25 }
0x103f   : > { %s4523_s23 = scalar_lea.vmem %s5574_s5, 128  ;;  %s4529_s22 = scalar_lea.vmem %s4528_s25, 256 }
0x1040   : > { %p4524_p13 = scmp.ne.s32.totalorder %s5574_s5, %s4523_s23  ;;  %p4530_p5 = scmp.lt.s32.totalorder %s5574_s5, %s4528_s25 }
0x1041   : > { %p4531_p9 = scmp.lt.s32.totalorder %s4529_s22, %s4523_s23 }
0x1042   : > { %p4525_p0 = pnand %p4524_p13, %p5747_p1 }
0x1043   : > { %p4532_p12 = por %p4531_p9, %p4530_p5 }
0x1044   : > { %p4526_p6 = pneg %p4525_p0 }
0x1046   : > { %p4533_p10 = pnand %p4532_p12, %p4526_p6 }
0x1060   : > { %v2964_v4 = vpop.f32.mrb[76].mxu1 }
0x1061   : > { %2995 = vrot.lane.b32.xlu0 %v2964_v4, %s5742_s30  ;;  %v3903_v20 = vpop.f32.mrb[77].mxu1  ;;  %v2972_v23 = vpop.permute.xlu0 %2971  ;;  %s5744_s30 = sld [smem:[#allocation45_spill]] }
0x1062   : > { %v2967_v21 = vpop.f32.mrb[78].mxu1  ;;  %v2998_v28 = vsel %vm939_vm2, %v2193_v51, %v2972_v23  ;;  %v4134_v51 = vld [vmem:[%s5633_s18 + $0x8] sm:$0xff]  }
0x1063   : > { %v3904_v22 = vpop.f32.mrb[79].mxu1 }
0x1069   : > { %v2976_v24 = vpop.permute.xlu1 %2975 }
0x106a   : > { %v2999_v25 = vsel %vm986_vm4, %v2998_v28, %v2976_v24  ;;  %v3585_v24 = vld [vmem:[%s5744_s30] ss:$0 sm:$0xff] }
0x1096   : > { %v2980_v26 = vpop.permute.xlu0 %2979 }
0x1097   : > { %v3000_v30 = vsel %vm1848_vm5, %v2999_v25, %v2980_v26 }
0x109e   : > { %v2984_v27 = vpop.permute.xlu1 %2983 }
0x109f   : > { %v3001_v32 = vsel %vm1850_vm6, %v3000_v30, %v2984_v27 }
0x10a6   : > { %v2988_v29 = vpop.permute.xlu0 %2987 }
0x10a7   : > { %v3002_v33 = vsel %vm1852_vm7, %v3001_v32, %v2988_v29 }
0x10ae   : > { %v2992_v31 = vpop.permute.xlu1 %2991 }
0x10af   : > { %v3003_v34 = vsel %vm1854_vm8, %v3002_v33, %v2992_v31 }
0x10d3   : > { %v2996_v35 = vpop.permute.xlu0 %2995 }
0x10d4   : > { %v3004_v36 = vsel %vm1856_vm9, %v3003_v34, %v2996_v35 }
0x10d5   : > { %v3009_v37 = vpack.c.bf16 %v3004_v36, %v3004_v36 }
0x10d7   : > { %3910 = vmatmul.mubr.msk.bf16.vlgmr.msra.gmra.mrb[64].mxu0 %vm839_vm0, %v3009_v37 }
0x10d8   : > { %3937 = vmatprep.mubr.msk.bf16.mxu0 %vm4623_vm1, %v4622_v8  ;;  %3922 = vmatpush3.bf16.msra.mxu0 %v4135_v52 }
0x10d9   : > { %3923 = vmatprep.subr.bf16.mxu0 %v4622_v8 }
0x10dc   : > { %3924 = vmatpush3.bf16.msra.mxu0 %v4136_v62 }
0x10dd   : > { %3925 = vmatprep.subr.bf16.mxu0 %v4622_v8 }
0x10e0   : > { %3926 = vmatpush3.bf16.msra.mxu0 %v4137_v63 }
0x10e1   : > { %3927 = vmatprep.subr.bf16.mxu0 %v4622_v8 }
0x10e4   : > { %3928 = vmatpush3.bf16.msra.mxu0 %v4138_v1 }
0x10e5   : > { %3929 = vmatprep.subr.bf16.mxu0 %v4622_v8 }
0x10e8   : > { %3930 = vmatpush3.bf16.msra.mxu0 %v4139_v2 }
0x10e9   : > { %3931 = vmatprep.subr.bf16.mxu0 %v4622_v8 }
0x10ec   : > { %3932 = vmatpush3.bf16.msra.mxu0 %v4140_v5 }
0x10ed   : > { %3933 = vmatprep.subr.bf16.mxu0 %v4622_v8 }
0x10f0   : > { %3934 = vmatpush3.bf16.msra.mxu0 %v4141_v6 }
0x10f1   : > { %3935 = vmatprep.subr.bf16.mxu0 %v4622_v8 }
0x10f4   : > { %3936 = vmatpush3.bf16.msra.mxu0 %v4142_v7 }
0x11aa   : > { %v3059_v38 = vpop.f32.mrb[64].mxu0 }
0x11ab   : > { %v3065_v40 = vadd.f32 %v3059_v38, %v5296_v48  ;;  %v3911_v41 = vpop.f32.mrb[65].mxu0  ;;  %v4133_v48 = vld [vmem:[%s5633_s18] sm:$0xff]  }
0x11ac   : > { %v3062_v3 = vpop.f32.mrb[66].mxu0  ;;  %3914 = vmatpush3.bf16.msra.mxu1 %v4133_v48 }
0x11ad   : > { %v5515_v42 = vadd.f32 %v3570_v39, %v3065_v40  ;;  %v3912_v43 = vpop.f32.mrb[67].mxu0  ;;  %3915 = vmatprep.subr.bf16.mxu1 %v4622_v8 }
0x11af   : > { %v3076_v44 = vsel %vm839_vm0, %v5515_v42, 0.0 }
0x11b0   : > { %3077 = vadd.xlane.f32.xlu1 %v3076_v44  ;;  %3916 = vmatpush3.bf16.msra.mxu1 %v4134_v51 }
0x123d   : > { %v3078_v45 = vpop.xlane.xlu1 %3077 }
0x123e   : > { %v3079_v46 = vmul.f32 0.03125, %v3078_v45 }
0x1240   : > { %v3080_v47 = vsub.f32 %v5515_v42, %v3079_v46 }
0x1242   : > { %v3081_v49 = vmul.f32 %v3080_v47, %v3080_v47 }
0x1244   : > { %v3082_v50 = vsel %vm839_vm0, %v3081_v49, 0.0 }
0x1245   : > { %3083 = vadd.xlane.f32.xlu0 %v3082_v50 }
0x12d2   : > { %v3084_v0 = vpop.xlane.xlu0 %3083 }
0x12d3   : > { %v3085_v53 = vmul.f32 0.03125, %v3084_v0 }
0x12d5   : > { %v3086_v54 = vadd.f32 1e-05, %v3085_v53 }
0x12d7   : > { %4211 = vrsqrt.f32 %v3086_v54 }
0x12e1   : > { %v4212_v55 = vpop.eup %4211 }
0x12e2   : > { %v3088_v57 = vmul.f32 %v4212_v55, %v3080_v47 }
0x12e4   : > { %v3095_v59 = vmul.f32 %v3571_v56, %v3088_v57 }
0x12e6   : > { %v3102_v60 = vadd.f32 %v3572_v58, %v3095_v59 }
0x12e8   : > { %v3107_v61 = vpack.c.bf16 %v3102_v60, %v3102_v60 }
0x12ea   : > { %3918 = vmatmul.mubr.msk.bf16.vlgmr.msra.gmra.mrb[80].mxu1 %vm839_vm0, %v3107_v61 }
0x13bd   : > { %v3164_v10 = vpop.f32.mrb[80].mxu1 }
0x13be   : > { %v3165_v11 = vadd.f32 %v3573_v9, %v3164_v10  ;;  %v3919_v12 = vpop.f32.mrb[81].mxu1 }
0x13bf   : > { %v3167_v13 = vpop.f32.mrb[82].mxu1 }
0x13c0   : > { %v3171_v14 = vmul.f32 0.044715, %v3165_v11  ;;  %v3920_v15 = vpop.f32.mrb[83].mxu1  ;;  %v3170_v8 = vmul.f32 0.5, %v3165_v11 }
0x13c2   : > { %v3172_v16 = vmul.f32 %v3171_v14, %v3165_v11 }
0x13c4   : > { %v3173_v17 = vmul.f32 %v3172_v16, %v3165_v11 }
0x13c6   : > { %v3174_v18 = vadd.f32 %v3173_v17, %v3165_v11 }
0x13c8   : > { %v3175_v19 = vmul.f32 0.7978846, %v3174_v18 }
0x13ca   : > { %4213 = vtanh.f32 %v3175_v19 }
0x13d4   : > { %v4214_v4 = vpop.eup %4213 }
0x13d5   : > { %v3177_v20 = vadd.f32 1.0, %v4214_v4 }
0x13d7   : > { %v3178_v21 = vmul.f32 %v3177_v20, %v3170_v8 }
0x13d9   : > { %v3195_v22 = vpack.c.bf16 %v3178_v21, %v3178_v21 }
0x13db   : > { %3938 = vmatmul.mubr.bf16.vlgmr.msra.gmra.mrb[68].mxu0 %v3195_v22 }
0x14ae   : > { %v3278_v23 = vpop.f32.mrb[68].mxu0 }
0x14af   : > { %v3284_v26 = vadd.f32 %v3278_v23, %v5515_v42  ;;  %v3939_v27 = vpop.f32.mrb[69].mxu0 }
0x14b0   : > { %v3281_v28 = vpop.f32.mrb[70].mxu0 }
0x14b1   : > { %v3292_v25 = vadd.f32 %v3585_v24, %v3284_v26  ;;  %v3940_v29 = vpop.f32.mrb[71].mxu0 }
0x14b3   : > { %3293 = vst.msk [vmem:[%s825_s26] sm:$0xff] %vm839_vm0, %v3292_v25 }
0x14b4   : > { %4536 = shalt.err (!%p4533_p10)
}
0x14b5   : > { %s4537_s24 = scalar_lea.hbm %s5572_s27, 128  ;;  %s4541_s26 = scalar_lea.hbm %s5746_s2, 256 }
0x14b6   : > { %p4538_p2 = scmp.ne.s32.totalorder %s5572_s27, %s4537_s24  ;;  %p4542_p7 = scmp.lt.u32.totalorder %s5572_s27, %s5746_s2 }
0x14b7   : > { %p4543_p8 = scmp.lt.u32.totalorder %s4541_s26, %s4537_s24  ;;  %p4545_p13 = scmp.lt.u32.totalorder %s4537_s24, %s5572_s27 }
0x14b8   : > { %p4539_p3 = pnand %p4538_p2, %p5747_p1 }
0x14b9   : > { %p4544_p11 = por %p4543_p8, %p4542_p7 }
0x14ba   : > { %p4540_p4 = pneg %p4539_p3 }
0x14bb   : > { %p4546_p0 = por %p4545_p13, %p4544_p11 }
0x14bd   : > { %p4547_p6 = pnand %p4546_p0, %p4540_p4 }
0x14bf   : > { %4550 = shalt.err (!%p4547_p6)
}
0x14c0   : > { %3985 = dma.vmem_to_hbm [thread:$0]  (%p5747_p1), %s5574_s5, 128, %s5572_s27, %s3295_s4  }
0x14c1 PF: > { %s5748_s23 = sld [smem:[#allocation31_spill]]  ;;  %s5749_s7 = sld [smem:[#allocation28_spill]] }
0x14c2   : > { %s5750_s25 = sld [smem:[#allocation35_spill]] }
0x14c7   : > { %p4047_p5 = scmp.ge.s32.totalorder %s5748_s23, 2  ;;  %s3320_s22 = sand.u32 1, %s5749_s7  }
0x14c8   : > { %p5751_p9 = scmp.ne.s32.totalorder %s5750_s25, 0  ;;  %s3321_s30 = scalar_lea.sflag [#allocation4], %s3320_s22 }
0x14ca   : > { %p4022_p12 = pnand %p4047_p5, %p5751_p9 }
0x14cc   : > { %4592 = dma.done.wait (!%p4022_p12), %s3321_s30, 128  }
0x14cd   : > { %4594 = vsyncadd (!%p4022_p12), %s3321_s30, 4294967168  ;;  %s5752_s30 = sld [smem:[#allocation32_spill]]  ;;  %s5753_s3 = sld [smem:[#allocation29_spill]] }
0x14ce   : > { %s5754_s28 = sld [smem:[#allocation30_spill]]  ;;  %s5755_s29 = sld [smem:[#allocation33_spill]] }
0x14d3   : > { %p38_p10 = scmp.ge.s32.totalorder %s5752_s30, 4  }
0x14d5   :  { %40 = sbr.rel (!%p38_p10) target bundleno = 21 (0x15), region = 191 }
0x14dc   :  { %3326 = vsyncpa [#allocation3], 1 }
0x14dd   :  { %3328 = vsyncpa [#allocation3 + $0x1], 1 }
0x14de   :  { %3329 = vsyncpa [#allocation6], 1 }
0x14df   :  { %3330 = vsyncpa [#allocation9], 1 }
0x14e0   :  { %3331 = vsyncpa [#allocation12], 1 }
0x14e1   :  { %3332 = vsyncpa [#allocation15], 1 }
0x14e2   :  { %3333 = vsyncpa [#allocation18], 1 }
0x14e3   :  { %3334 = vsyncpa [#allocation4], 1 }
0x14e4   :  { %3336 = vsyncpa [#allocation4 + $0x1], 1 }

</bundles_post_ra>
